<compile_context>
chip_gen: v6e
topology: v6e:2x2x1
jax: 0.10.0
libtpu: 0.0.40
codegen_flags: <defaults>
</compile_context>

<pallas_src>
import functools

import jax
import jax.numpy as jnp
from jax.experimental import pallas as pl
from jax.experimental.pallas import tpu as pltpu


# ----------------------------------------------------------------------------
# Pallas kernels
# ----------------------------------------------------------------------------

def _mm_shift_act_kernel(*refs, relu, has_residual):
    """(a @ b) + shift [+ residual] [ReLU].  BN scale is pre-folded into b.

    Full-extent K/N blocks -> a single dot per M tile, no accumulator scratch.
    f32 accumulation via preferred_element_type; bf16 store.
    """
    if has_residual:
        a_ref, b_ref, shift_ref, res_ref, o_ref = refs
    else:
        a_ref, b_ref, shift_ref, o_ref = refs
        res_ref = None

    y = jnp.dot(a_ref[...], b_ref[...],
                preferred_element_type=jnp.float32) + shift_ref[...]
    if has_residual:
        y = y + res_ref[...].astype(jnp.float32)
    if relu:
        y = jnp.maximum(y, 0.0)
    o_ref[...] = y.astype(o_ref.dtype)


def _conv_dtap_kernel(a_ref, b_ref, shift_ref, o_ref, acc_ref, *, relu):
    """Depth-tap accumulating conv matmul.

    Grid = (N, Do, kd); the last ('arbitrary') axis walks the kd depth taps,
    the activation index_map offsets into the zero-padded input depth, and the
    f32 accumulator lives in VMEM scratch.  Epilogue adds the folded-BN shift
    and optional ReLU, then stores bf16.
    """
    tap = pl.program_id(2)

    @pl.when(tap == 0)
    def _():
        acc_ref[...] = jnp.zeros_like(acc_ref)

    acc_ref[...] += jnp.dot(a_ref[...], b_ref[...],
                            preferred_element_type=jnp.float32)

    @pl.when(tap == pl.num_programs(2) - 1)
    def _():
        y = acc_ref[...] + shift_ref[...]
        if relu:
            y = jnp.maximum(y, 0.0)
        o_ref[...] = y.astype(o_ref.dtype)


# ----------------------------------------------------------------------------
# Pallas wrappers
# ----------------------------------------------------------------------------

def _round_up(x, m):
    return (x + m - 1) // m * m


# tm <= 256 so stem-sized M (512) still yields >= 2 parallel M blocks (v7x
# megacore); for the tiny bottleneck matmuls a single full-extent block wins.
_TM_MAX = 256


def matmul_shift_act(a, b, shift, *, relu, residual=None):
    """act(a @ b + shift [+ residual]).

    a: [M, K] bf16, b: [K, N] bf16 (BN scale already folded), shift: [N] f32,
    residual: [M, N] bf16 or None.  K and N are full-extent blocks (no padding
    and no output slicing); only M is tiled / padded to a multiple of tm.
    """
    M, K = a.shape
    Nc = b.shape[1]

    if M <= _TM_MAX:
        tm, Mp = M, M          # single full-extent block, no padding/slicing
    else:
        tm = _TM_MAX
        Mp = _round_up(M, tm)

    a_p = a.astype(jnp.bfloat16)
    res_p = None if residual is None else residual.astype(jnp.bfloat16)
    if Mp != M:
        a_p = jnp.pad(a_p, ((0, Mp - M), (0, 0)))
        if res_p is not None:
            res_p = jnp.pad(res_p, ((0, Mp - M), (0, 0)))

    shift2 = shift.astype(jnp.float32).reshape(1, Nc)
    has_residual = res_p is not None

    inputs = [a_p, b.astype(jnp.bfloat16), shift2]
    in_specs = [
        pl.BlockSpec((tm, K), lambda i: (i, 0)),
        pl.BlockSpec((K, Nc), lambda i: (0, 0)),
        pl.BlockSpec((1, Nc), lambda i: (0, 0)),
    ]
    if has_residual:
        inputs.append(res_p)
        in_specs.append(pl.BlockSpec((tm, Nc), lambda i: (i, 0)))

    # TODO(synk): at real ResNet-152 widths (K up to ~2304, N up to 2048) K/N
    # should be tiled again (tk/tn = 256 on v6e/v7x, 128 on v5e) with an
    # accumulating K axis; at these scaled-down widths full-extent blocks win.
    out = pl.pallas_call(
        functools.partial(_mm_shift_act_kernel, relu=relu,
                          has_residual=has_residual),
        out_shape=jax.ShapeDtypeStruct((Mp, Nc), jnp.bfloat16),
        grid_spec=pltpu.PrefetchScalarGridSpec(
            num_scalar_prefetch=0,
            grid=(Mp // tm,),
            in_specs=in_specs,
            out_specs=pl.BlockSpec((tm, Nc), lambda i: (i, 0)),
        ),
        compiler_params=pltpu.CompilerParams(
            dimension_semantics=("parallel",)),
    )(*inputs)
    if Mp != M:
        out = out[:M]
    return out


def conv3d_dtap_bn_act(x, w_d, shift, *, ksize, stride, padding, relu):
    """kd x kh x kw conv + folded-BN shift (+ReLU), channels-last.

    x: [N, D, H, W, Cin] bf16; w_d: [kd, kh*kw*Cin, Cout] bf16 (scale folded).
    The kd depth taps are accumulated inside the Pallas kernel (grid axis with
    element-granular D offsets); only the kh*kw in-plane taps are gathered by
    XLA.
    """
    N, D, H, W, Cin = x.shape
    kd, kh, kw = ksize
    sd, sh, sw = stride
    pd, ph, pw = padding
    Do = (D + 2 * pd - kd) // sd + 1
    Ho = (H + 2 * ph - kh) // sh + 1
    Wo = (W + 2 * pw - kw) // sw + 1
    Cout = w_d.shape[-1]
    Khw = kh * kw * Cin

    xp = jnp.pad(x, ((0, 0), (pd, pd), (ph, ph), (pw, pw), (0, 0)))

    # TODO(synk): the kh*kw in-plane window gather is still materialized by
    # XLA (9x / 49x the input); a fully fused version would also walk the H/W
    # taps from a pl.ANY-resident input inside the kernel.
    cols = []
    for j in range(kh):
        for k in range(kw):
            cols.append(xp[:, :,
                           j:j + (Ho - 1) * sh + 1:sh,
                           k:k + (Wo - 1) * sw + 1:sw, :])
    pat = jnp.concatenate(cols, axis=-1)           # [N, Dp, Ho, Wo, kh*kw*Cin]
    Dp = D + 2 * pd
    pat = pat.reshape(N, Dp, Ho * Wo, Khw).astype(jnp.bfloat16)

    shift2 = shift.astype(jnp.float32).reshape(1, Cout)

    out = pl.pallas_call(
        functools.partial(_conv_dtap_kernel, relu=relu),
        out_shape=jax.ShapeDtypeStruct((N, Do, Ho * Wo, Cout), jnp.bfloat16),
        grid_spec=pltpu.PrefetchScalarGridSpec(
            num_scalar_prefetch=0,
            grid=(N, Do, kd),
            in_specs=[
                # Block size 1 (squeezed) along D -> block index == element
                # index, so the index_map can walk d*sd + i over padded depth.
                pl.BlockSpec((None, None, Ho * Wo, Khw),
                             lambda n, d, i: (n, d * sd + i, 0, 0)),
                pl.BlockSpec((None, Khw, Cout), lambda n, d, i: (i, 0, 0)),
                pl.BlockSpec((1, Cout), lambda n, d, i: (0, 0)),
            ],
            out_specs=pl.BlockSpec((None, None, Ho * Wo, Cout),
                                   lambda n, d, i: (n, d, 0, 0)),
            scratch_shapes=[pltpu.VMEM((Ho * Wo, Cout), jnp.float32)],
        ),
        compiler_params=pltpu.CompilerParams(
            dimension_semantics=("parallel", "parallel", "arbitrary")),
    )(pat, w_d, shift2)
    return out.reshape(N, Do, Ho, Wo, Cout)


def conv1x1_bn_act(x, p, *, stride=(1, 1, 1), relu, residual=None):
    """1x1x1 conv + folded-BN shift (+residual)(+ReLU).

    Channels-last means a pointwise conv is a pure reshape + matmul (no
    im2col); residual add and ReLU are fused into the matmul epilogue.
    """
    sd, sh, sw = stride
    if stride != (1, 1, 1):
        x = x[:, ::sd, ::sh, ::sw, :]
    N, Do, Ho, Wo, Cin = x.shape
    Cout = p["w"].shape[1]
    a = x.reshape(N * Do * Ho * Wo, Cin)
    res2d = None
    if residual is not None:
        res2d = residual.reshape(N * Do * Ho * Wo, Cout)
    y = matmul_shift_act(a, p["w"], p["shift"], relu=relu, residual=res2d)
    return y.reshape(N, Do, Ho, Wo, Cout)


# ----------------------------------------------------------------------------
# Pooling (left to XLA fusion per the performance review)
# ----------------------------------------------------------------------------

def maxpool3d(x, ksize, stride, padding):
    """Max pool over D/H/W of channels-last x (PyTorch padding acts as -inf).

    jnp.maximum tree over shifted strided slices; the window reduction itself
    is left to XLA fusion (no [KK, M] HBM stack).
    """
    N, D, H, W, C = x.shape
    kd, kh, kw = ksize
    sd, sh, sw = stride
    pd, ph, pw = padding
    xp = jnp.pad(x, ((0, 0), (pd, pd), (ph, ph), (pw, pw), (0, 0)),
                 constant_values=-jnp.inf)
    Do = (D + 2 * pd - kd) // sd + 1
    Ho = (H + 2 * ph - kh) // sh + 1
    Wo = (W + 2 * pw - kw) // sw + 1
    out = None
    for i in range(kd):
        for j in range(kh):
            for k in range(kw):
                sl = xp[:,
                        i:i + (Do - 1) * sd + 1:sd,
                        j:j + (Ho - 1) * sh + 1:sh,
                        k:k + (Wo - 1) * sw + 1:sw, :]
                out = sl if out is None else jnp.maximum(out, sl)
    return out


def global_avg_pool(x):
    """[N, D, H, W, C] -> [N, C] float32 (adaptive avg pool to 1x1x1).

    The final tensor here is [2, 1, 1, 1, 128]; a dedicated Pallas launch
    costs more than the reduction (perf review), so the mean stays in XLA.
    """
    N, D, H, W, C = x.shape
    return x.reshape(N, D * H * W, C).astype(jnp.float32).mean(axis=1)


# ----------------------------------------------------------------------------
# Scaled-down I3ResNet: stem + 4 bottleneck stages (skips) + pooled feature
# ----------------------------------------------------------------------------

STEM_OUT = 8
LAYER_CONFIG = (
    dict(cin=8,   planes=8,  cout=32,  stride=(1, 1, 1)),
    dict(cin=32,  planes=16, cout=64,  stride=(2, 2, 2)),
    dict(cin=64,  planes=32, cout=128, stride=(2, 2, 2)),
    dict(cin=128, planes=32, cout=128, stride=(1, 1, 1)),
)


def _conv_init(key, cout, cin, kd, kh, kw):
    fan_in = cin * kd * kh * kw
    return (jax.random.normal(key, (cout, cin, kd, kh, kw), jnp.float32)
            * (2.0 / fan_in) ** 0.5)


def _bn_init(key, c):
    k1, k2 = jax.random.split(key)
    gamma = 1.0 + 0.1 * jax.random.normal(k1, (c,), jnp.float32)
    beta = 0.1 * jax.random.normal(k2, (c,), jnp.float32)
    running_mean = jnp.zeros((c,), jnp.float32)
    running_var = jnp.ones((c,), jnp.float32)
    scale = gamma / jnp.sqrt(running_var + 1e-5)
    shift = beta - running_mean * scale
    return scale, shift


def make_params(key):
    """Raw (torch-layout) conv weights + inference-BN (scale, shift)."""
    keys = iter(jax.random.split(key, 64))
    params = {
        "stem_w": _conv_init(next(keys), STEM_OUT, 3, 3, 7, 7),
        "stem_bn": _bn_init(next(keys), STEM_OUT),
        "layers": [],
    }
    for cfg in LAYER_CONFIG:
        cin, planes, cout, stride = (cfg["cin"], cfg["planes"], cfg["cout"],
                                     cfg["stride"])
        p = {
            "w1": _conv_init(next(keys), planes, cin, 1, 1, 1),
            "bn1": _bn_init(next(keys), planes),
            "w2": _conv_init(next(keys), planes, planes, 3, 3, 3),
            "bn2": _bn_init(next(keys), planes),
            "w3": _conv_init(next(keys), cout, planes, 1, 1, 1),
            "bn3": _bn_init(next(keys), cout),
        }
        if stride != (1, 1, 1) or cin != cout:
            p["wd"] = _conv_init(next(keys), cout, cin, 1, 1, 1)
            p["bnd"] = _bn_init(next(keys), cout)
        params["layers"].append(p)
    return params


def _fold_1x1(w, bn):
    scale, shift = bn
    cout, cin = w.shape[0], w.shape[1]
    # Fold BN scale into the weight columns in f32, then cast bf16.
    wm = w.reshape(cout, cin).T.astype(jnp.float32) * scale[None, :]
    return {"w": wm.astype(jnp.bfloat16), "shift": shift.astype(jnp.float32)}


def _fold_ktap(w, bn):
    scale, shift = bn
    cout, cin, kd, kh, kw = w.shape
    wm = (w.transpose(2, 3, 4, 1, 0).reshape(kd, kh * kw * cin, cout)
          .astype(jnp.float32) * scale[None, None, :])
    return {"w": wm.astype(jnp.bfloat16), "shift": shift.astype(jnp.float32)}


def prepare_params(params):
    """Fold BN scale into the conv weights and pre-flatten/transpose every
    weight once, outside forward() (no per-call weight reshapes)."""
    prep = {
        "stem": _fold_ktap(params["stem_w"], params["stem_bn"]),
        "layers": [],
    }
    for p in params["layers"]:
        q = {
            "c1": _fold_1x1(p["w1"], p["bn1"]),
            "c2": _fold_ktap(p["w2"], p["bn2"]),
            "c3": _fold_1x1(p["w3"], p["bn3"]),
        }
        if "wd" in p:
            q["down"] = _fold_1x1(p["wd"], p["bnd"])
        prep["layers"].append(q)
    return prep


def bottleneck(x, q, stride):
    if "down" in q:
        identity = conv1x1_bn_act(x, q["down"], stride=stride, relu=False)
    else:
        identity = x
    out = conv1x1_bn_act(x, q["c1"], relu=True)
    out = conv3d_dtap_bn_act(out, q["c2"]["w"], q["c2"]["shift"],
                             ksize=(3, 3, 3), stride=stride,
                             padding=(1, 1, 1), relu=True)
    # conv3 + BN shift + residual add + ReLU fused into one Pallas epilogue.
    # TODO(synk): fusing the whole bottleneck (conv1->conv2->conv3+residual)
    # into a single pallas_call with VMEM-resident intermediates would remove
    # ~3 launches per stage at these tiny M; not done here.
    out = conv1x1_bn_act(out, q["c3"], relu=True, residual=identity)
    return out


def forward(prep, image):
    """Mirrors ImageClassifier.forward: returns (skips, pooled_feat).

    image: [N, C, D, H, W] (PyTorch NCDHW).  Internally channels-last NDHWC
    bf16; skips are transposed back to NCDHW f32 only at the output.
    """
    x = jnp.transpose(image, (0, 2, 3, 4, 1)).astype(jnp.bfloat16)

    # Inflated stem: conv(3,7,7)/s(1,2,2) + BN + ReLU, then maxpool(3,3,3)/s2.
    x = conv3d_dtap_bn_act(x, prep["stem"]["w"], prep["stem"]["shift"],
                           ksize=(3, 7, 7), stride=(1, 2, 2),
                           padding=(1, 3, 3), relu=True)
    x = maxpool3d(x, (3, 3, 3), (2, 2, 2), (1, 1, 1))

    skips = []
    for q, cfg in zip(prep["layers"], LAYER_CONFIG):
        x = bottleneck(x, q, cfg["stride"])
        skips.append(jnp.transpose(x, (0, 4, 1, 2, 3)).astype(jnp.float32))

    pooled_feat = global_avg_pool(x)   # [N, C_final] float32
    return tuple(skips), pooled_feat


if __name__ == "__main__":
    key = jax.random.PRNGKey(0)
    pkey, xkey = jax.random.split(key)
    params = prepare_params(make_params(pkey))
    # image: [N, C, D, H, W] = [2, 3, 4, 16, 16]
    image = jax.random.normal(xkey, (2, 3, 4, 16, 16), jnp.float32)

    skips, pooled_feat = jax.jit(forward)(params, image)
    for s in skips:
        jax.block_until_ready(s)
    jax.block_until_ready(pooled_feat)
    print("KERNEL_OK")
</pallas_src>

<mosaic_0001>
module attributes {stable_mosaic.version = 11 : i64} {
  func.func @_conv_dtap_kernel(%arg0: i32, %arg1: i32, %arg2: i32, %arg3: memref<1x1x64x147xbf16, #tpu.memory_space<vmem>>, %arg4: memref<1x147x8xbf16, #tpu.memory_space<vmem>>, %arg5: memref<1x8xf32, #tpu.memory_space<vmem>>, %arg6: memref<1x1x64x8xbf16, #tpu.memory_space<vmem>>, %arg7: memref<64x8xf32, #tpu.memory_space<vmem>>) attributes {dimension_semantics = [#tpu.dimension_semantics<parallel>, #tpu.dimension_semantics<parallel>, #tpu.dimension_semantics<arbitrary>], iteration_bounds = array<i64: 2, 4, 3>, scalar_prefetch = 0 : i64, scratch_operands = 1 : i64, tpu.core_type = #tpu.core_type<tc>, window_params = [{transform_indices = @transform_0, window_bounds = array<i64: 1, 1, 64, 147>}, {transform_indices = @transform_1, window_bounds = array<i64: 1, 147, 8>}, {pipeline_mode = #tpu.pipeline_mode<synchronous>, transform_indices = @transform_2, window_bounds = array<i64: 1, 8>}, {transform_indices = @transform_3, window_bounds = array<i64: 1, 1, 64, 8>}]} {
    %c0_i32 = arith.constant 0 : i32
    %0 = arith.cmpi eq, %arg2, %c0_i32 : i32
    %1 = arith.extui %0 : i1 to i32
    %c0_i32_0 = arith.constant 0 : i32
    %2 = arith.cmpi ne, %1, %c0_i32_0 : i32
    scf.if %2 {
      %cst_12 = arith.constant 0.000000e+00 : f32
      %14 = vector.broadcast %cst_12 : f32 to vector<64x8xf32>
      %c0_13 = arith.constant 0 : index
      %c0_14 = arith.constant 0 : index
      %15 = vector.load %arg7[%c0_13, %c0_14] : memref<64x8xf32, #tpu.memory_space<vmem>>, vector<64x8xf32>
      tpu.vector_store %arg7[%c0_13, %c0_14], %14 {strides = array<i32>} : memref<64x8xf32, #tpu.memory_space<vmem>>, vector<64x8xf32>,
    } else {
    }
    %c0 = arith.constant 0 : index
    %c0_1 = arith.constant 0 : index
    %3 = vector.load %arg7[%c0, %c0_1] : memref<64x8xf32, #tpu.memory_space<vmem>>, vector<64x8xf32>
    %c0_2 = arith.constant 0 : index
    %c0_3 = arith.constant 0 : index
    %c0_4 = arith.constant 0 : index
    %c0_5 = arith.constant 0 : index
    %4 = vector.load %arg3[%c0_2, %c0_3, %c0_4, %c0_5] : memref<1x1x64x147xbf16, #tpu.memory_space<vmem>>, vector<1x1x64x147xbf16>
    %5 = vector.shape_cast %4 : vector<1x1x64x147xbf16> to vector<64x147xbf16>
    %c0_6 = arith.constant 0 : index
    %c0_7 = arith.constant 0 : index
    %c0_8 = arith.constant 0 : index
    %6 = vector.load %arg4[%c0_6, %c0_7, %c0_8] : memref<1x147x8xbf16, #tpu.memory_space<vmem>>, vector<1x147x8xbf16>
    %7 = vector.shape_cast %6 : vector<1x147x8xbf16> to vector<147x8xbf16>
    %cst = arith.constant dense<0.000000e+00> : vector<64x8xf32>
    %8 = tpu.matmul %5, %7, %cst {dimension_numbers = #tpu.dot_dimension_numbers<[1], [0], [0], [1], [0, 0, 1, 1], [], []>} : vector<64x147xbf16>, vector<147x8xbf16>, vector<64x8xf32> -> vector<64x8xf32>
    %9 = arith.addf %3, %8 : vector<64x8xf32>
    %c0_9 = arith.constant 0 : index
    %c0_10 = arith.constant 0 : index
    %10 = vector.load %arg7[%c0_9, %c0_10] : memref<64x8xf32, #tpu.memory_space<vmem>>, vector<64x8xf32>
    tpu.vector_store %arg7[%c0_9, %c0_10], %9 {strides = array<i32>} : memref<64x8xf32, #tpu.memory_space<vmem>>, vector<64x8xf32>,
    %c2_i32 = arith.constant 2 : i32
    %11 = arith.cmpi eq, %arg2, %c2_i32 : i32
    %12 = arith.extui %11 : i1 to i32
    %c0_i32_11 = arith.constant 0 : i32
    %13 = arith.cmpi ne, %12, %c0_i32_11 : i32
    scf.if %13 {
      %c0_12 = arith.constant 0 : index
      %c0_13 = arith.constant 0 : index
      %14 = vector.load %arg7[%c0_12, %c0_13] : memref<64x8xf32, #tpu.memory_space<vmem>>, vector<64x8xf32>
      %c0_14 = arith.constant 0 : index
      %c0_15 = arith.constant 0 : index
      %15 = vector.load %arg5[%c0_14, %c0_15] : memref<1x8xf32, #tpu.memory_space<vmem>>, vector<1x8xf32>
      %16 = vector.broadcast %15 : vector<1x8xf32> to vector<64x8xf32>
      %17 = arith.addf %14, %16 : vector<64x8xf32>
      %cst_16 = arith.constant 0.000000e+00 : f32
      %18 = vector.broadcast %cst_16 : f32 to vector<64x8xf32>
      %19 = arith.maximumf %17, %18 : vector<64x8xf32>
      %20 = arith.truncf %19 : vector<64x8xf32> to vector<64x8xbf16>
      %c0_17 = arith.constant 0 : index
      %c0_18 = arith.constant 0 : index
      %c0_19 = arith.constant 0 : index
      %c0_20 = arith.constant 0 : index
      %21 = vector.load %arg6[%c0_17, %c0_18, %c0_19, %c0_20] : memref<1x1x64x8xbf16, #tpu.memory_space<vmem>>, vector<1x1x64x8xbf16>
      %22 = vector.shape_cast %21 : vector<1x1x64x8xbf16> to vector<64x8xbf16>
      %23 = vector.shape_cast %20 : vector<64x8xbf16> to vector<1x1x64x8xbf16>
      tpu.vector_store %arg6[%c0_17, %c0_18, %c0_19, %c0_20], %23 {strides = array<i32>} : memref<1x1x64x8xbf16, #tpu.memory_space<vmem>>, vector<1x1x64x8xbf16>,
    } else {
    }
    return
  }
  func.func @transform_0(%arg0: i32, %arg1: i32, %arg2: i32) -> (i32, i32, i32, i32) {
    %c1_i32 = arith.constant 1 : i32
    %0 = arith.muli %arg1, %c1_i32 : i32
    %1 = arith.addi %0, %arg2 : i32
    %c0_i32 = arith.constant 0 : i32
    %c0_i32_0 = arith.constant 0 : i32
    %c0_i32_1 = arith.constant 0 : i32
    return %arg0, %1, %c0_i32, %c0_i32_0 : i32, i32, i32, i32
  }
  func.func @transform_1(%arg0: i32, %arg1: i32, %arg2: i32) -> (i32, i32, i32) {
    %c0_i32 = arith.constant 0 : i32
    %c0_i32_0 = arith.constant 0 : i32
    %c0_i32_1 = arith.constant 0 : i32
    return %arg2, %c0_i32, %c0_i32_0 : i32, i32, i32
  }
  func.func @transform_2(%arg0: i32, %arg1: i32, %arg2: i32) -> (i32, i32) {
    %c0_i32 = arith.constant 0 : i32
    %c0_i32_0 = arith.constant 0 : i32
    %c0_i32_1 = arith.constant 0 : i32
    return %c0_i32, %c0_i32_0 : i32, i32
  }
  func.func @transform_3(%arg0: i32, %arg1: i32, %arg2: i32) -> (i32, i32, i32, i32) {
    %c0_i32 = arith.constant 0 : i32
    %c0_i32_0 = arith.constant 0 : i32
    %c0_i32_1 = arith.constant 0 : i32
    return %arg0, %arg1, %c0_i32, %c0_i32_0 : i32, i32, i32, i32
  }
}

module attributes {stable_mosaic.version = 11 : i64} {
  func.func @_mm_shift_act_kernel(%arg0: i32, %arg1: memref<64x8xbf16, #tpu.memory_space<vmem>>, %arg2: memref<8x8xbf16, #tpu.memory_space<vmem>>, %arg3: memref<1x8xf32, #tpu.memory_space<vmem>>, %arg4: memref<64x8xbf16, #tpu.memory_space<vmem>>) attributes {dimension_semantics = [#tpu.dimension_semantics<parallel>], iteration_bounds = array<i64: 1>, scalar_prefetch = 0 : i64, scratch_operands = 0 : i64, tpu.core_type = #tpu.core_type<tc>, window_params = [{transform_indices = @transform_0, window_bounds = array<i64: 64, 8>}, {pipeline_mode = #tpu.pipeline_mode<synchronous>, transform_indices = @transform_1, window_bounds = array<i64: 8, 8>}, {pipeline_mode = #tpu.pipeline_mode<synchronous>, transform_indices = @transform_2, window_bounds = array<i64: 1, 8>}, {transform_indices = @transform_3, window_bounds = array<i64: 64, 8>}]} {
    %c0 = arith.constant 0 : index
    %c0_0 = arith.constant 0 : index
    %0 = vector.load %arg1[%c0, %c0_0] : memref<64x8xbf16, #tpu.memory_space<vmem>>, vector<64x8xbf16>
    %c0_1 = arith.constant 0 : index
    %c0_2 = arith.constant 0 : index
    %1 = vector.load %arg2[%c0_1, %c0_2] : memref<8x8xbf16, #tpu.memory_space<vmem>>, vector<8x8xbf16>
    %cst = arith.constant dense<0.000000e+00> : vector<64x8xf32>
    %2 = tpu.matmul %0, %1, %cst {dimension_numbers = #tpu.dot_dimension_numbers<[1], [0], [0], [1], [0, 0, 1, 1], [], []>} : vector<64x8xbf16>, vector<8x8xbf16>, vector<64x8xf32> -> vector<64x8xf32>
    %c0_3 = arith.constant 0 : index
    %c0_4 = arith.constant 0 : index
    %3 = vector.load %arg3[%c0_3, %c0_4] : memref<1x8xf32, #tpu.memory_space<vmem>>, vector<1x8xf32>
    %4 = vector.broadcast %3 : vector<1x8xf32> to vector<64x8xf32>
    %5 = arith.addf %2, %4 : vector<64x8xf32>
    %cst_5 = arith.constant 0.000000e+00 : f32
    %6 = vector.broadcast %cst_5 : f32 to vector<64x8xf32>
    %7 = arith.maximumf %5, %6 : vector<64x8xf32>
    %8 = arith.truncf %7 : vector<64x8xf32> to vector<64x8xbf16>
    %c0_6 = arith.constant 0 : index
    %c0_7 = arith.constant 0 : index
    %9 = vector.load %arg4[%c0_6, %c0_7] : memref<64x8xbf16, #tpu.memory_space<vmem>>, vector<64x8xbf16>
    tpu.vector_store %arg4[%c0_6, %c0_7], %8 {strides = array<i32>} : memref<64x8xbf16, #tpu.memory_space<vmem>>, vector<64x8xbf16>,
    return
  }
  func.func @transform_0(%arg0: i32) -> (i32, i32) {
    %c0_i32 = arith.constant 0 : i32
    %c0_i32_0 = arith.constant 0 : i32
    return %arg0, %c0_i32 : i32, i32
  }
  func.func @transform_1(%arg0: i32) -> (i32, i32) {
    %c0_i32 = arith.constant 0 : i32
    %c0_i32_0 = arith.constant 0 : i32
    %c0_i32_1 = arith.constant 0 : i32
    return %c0_i32, %c0_i32_0 : i32, i32
  }
  func.func @transform_2(%arg0: i32) -> (i32, i32) {
    %c0_i32 = arith.constant 0 : i32
    %c0_i32_0 = arith.constant 0 : i32
    %c0_i32_1 = arith.constant 0 : i32
    return %c0_i32, %c0_i32_0 : i32, i32
  }
  func.func @transform_3(%arg0: i32) -> (i32, i32) {
    %c0_i32 = arith.constant 0 : i32
    %c0_i32_0 = arith.constant 0 : i32
    return %arg0, %c0_i32 : i32, i32
  }
}

module attributes {stable_mosaic.version = 11 : i64} {
  func.func @_mm_shift_act_kernel(%arg0: i32, %arg1: memref<64x8xbf16, #tpu.memory_space<vmem>>, %arg2: memref<8x32xbf16, #tpu.memory_space<vmem>>, %arg3: memref<1x32xf32, #tpu.memory_space<vmem>>, %arg4: memref<64x32xbf16, #tpu.memory_space<vmem>>, %arg5: memref<64x32xbf16, #tpu.memory_space<vmem>>) attributes {dimension_semantics = [#tpu.dimension_semantics<parallel>], iteration_bounds = array<i64: 1>, scalar_prefetch = 0 : i64, scratch_operands = 0 : i64, tpu.core_type = #tpu.core_type<tc>, window_params = [{transform_indices = @transform_0, window_bounds = array<i64: 64, 8>}, {pipeline_mode = #tpu.pipeline_mode<synchronous>, transform_indices = @transform_1, window_bounds = array<i64: 8, 32>}, {pipeline_mode = #tpu.pipeline_mode<synchronous>, transform_indices = @transform_2, window_bounds = array<i64: 1, 32>}, {transform_indices = @transform_3, window_bounds = array<i64: 64, 32>}, {transform_indices = @transform_4, window_bounds = array<i64: 64, 32>}]} {
    %c0 = arith.constant 0 : index
    %c0_0 = arith.constant 0 : index
    %0 = vector.load %arg1[%c0, %c0_0] : memref<64x8xbf16, #tpu.memory_space<vmem>>, vector<64x8xbf16>
    %c0_1 = arith.constant 0 : index
    %c0_2 = arith.constant 0 : index
    %1 = vector.load %arg2[%c0_1, %c0_2] : memref<8x32xbf16, #tpu.memory_space<vmem>>, vector<8x32xbf16>
    %cst = arith.constant dense<0.000000e+00> : vector<64x32xf32>
    %2 = tpu.matmul %0, %1, %cst {dimension_numbers = #tpu.dot_dimension_numbers<[1], [0], [0], [1], [0, 0, 1, 1], [], []>} : vector<64x8xbf16>, vector<8x32xbf16>, vector<64x32xf32> -> vector<64x32xf32>
    %c0_3 = arith.constant 0 : index
    %c0_4 = arith.constant 0 : index
    %3 = vector.load %arg3[%c0_3, %c0_4] : memref<1x32xf32, #tpu.memory_space<vmem>>, vector<1x32xf32>
    %4 = vector.broadcast %3 : vector<1x32xf32> to vector<64x32xf32>
    %5 = arith.addf %2, %4 : vector<64x32xf32>
    %c0_5 = arith.constant 0 : index
    %c0_6 = arith.constant 0 : index
    %6 = vector.load %arg4[%c0_5, %c0_6] : memref<64x32xbf16, #tpu.memory_space<vmem>>, vector<64x32xbf16>
    %7 = arith.extf %6 : vector<64x32xbf16> to vector<64x32xf32>
    %8 = arith.addf %5, %7 : vector<64x32xf32>
    %cst_7 = arith.constant 0.000000e+00 : f32
    %9 = vector.broadcast %cst_7 : f32 to vector<64x32xf32>
    %10 = arith.maximumf %8, %9 : vector<64x32xf32>
    %11 = arith.truncf %10 : vector<64x32xf32> to vector<64x32xbf16>
    %c0_8 = arith.constant 0 : index
    %c0_9 = arith.constant 0 : index
    %12 = vector.load %arg5[%c0_8, %c0_9] : memref<64x32xbf16, #tpu.memory_space<vmem>>, vector<64x32xbf16>
    tpu.vector_store %arg5[%c0_8, %c0_9], %11 {strides = array<i32>} : memref<64x32xbf16, #tpu.memory_space<vmem>>, vector<64x32xbf16>,
    return
  }
  func.func @transform_0(%arg0: i32) -> (i32, i32) {
    %c0_i32 = arith.constant 0 : i32
    %c0_i32_0 = arith.constant 0 : i32
    return %arg0, %c0_i32 : i32, i32
  }
  func.func @transform_1(%arg0: i32) -> (i32, i32) {
    %c0_i32 = arith.constant 0 : i32
    %c0_i32_0 = arith.constant 0 : i32
    %c0_i32_1 = arith.constant 0 : i32
    return %c0_i32, %c0_i32_0 : i32, i32
  }
  func.func @transform_2(%arg0: i32) -> (i32, i32) {
    %c0_i32 = arith.constant 0 : i32
    %c0_i32_0 = arith.constant 0 : i32
    %c0_i32_1 = arith.constant 0 : i32
    return %c0_i32, %c0_i32_0 : i32, i32
  }
  func.func @transform_3(%arg0: i32) -> (i32, i32) {
    %c0_i32 = arith.constant 0 : i32
    %c0_i32_0 = arith.constant 0 : i32
    return %arg0, %c0_i32 : i32, i32
  }
  func.func @transform_4(%arg0: i32) -> (i32, i32) {
    %c0_i32 = arith.constant 0 : i32
    %c0_i32_0 = arith.constant 0 : i32
    return %arg0, %c0_i32 : i32, i32
  }
}

module attributes {stable_mosaic.version = 11 : i64} {
  func.func @_conv_dtap_kernel(%arg0: i32, %arg1: i32, %arg2: i32, %arg3: memref<1x1x16x72xbf16, #tpu.memory_space<vmem>>, %arg4: memref<1x72x8xbf16, #tpu.memory_space<vmem>>, %arg5: memref<1x8xf32, #tpu.memory_space<vmem>>, %arg6: memref<1x1x16x8xbf16, #tpu.memory_space<vmem>>, %arg7: memref<16x8xf32, #tpu.memory_space<vmem>>) attributes {dimension_semantics = [#tpu.dimension_semantics<parallel>, #tpu.dimension_semantics<parallel>, #tpu.dimension_semantics<arbitrary>], iteration_bounds = array<i64: 2, 2, 3>, scalar_prefetch = 0 : i64, scratch_operands = 1 : i64, tpu.core_type = #tpu.core_type<tc>, window_params = [{transform_indices = @transform_0, window_bounds = array<i64: 1, 1, 16, 72>}, {transform_indices = @transform_1, window_bounds = array<i64: 1, 72, 8>}, {pipeline_mode = #tpu.pipeline_mode<synchronous>, transform_indices = @transform_2, window_bounds = array<i64: 1, 8>}, {transform_indices = @transform_3, window_bounds = array<i64: 1, 1, 16, 8>}]} {
    %c0_i32 = arith.constant 0 : i32
    %0 = arith.cmpi eq, %arg2, %c0_i32 : i32
    %1 = arith.extui %0 : i1 to i32
    %c0_i32_0 = arith.constant 0 : i32
    %2 = arith.cmpi ne, %1, %c0_i32_0 : i32
    scf.if %2 {
      %cst_12 = arith.constant 0.000000e+00 : f32
      %14 = vector.broadcast %cst_12 : f32 to vector<16x8xf32>
      %c0_13 = arith.constant 0 : index
      %c0_14 = arith.constant 0 : index
      %15 = vector.load %arg7[%c0_13, %c0_14] : memref<16x8xf32, #tpu.memory_space<vmem>>, vector<16x8xf32>
      tpu.vector_store %arg7[%c0_13, %c0_14], %14 {strides = array<i32>} : memref<16x8xf32, #tpu.memory_space<vmem>>, vector<16x8xf32>,
    } else {
    }
    %c0 = arith.constant 0 : index
    %c0_1 = arith.constant 0 : index
    %3 = vector.load %arg7[%c0, %c0_1] : memref<16x8xf32, #tpu.memory_space<vmem>>, vector<16x8xf32>
    %c0_2 = arith.constant 0 : index
    %c0_3 = arith.constant 0 : index
    %c0_4 = arith.constant 0 : index
    %c0_5 = arith.constant 0 : index
    %4 = vector.load %arg3[%c0_2, %c0_3, %c0_4, %c0_5] : memref<1x1x16x72xbf16, #tpu.memory_space<vmem>>, vector<1x1x16x72xbf16>
    %5 = vector.shape_cast %4 : vector<1x1x16x72xbf16> to vector<16x72xbf16>
    %c0_6 = arith.constant 0 : index
    %c0_7 = arith.constant 0 : index
    %c0_8 = arith.constant 0 : index
    %6 = vector.load %arg4[%c0_6, %c0_7, %c0_8] : memref<1x72x8xbf16, #tpu.memory_space<vmem>>, vector<1x72x8xbf16>
    %7 = vector.shape_cast %6 : vector<1x72x8xbf16> to vector<72x8xbf16>
    %cst = arith.constant dense<0.000000e+00> : vector<16x8xf32>
    %8 = tpu.matmul %5, %7, %cst {dimension_numbers = #tpu.dot_dimension_numbers<[1], [0], [0], [1], [0, 0, 1, 1], [], []>} : vector<16x72xbf16>, vector<72x8xbf16>, vector<16x8xf32> -> vector<16x8xf32>
    %9 = arith.addf %3, %8 : vector<16x8xf32>
    %c0_9 = arith.constant 0 : index
    %c0_10 = arith.constant 0 : index
    %10 = vector.load %arg7[%c0_9, %c0_10] : memref<16x8xf32, #tpu.memory_space<vmem>>, vector<16x8xf32>
    tpu.vector_store %arg7[%c0_9, %c0_10], %9 {strides = array<i32>} : memref<16x8xf32, #tpu.memory_space<vmem>>, vector<16x8xf32>,
    %c2_i32 = arith.constant 2 : i32
    %11 = arith.cmpi eq, %arg2, %c2_i32 : i32
    %12 = arith.extui %11 : i1 to i32
    %c0_i32_11 = arith.constant 0 : i32
    %13 = arith.cmpi ne, %12, %c0_i32_11 : i32
    scf.if %13 {
      %c0_12 = arith.constant 0 : index
      %c0_13 = arith.constant 0 : index
      %14 = vector.load %arg7[%c0_12, %c0_13] : memref<16x8xf32, #tpu.memory_space<vmem>>, vector<16x8xf32>
      %c0_14 = arith.constant 0 : index
      %c0_15 = arith.constant 0 : index
      %15 = vector.load %arg5[%c0_14, %c0_15] : memref<1x8xf32, #tpu.memory_space<vmem>>, vector<1x8xf32>
      %16 = vector.broadcast %15 : vector<1x8xf32> to vector<16x8xf32>
      %17 = arith.addf %14, %16 : vector<16x8xf32>
      %cst_16 = arith.constant 0.000000e+00 : f32
      %18 = vector.broadcast %cst_16 : f32 to vector<16x8xf32>
      %19 = arith.maximumf %17, %18 : vector<16x8xf32>
      %20 = arith.truncf %19 : vector<16x8xf32> to vector<16x8xbf16>
      %c0_17 = arith.constant 0 : index
      %c0_18 = arith.constant 0 : index
      %c0_19 = arith.constant 0 : index
      %c0_20 = arith.constant 0 : index
      %21 = vector.load %arg6[%c0_17, %c0_18, %c0_19, %c0_20] : memref<1x1x16x8xbf16, #tpu.memory_space<vmem>>, vector<1x1x16x8xbf16>
      %22 = vector.shape_cast %21 : vector<1x1x16x8xbf16> to vector<16x8xbf16>
      %23 = vector.shape_cast %20 : vector<16x8xbf16> to vector<1x1x16x8xbf16>
      tpu.vector_store %arg6[%c0_17, %c0_18, %c0_19, %c0_20], %23 {strides = array<i32>} : memref<1x1x16x8xbf16, #tpu.memory_space<vmem>>, vector<1x1x16x8xbf16>,
    } else {
    }
    return
  }
  func.func @transform_0(%arg0: i32, %arg1: i32, %arg2: i32) -> (i32, i32, i32, i32) {
    %c1_i32 = arith.constant 1 : i32
    %0 = arith.muli %arg1, %c1_i32 : i32
    %1 = arith.addi %0, %arg2 : i32
    %c0_i32 = arith.constant 0 : i32
    %c0_i32_0 = arith.constant 0 : i32
    %c0_i32_1 = arith.constant 0 : i32
    return %arg0, %1, %c0_i32, %c0_i32_0 : i32, i32, i32, i32
  }
  func.func @transform_1(%arg0: i32, %arg1: i32, %arg2: i32) -> (i32, i32, i32) {
    %c0_i32 = arith.constant 0 : i32
    %c0_i32_0 = arith.constant 0 : i32
    %c0_i32_1 = arith.constant 0 : i32
    return %arg2, %c0_i32, %c0_i32_0 : i32, i32, i32
  }
  func.func @transform_2(%arg0: i32, %arg1: i32, %arg2: i32) -> (i32, i32) {
    %c0_i32 = arith.constant 0 : i32
    %c0_i32_0 = arith.constant 0 : i32
    %c0_i32_1 = arith.constant 0 : i32
    return %c0_i32, %c0_i32_0 : i32, i32
  }
  func.func @transform_3(%arg0: i32, %arg1: i32, %arg2: i32) -> (i32, i32, i32, i32) {
    %c0_i32 = arith.constant 0 : i32
    %c0_i32_0 = arith.constant 0 : i32
    %c0_i32_1 = arith.constant 0 : i32
    return %arg0, %arg1, %c0_i32, %c0_i32_0 : i32, i32, i32, i32
  }
}

module attributes {stable_mosaic.version = 11 : i64} {
  func.func @_mm_shift_act_kernel(%arg0: i32, %arg1: memref<64x8xbf16, #tpu.memory_space<vmem>>, %arg2: memref<8x32xbf16, #tpu.memory_space<vmem>>, %arg3: memref<1x32xf32, #tpu.memory_space<vmem>>, %arg4: memref<64x32xbf16, #tpu.memory_space<vmem>>) attributes {dimension_semantics = [#tpu.dimension_semantics<parallel>], iteration_bounds = array<i64: 1>, scalar_prefetch = 0 : i64, scratch_operands = 0 : i64, tpu.core_type = #tpu.core_type<tc>, window_params = [{transform_indices = @transform_0, window_bounds = array<i64: 64, 8>}, {pipeline_mode = #tpu.pipeline_mode<synchronous>, transform_indices = @transform_1, window_bounds = array<i64: 8, 32>}, {pipeline_mode = #tpu.pipeline_mode<synchronous>, transform_indices = @transform_2, window_bounds = array<i64: 1, 32>}, {transform_indices = @transform_3, window_bounds = array<i64: 64, 32>}]} {
    %c0 = arith.constant 0 : index
    %c0_0 = arith.constant 0 : index
    %0 = vector.load %arg1[%c0, %c0_0] : memref<64x8xbf16, #tpu.memory_space<vmem>>, vector<64x8xbf16>
    %c0_1 = arith.constant 0 : index
    %c0_2 = arith.constant 0 : index
    %1 = vector.load %arg2[%c0_1, %c0_2] : memref<8x32xbf16, #tpu.memory_space<vmem>>, vector<8x32xbf16>
    %cst = arith.constant dense<0.000000e+00> : vector<64x32xf32>
    %2 = tpu.matmul %0, %1, %cst {dimension_numbers = #tpu.dot_dimension_numbers<[1], [0], [0], [1], [0, 0, 1, 1], [], []>} : vector<64x8xbf16>, vector<8x32xbf16>, vector<64x32xf32> -> vector<64x32xf32>
    %c0_3 = arith.constant 0 : index
    %c0_4 = arith.constant 0 : index
    %3 = vector.load %arg3[%c0_3, %c0_4] : memref<1x32xf32, #tpu.memory_space<vmem>>, vector<1x32xf32>
    %4 = vector.broadcast %3 : vector<1x32xf32> to vector<64x32xf32>
    %5 = arith.addf %2, %4 : vector<64x32xf32>
    %6 = arith.truncf %5 : vector<64x32xf32> to vector<64x32xbf16>
    %c0_5 = arith.constant 0 : index
    %c0_6 = arith.constant 0 : index
    %7 = vector.load %arg4[%c0_5, %c0_6] : memref<64x32xbf16, #tpu.memory_space<vmem>>, vector<64x32xbf16>
    tpu.vector_store %arg4[%c0_5, %c0_6], %6 {strides = array<i32>} : memref<64x32xbf16, #tpu.memory_space<vmem>>, vector<64x32xbf16>,
    return
  }
  func.func @transform_0(%arg0: i32) -> (i32, i32) {
    %c0_i32 = arith.constant 0 : i32
    %c0_i32_0 = arith.constant 0 : i32
    return %arg0, %c0_i32 : i32, i32
  }
  func.func @transform_1(%arg0: i32) -> (i32, i32) {
    %c0_i32 = arith.constant 0 : i32
    %c0_i32_0 = arith.constant 0 : i32
    %c0_i32_1 = arith.constant 0 : i32
    return %c0_i32, %c0_i32_0 : i32, i32
  }
  func.func @transform_2(%arg0: i32) -> (i32, i32) {
    %c0_i32 = arith.constant 0 : i32
    %c0_i32_0 = arith.constant 0 : i32
    %c0_i32_1 = arith.constant 0 : i32
    return %c0_i32, %c0_i32_0 : i32, i32
  }
  func.func @transform_3(%arg0: i32) -> (i32, i32) {
    %c0_i32 = arith.constant 0 : i32
    %c0_i32_0 = arith.constant 0 : i32
    return %arg0, %c0_i32 : i32, i32
  }
}

module attributes {stable_mosaic.version = 11 : i64} {
  func.func @_mm_shift_act_kernel(%arg0: i32, %arg1: memref<64x32xbf16, #tpu.memory_space<vmem>>, %arg2: memref<32x16xbf16, #tpu.memory_space<vmem>>, %arg3: memref<1x16xf32, #tpu.memory_space<vmem>>, %arg4: memref<64x16xbf16, #tpu.memory_space<vmem>>) attributes {dimension_semantics = [#tpu.dimension_semantics<parallel>], iteration_bounds = array<i64: 1>, scalar_prefetch = 0 : i64, scratch_operands = 0 : i64, tpu.core_type = #tpu.core_type<tc>, window_params = [{transform_indices = @transform_0, window_bounds = array<i64: 64, 32>}, {pipeline_mode = #tpu.pipeline_mode<synchronous>, transform_indices = @transform_1, window_bounds = array<i64: 32, 16>}, {pipeline_mode = #tpu.pipeline_mode<synchronous>, transform_indices = @transform_2, window_bounds = array<i64: 1, 16>}, {transform_indices = @transform_3, window_bounds = array<i64: 64, 16>}]} {
    %c0 = arith.constant 0 : index
    %c0_0 = arith.constant 0 : index
    %0 = vector.load %arg1[%c0, %c0_0] : memref<64x32xbf16, #tpu.memory_space<vmem>>, vector<64x32xbf16>
    %c0_1 = arith.constant 0 : index
    %c0_2 = arith.constant 0 : index
    %1 = vector.load %arg2[%c0_1, %c0_2] : memref<32x16xbf16, #tpu.memory_space<vmem>>, vector<32x16xbf16>
    %cst = arith.constant dense<0.000000e+00> : vector<64x16xf32>
    %2 = tpu.matmul %0, %1, %cst {dimension_numbers = #tpu.dot_dimension_numbers<[1], [0], [0], [1], [0, 0, 1, 1], [], []>} : vector<64x32xbf16>, vector<32x16xbf16>, vector<64x16xf32> -> vector<64x16xf32>
    %c0_3 = arith.constant 0 : index
    %c0_4 = arith.constant 0 : index
    %3 = vector.load %arg3[%c0_3, %c0_4] : memref<1x16xf32, #tpu.memory_space<vmem>>, vector<1x16xf32>
    %4 = vector.broadcast %3 : vector<1x16xf32> to vector<64x16xf32>
    %5 = arith.addf %2, %4 : vector<64x16xf32>
    %cst_5 = arith.constant 0.000000e+00 : f32
    %6 = vector.broadcast %cst_5 : f32 to vector<64x16xf32>
    %7 = arith.maximumf %5, %6 : vector<64x16xf32>
    %8 = arith.truncf %7 : vector<64x16xf32> to vector<64x16xbf16>
    %c0_6 = arith.constant 0 : index
    %c0_7 = arith.constant 0 : index
    %9 = vector.load %arg4[%c0_6, %c0_7] : memref<64x16xbf16, #tpu.memory_space<vmem>>, vector<64x16xbf16>
    tpu.vector_store %arg4[%c0_6, %c0_7], %8 {strides = array<i32>} : memref<64x16xbf16, #tpu.memory_space<vmem>>, vector<64x16xbf16>,
    return
  }
  func.func @transform_0(%arg0: i32) -> (i32, i32) {
    %c0_i32 = arith.constant 0 : i32
    %c0_i32_0 = arith.constant 0 : i32
    return %arg0, %c0_i32 : i32, i32
  }
  func.func @transform_1(%arg0: i32) -> (i32, i32) {
    %c0_i32 = arith.constant 0 : i32
    %c0_i32_0 = arith.constant 0 : i32
    %c0_i32_1 = arith.constant 0 : i32
    return %c0_i32, %c0_i32_0 : i32, i32
  }
  func.func @transform_2(%arg0: i32) -> (i32, i32) {
    %c0_i32 = arith.constant 0 : i32
    %c0_i32_0 = arith.constant 0 : i32
    %c0_i32_1 = arith.constant 0 : i32
    return %c0_i32, %c0_i32_0 : i32, i32
  }
  func.func @transform_3(%arg0: i32) -> (i32, i32) {
    %c0_i32 = arith.constant 0 : i32
    %c0_i32_0 = arith.constant 0 : i32
    return %arg0, %c0_i32 : i32, i32
  }
}

module attributes {stable_mosaic.version = 11 : i64} {
  func.func @_mm_shift_act_kernel(%arg0: i32, %arg1: memref<8x32xbf16, #tpu.memory_space<vmem>>, %arg2: memref<32x64xbf16, #tpu.memory_space<vmem>>, %arg3: memref<1x64xf32, #tpu.memory_space<vmem>>, %arg4: memref<8x64xbf16, #tpu.memory_space<vmem>>) attributes {dimension_semantics = [#tpu.dimension_semantics<parallel>], iteration_bounds = array<i64: 1>, scalar_prefetch = 0 : i64, scratch_operands = 0 : i64, tpu.core_type = #tpu.core_type<tc>, window_params = [{transform_indices = @transform_0, window_bounds = array<i64: 8, 32>}, {pipeline_mode = #tpu.pipeline_mode<synchronous>, transform_indices = @transform_1, window_bounds = array<i64: 32, 64>}, {pipeline_mode = #tpu.pipeline_mode<synchronous>, transform_indices = @transform_2, window_bounds = array<i64: 1, 64>}, {transform_indices = @transform_3, window_bounds = array<i64: 8, 64>}]} {
    %c0 = arith.constant 0 : index
    %c0_0 = arith.constant 0 : index
    %0 = vector.load %arg1[%c0, %c0_0] : memref<8x32xbf16, #tpu.memory_space<vmem>>, vector<8x32xbf16>
    %c0_1 = arith.constant 0 : index
    %c0_2 = arith.constant 0 : index
    %1 = vector.load %arg2[%c0_1, %c0_2] : memref<32x64xbf16, #tpu.memory_space<vmem>>, vector<32x64xbf16>
    %cst = arith.constant dense<0.000000e+00> : vector<8x64xf32>
    %2 = tpu.matmul %0, %1, %cst {dimension_numbers = #tpu.dot_dimension_numbers<[1], [0], [0], [1], [0, 0, 1, 1], [], []>} : vector<8x32xbf16>, vector<32x64xbf16>, vector<8x64xf32> -> vector<8x64xf32>
    %c0_3 = arith.constant 0 : index
    %c0_4 = arith.constant 0 : index
    %3 = vector.load %arg3[%c0_3, %c0_4] : memref<1x64xf32, #tpu.memory_space<vmem>>, vector<1x64xf32>
    %4 = vector.broadcast %3 : vector<1x64xf32> to vector<8x64xf32>
    %5 = arith.addf %2, %4 : vector<8x64xf32>
    %6 = arith.truncf %5 : vector<8x64xf32> to vector<8x64xbf16>
    %c0_5 = arith.constant 0 : index
    %c0_6 = arith.constant 0 : index
    %7 = vector.load %arg4[%c0_5, %c0_6] : memref<8x64xbf16, #tpu.memory_space<vmem>>, vector<8x64xbf16>
    tpu.vector_store %arg4[%c0_5, %c0_6], %6 {strides = array<i32>} : memref<8x64xbf16, #tpu.memory_space<vmem>>, vector<8x64xbf16>,
    return
  }
  func.func @transform_0(%arg0: i32) -> (i32, i32) {
    %c0_i32 = arith.constant 0 : i32
    %c0_i32_0 = arith.constant 0 : i32
    return %arg0, %c0_i32 : i32, i32
  }
  func.func @transform_1(%arg0: i32) -> (i32, i32) {
    %c0_i32 = arith.constant 0 : i32
    %c0_i32_0 = arith.constant 0 : i32
    %c0_i32_1 = arith.constant 0 : i32
    return %c0_i32, %c0_i32_0 : i32, i32
  }
  func.func @transform_2(%arg0: i32) -> (i32, i32) {
    %c0_i32 = arith.constant 0 : i32
    %c0_i32_0 = arith.constant 0 : i32
    %c0_i32_1 = arith.constant 0 : i32
    return %c0_i32, %c0_i32_0 : i32, i32
  }
  func.func @transform_3(%arg0: i32) -> (i32, i32) {
    %c0_i32 = arith.constant 0 : i32
    %c0_i32_0 = arith.constant 0 : i32
    return %arg0, %c0_i32 : i32, i32
  }
}

module attributes {stable_mosaic.version = 11 : i64} {
  func.func @_conv_dtap_kernel(%arg0: i32, %arg1: i32, %arg2: i32, %arg3: memref<1x1x4x144xbf16, #tpu.memory_space<vmem>>, %arg4: memref<1x144x16xbf16, #tpu.memory_space<vmem>>, %arg5: memref<1x16xf32, #tpu.memory_space<vmem>>, %arg6: memref<1x1x4x16xbf16, #tpu.memory_space<vmem>>, %arg7: memref<4x16xf32, #tpu.memory_space<vmem>>) attributes {dimension_semantics = [#tpu.dimension_semantics<parallel>, #tpu.dimension_semantics<parallel>, #tpu.dimension_semantics<arbitrary>], iteration_bounds = array<i64: 2, 1, 3>, scalar_prefetch = 0 : i64, scratch_operands = 1 : i64, tpu.core_type = #tpu.core_type<tc>, window_params = [{transform_indices = @transform_0, window_bounds = array<i64: 1, 1, 4, 144>}, {transform_indices = @transform_1, window_bounds = array<i64: 1, 144, 16>}, {pipeline_mode = #tpu.pipeline_mode<synchronous>, transform_indices = @transform_2, window_bounds = array<i64: 1, 16>}, {transform_indices = @transform_3, window_bounds = array<i64: 1, 1, 4, 16>}]} {
    %c0_i32 = arith.constant 0 : i32
    %0 = arith.cmpi eq, %arg2, %c0_i32 : i32
    %1 = arith.extui %0 : i1 to i32
    %c0_i32_0 = arith.constant 0 : i32
    %2 = arith.cmpi ne, %1, %c0_i32_0 : i32
    scf.if %2 {
      %cst_12 = arith.constant 0.000000e+00 : f32
      %14 = vector.broadcast %cst_12 : f32 to vector<4x16xf32>
      %c0_13 = arith.constant 0 : index
      %c0_14 = arith.constant 0 : index
      %15 = vector.load %arg7[%c0_13, %c0_14] : memref<4x16xf32, #tpu.memory_space<vmem>>, vector<4x16xf32>
      tpu.vector_store %arg7[%c0_13, %c0_14], %14 {strides = array<i32>} : memref<4x16xf32, #tpu.memory_space<vmem>>, vector<4x16xf32>,
    } else {
    }
    %c0 = arith.constant 0 : index
    %c0_1 = arith.constant 0 : index
    %3 = vector.load %arg7[%c0, %c0_1] : memref<4x16xf32, #tpu.memory_space<vmem>>, vector<4x16xf32>
    %c0_2 = arith.constant 0 : index
    %c0_3 = arith.constant 0 : index
    %c0_4 = arith.constant 0 : index
    %c0_5 = arith.constant 0 : index
    %4 = vector.load %arg3[%c0_2, %c0_3, %c0_4, %c0_5] : memref<1x1x4x144xbf16, #tpu.memory_space<vmem>>, vector<1x1x4x144xbf16>
    %5 = vector.shape_cast %4 : vector<1x1x4x144xbf16> to vector<4x144xbf16>
    %c0_6 = arith.constant 0 : index
    %c0_7 = arith.constant 0 : index
    %c0_8 = arith.constant 0 : index
    %6 = vector.load %arg4[%c0_6, %c0_7, %c0_8] : memref<1x144x16xbf16, #tpu.memory_space<vmem>>, vector<1x144x16xbf16>
    %7 = vector.shape_cast %6 : vector<1x144x16xbf16> to vector<144x16xbf16>
    %cst = arith.constant dense<0.000000e+00> : vector<4x16xf32>
    %8 = tpu.matmul %5, %7, %cst {dimension_numbers = #tpu.dot_dimension_numbers<[1], [0], [0], [1], [0, 0, 1, 1], [], []>} : vector<4x144xbf16>, vector<144x16xbf16>, vector<4x16xf32> -> vector<4x16xf32>
    %9 = arith.addf %3, %8 : vector<4x16xf32>
    %c0_9 = arith.constant 0 : index
    %c0_10 = arith.constant 0 : index
    %10 = vector.load %arg7[%c0_9, %c0_10] : memref<4x16xf32, #tpu.memory_space<vmem>>, vector<4x16xf32>
    tpu.vector_store %arg7[%c0_9, %c0_10], %9 {strides = array<i32>} : memref<4x16xf32, #tpu.memory_space<vmem>>, vector<4x16xf32>,
    %c2_i32 = arith.constant 2 : i32
    %11 = arith.cmpi eq, %arg2, %c2_i32 : i32
    %12 = arith.extui %11 : i1 to i32
    %c0_i32_11 = arith.constant 0 : i32
    %13 = arith.cmpi ne, %12, %c0_i32_11 : i32
    scf.if %13 {
      %c0_12 = arith.constant 0 : index
      %c0_13 = arith.constant 0 : index
      %14 = vector.load %arg7[%c0_12, %c0_13] : memref<4x16xf32, #tpu.memory_space<vmem>>, vector<4x16xf32>
      %c0_14 = arith.constant 0 : index
      %c0_15 = arith.constant 0 : index
      %15 = vector.load %arg5[%c0_14, %c0_15] : memref<1x16xf32, #tpu.memory_space<vmem>>, vector<1x16xf32>
      %16 = vector.broadcast %15 : vector<1x16xf32> to vector<4x16xf32>
      %17 = arith.addf %14, %16 : vector<4x16xf32>
      %cst_16 = arith.constant 0.000000e+00 : f32
      %18 = vector.broadcast %cst_16 : f32 to vector<4x16xf32>
      %19 = arith.maximumf %17, %18 : vector<4x16xf32>
      %20 = arith.truncf %19 : vector<4x16xf32> to vector<4x16xbf16>
      %c0_17 = arith.constant 0 : index
      %c0_18 = arith.constant 0 : index
      %c0_19 = arith.constant 0 : index
      %c0_20 = arith.constant 0 : index
      %21 = vector.load %arg6[%c0_17, %c0_18, %c0_19, %c0_20] : memref<1x1x4x16xbf16, #tpu.memory_space<vmem>>, vector<1x1x4x16xbf16>
      %22 = vector.shape_cast %21 : vector<1x1x4x16xbf16> to vector<4x16xbf16>
      %23 = vector.shape_cast %20 : vector<4x16xbf16> to vector<1x1x4x16xbf16>
      tpu.vector_store %arg6[%c0_17, %c0_18, %c0_19, %c0_20], %23 {strides = array<i32>} : memref<1x1x4x16xbf16, #tpu.memory_space<vmem>>, vector<1x1x4x16xbf16>,
    } else {
    }
    return
  }
  func.func @transform_0(%arg0: i32, %arg1: i32, %arg2: i32) -> (i32, i32, i32, i32) {
    %c2_i32 = arith.constant 2 : i32
    %0 = arith.muli %arg1, %c2_i32 : i32
    %1 = arith.addi %0, %arg2 : i32
    %c0_i32 = arith.constant 0 : i32
    %c0_i32_0 = arith.constant 0 : i32
    %c0_i32_1 = arith.constant 0 : i32
    return %arg0, %1, %c0_i32, %c0_i32_0 : i32, i32, i32, i32
  }
  func.func @transform_1(%arg0: i32, %arg1: i32, %arg2: i32) -> (i32, i32, i32) {
    %c0_i32 = arith.constant 0 : i32
    %c0_i32_0 = arith.constant 0 : i32
    %c0_i32_1 = arith.constant 0 : i32
    return %arg2, %c0_i32, %c0_i32_0 : i32, i32, i32
  }
  func.func @transform_2(%arg0: i32, %arg1: i32, %arg2: i32) -> (i32, i32) {
    %c0_i32 = arith.constant 0 : i32
    %c0_i32_0 = arith.constant 0 : i32
    %c0_i32_1 = arith.constant 0 : i32
    return %c0_i32, %c0_i32_0 : i32, i32
  }
  func.func @transform_3(%arg0: i32, %arg1: i32, %arg2: i32) -> (i32, i32, i32, i32) {
    %c0_i32 = arith.constant 0 : i32
    %c0_i32_0 = arith.constant 0 : i32
    %c0_i32_1 = arith.constant 0 : i32
    return %arg0, %arg1, %c0_i32, %c0_i32_0 : i32, i32, i32, i32
  }
}

module attributes {stable_mosaic.version = 11 : i64} {
  func.func @_mm_shift_act_kernel(%arg0: i32, %arg1: memref<8x16xbf16, #tpu.memory_space<vmem>>, %arg2: memref<16x64xbf16, #tpu.memory_space<vmem>>, %arg3: memref<1x64xf32, #tpu.memory_space<vmem>>, %arg4: memref<8x64xbf16, #tpu.memory_space<vmem>>, %arg5: memref<8x64xbf16, #tpu.memory_space<vmem>>) attributes {dimension_semantics = [#tpu.dimension_semantics<parallel>], iteration_bounds = array<i64: 1>, scalar_prefetch = 0 : i64, scratch_operands = 0 : i64, tpu.core_type = #tpu.core_type<tc>, window_params = [{transform_indices = @transform_0, window_bounds = array<i64: 8, 16>}, {pipeline_mode = #tpu.pipeline_mode<synchronous>, transform_indices = @transform_1, window_bounds = array<i64: 16, 64>}, {pipeline_mode = #tpu.pipeline_mode<synchronous>, transform_indices = @transform_2, window_bounds = array<i64: 1, 64>}, {transform_indices = @transform_3, window_bounds = array<i64: 8, 64>}, {transform_indices = @transform_4, window_bounds = array<i64: 8, 64>}]} {
    %c0 = arith.constant 0 : index
    %c0_0 = arith.constant 0 : index
    %0 = vector.load %arg1[%c0, %c0_0] : memref<8x16xbf16, #tpu.memory_space<vmem>>, vector<8x16xbf16>
    %c0_1 = arith.constant 0 : index
    %c0_2 = arith.constant 0 : index
    %1 = vector.load %arg2[%c0_1, %c0_2] : memref<16x64xbf16, #tpu.memory_space<vmem>>, vector<16x64xbf16>
    %cst = arith.constant dense<0.000000e+00> : vector<8x64xf32>
    %2 = tpu.matmul %0, %1, %cst {dimension_numbers = #tpu.dot_dimension_numbers<[1], [0], [0], [1], [0, 0, 1, 1], [], []>} : vector<8x16xbf16>, vector<16x64xbf16>, vector<8x64xf32> -> vector<8x64xf32>
    %c0_3 = arith.constant 0 : index
    %c0_4 = arith.constant 0 : index
    %3 = vector.load %arg3[%c0_3, %c0_4] : memref<1x64xf32, #tpu.memory_space<vmem>>, vector<1x64xf32>
    %4 = vector.broadcast %3 : vector<1x64xf32> to vector<8x64xf32>
    %5 = arith.addf %2, %4 : vector<8x64xf32>
    %c0_5 = arith.constant 0 : index
    %c0_6 = arith.constant 0 : index
    %6 = vector.load %arg4[%c0_5, %c0_6] : memref<8x64xbf16, #tpu.memory_space<vmem>>, vector<8x64xbf16>
    %7 = arith.extf %6 : vector<8x64xbf16> to vector<8x64xf32>
    %8 = arith.addf %5, %7 : vector<8x64xf32>
    %cst_7 = arith.constant 0.000000e+00 : f32
    %9 = vector.broadcast %cst_7 : f32 to vector<8x64xf32>
    %10 = arith.maximumf %8, %9 : vector<8x64xf32>
    %11 = arith.truncf %10 : vector<8x64xf32> to vector<8x64xbf16>
    %c0_8 = arith.constant 0 : index
    %c0_9 = arith.constant 0 : index
    %12 = vector.load %arg5[%c0_8, %c0_9] : memref<8x64xbf16, #tpu.memory_space<vmem>>, vector<8x64xbf16>
    tpu.vector_store %arg5[%c0_8, %c0_9], %11 {strides = array<i32>} : memref<8x64xbf16, #tpu.memory_space<vmem>>, vector<8x64xbf16>,
    return
  }
  func.func @transform_0(%arg0: i32) -> (i32, i32) {
    %c0_i32 = arith.constant 0 : i32
    %c0_i32_0 = arith.constant 0 : i32
    return %arg0, %c0_i32 : i32, i32
  }
  func.func @transform_1(%arg0: i32) -> (i32, i32) {
    %c0_i32 = arith.constant 0 : i32
    %c0_i32_0 = arith.constant 0 : i32
    %c0_i32_1 = arith.constant 0 : i32
    return %c0_i32, %c0_i32_0 : i32, i32
  }
  func.func @transform_2(%arg0: i32) -> (i32, i32) {
    %c0_i32 = arith.constant 0 : i32
    %c0_i32_0 = arith.constant 0 : i32
    %c0_i32_1 = arith.constant 0 : i32
    return %c0_i32, %c0_i32_0 : i32, i32
  }
  func.func @transform_3(%arg0: i32) -> (i32, i32) {
    %c0_i32 = arith.constant 0 : i32
    %c0_i32_0 = arith.constant 0 : i32
    return %arg0, %c0_i32 : i32, i32
  }
  func.func @transform_4(%arg0: i32) -> (i32, i32) {
    %c0_i32 = arith.constant 0 : i32
    %c0_i32_0 = arith.constant 0 : i32
    return %arg0, %c0_i32 : i32, i32
  }
}

module attributes {stable_mosaic.version = 11 : i64} {
  func.func @_mm_shift_act_kernel(%arg0: i32, %arg1: memref<8x64xbf16, #tpu.memory_space<vmem>>, %arg2: memref<64x32xbf16, #tpu.memory_space<vmem>>, %arg3: memref<1x32xf32, #tpu.memory_space<vmem>>, %arg4: memref<8x32xbf16, #tpu.memory_space<vmem>>) attributes {dimension_semantics = [#tpu.dimension_semantics<parallel>], iteration_bounds = array<i64: 1>, scalar_prefetch = 0 : i64, scratch_operands = 0 : i64, tpu.core_type = #tpu.core_type<tc>, window_params = [{transform_indices = @transform_0, window_bounds = array<i64: 8, 64>}, {pipeline_mode = #tpu.pipeline_mode<synchronous>, transform_indices = @transform_1, window_bounds = array<i64: 64, 32>}, {pipeline_mode = #tpu.pipeline_mode<synchronous>, transform_indices = @transform_2, window_bounds = array<i64: 1, 32>}, {transform_indices = @transform_3, window_bounds = array<i64: 8, 32>}]} {
    %c0 = arith.constant 0 : index
    %c0_0 = arith.constant 0 : index
    %0 = vector.load %arg1[%c0, %c0_0] : memref<8x64xbf16, #tpu.memory_space<vmem>>, vector<8x64xbf16>
    %c0_1 = arith.constant 0 : index
    %c0_2 = arith.constant 0 : index
    %1 = vector.load %arg2[%c0_1, %c0_2] : memref<64x32xbf16, #tpu.memory_space<vmem>>, vector<64x32xbf16>
    %cst = arith.constant dense<0.000000e+00> : vector<8x32xf32>
    %2 = tpu.matmul %0, %1, %cst {dimension_numbers = #tpu.dot_dimension_numbers<[1], [0], [0], [1], [0, 0, 1, 1], [], []>} : vector<8x64xbf16>, vector<64x32xbf16>, vector<8x32xf32> -> vector<8x32xf32>
    %c0_3 = arith.constant 0 : index
    %c0_4 = arith.constant 0 : index
    %3 = vector.load %arg3[%c0_3, %c0_4] : memref<1x32xf32, #tpu.memory_space<vmem>>, vector<1x32xf32>
    %4 = vector.broadcast %3 : vector<1x32xf32> to vector<8x32xf32>
    %5 = arith.addf %2, %4 : vector<8x32xf32>
    %cst_5 = arith.constant 0.000000e+00 : f32
    %6 = vector.broadcast %cst_5 : f32 to vector<8x32xf32>
    %7 = arith.maximumf %5, %6 : vector<8x32xf32>
    %8 = arith.truncf %7 : vector<8x32xf32> to vector<8x32xbf16>
    %c0_6 = arith.constant 0 : index
    %c0_7 = arith.constant 0 : index
    %9 = vector.load %arg4[%c0_6, %c0_7] : memref<8x32xbf16, #tpu.memory_space<vmem>>, vector<8x32xbf16>
    tpu.vector_store %arg4[%c0_6, %c0_7], %8 {strides = array<i32>} : memref<8x32xbf16, #tpu.memory_space<vmem>>, vector<8x32xbf16>,
    return
  }
  func.func @transform_0(%arg0: i32) -> (i32, i32) {
    %c0_i32 = arith.constant 0 : i32
    %c0_i32_0 = arith.constant 0 : i32
    return %arg0, %c0_i32 : i32, i32
  }
  func.func @transform_1(%arg0: i32) -> (i32, i32) {
    %c0_i32 = arith.constant 0 : i32
    %c0_i32_0 = arith.constant 0 : i32
    %c0_i32_1 = arith.constant 0 : i32
    return %c0_i32, %c0_i32_0 : i32, i32
  }
  func.func @transform_2(%arg0: i32) -> (i32, i32) {
    %c0_i32 = arith.constant 0 : i32
    %c0_i32_0 = arith.constant 0 : i32
    %c0_i32_1 = arith.constant 0 : i32
    return %c0_i32, %c0_i32_0 : i32, i32
  }
  func.func @transform_3(%arg0: i32) -> (i32, i32) {
    %c0_i32 = arith.constant 0 : i32
    %c0_i32_0 = arith.constant 0 : i32
    return %arg0, %c0_i32 : i32, i32
  }
}

module attributes {stable_mosaic.version = 11 : i64} {
  func.func @_conv_dtap_kernel(%arg0: i32, %arg1: i32, %arg2: i32, %arg3: memref<1x1x1x288xbf16, #tpu.memory_space<vmem>>, %arg4: memref<1x288x32xbf16, #tpu.memory_space<vmem>>, %arg5: memref<1x32xf32, #tpu.memory_space<vmem>>, %arg6: memref<1x1x1x32xbf16, #tpu.memory_space<vmem>>, %arg7: memref<1x32xf32, #tpu.memory_space<vmem>>) attributes {dimension_semantics = [#tpu.dimension_semantics<parallel>, #tpu.dimension_semantics<parallel>, #tpu.dimension_semantics<arbitrary>], iteration_bounds = array<i64: 2, 1, 3>, scalar_prefetch = 0 : i64, scratch_operands = 1 : i64, tpu.core_type = #tpu.core_type<tc>, window_params = [{transform_indices = @transform_0, window_bounds = array<i64: 1, 1, 1, 288>}, {transform_indices = @transform_1, window_bounds = array<i64: 1, 288, 32>}, {pipeline_mode = #tpu.pipeline_mode<synchronous>, transform_indices = @transform_2, window_bounds = array<i64: 1, 32>}, {transform_indices = @transform_3, window_bounds = array<i64: 1, 1, 1, 32>}]} {
    %c0_i32 = arith.constant 0 : i32
    %0 = arith.cmpi eq, %arg2, %c0_i32 : i32
    %1 = arith.extui %0 : i1 to i32
    %c0_i32_0 = arith.constant 0 : i32
    %2 = arith.cmpi ne, %1, %c0_i32_0 : i32
    scf.if %2 {
      %cst_12 = arith.constant 0.000000e+00 : f32
      %14 = vector.broadcast %cst_12 : f32 to vector<1x32xf32>
      %c0_13 = arith.constant 0 : index
      %c0_14 = arith.constant 0 : index
      %15 = vector.load %arg7[%c0_13, %c0_14] : memref<1x32xf32, #tpu.memory_space<vmem>>, vector<1x32xf32>
      tpu.vector_store %arg7[%c0_13, %c0_14], %14 {strides = array<i32>} : memref<1x32xf32, #tpu.memory_space<vmem>>, vector<1x32xf32>,
    } else {
    }
    %c0 = arith.constant 0 : index
    %c0_1 = arith.constant 0 : index
    %3 = vector.load %arg7[%c0, %c0_1] : memref<1x32xf32, #tpu.memory_space<vmem>>, vector<1x32xf32>
    %c0_2 = arith.constant 0 : index
    %c0_3 = arith.constant 0 : index
    %c0_4 = arith.constant 0 : index
    %c0_5 = arith.constant 0 : index
    %4 = vector.load %arg3[%c0_2, %c0_3, %c0_4, %c0_5] : memref<1x1x1x288xbf16, #tpu.memory_space<vmem>>, vector<1x1x1x288xbf16>
    %5 = vector.shape_cast %4 : vector<1x1x1x288xbf16> to vector<1x288xbf16>
    %c0_6 = arith.constant 0 : index
    %c0_7 = arith.constant 0 : index
    %c0_8 = arith.constant 0 : index
    %6 = vector.load %arg4[%c0_6, %c0_7, %c0_8] : memref<1x288x32xbf16, #tpu.memory_space<vmem>>, vector<1x288x32xbf16>
    %7 = vector.shape_cast %6 : vector<1x288x32xbf16> to vector<288x32xbf16>
    %cst = arith.constant dense<0.000000e+00> : vector<1x32xf32>
    %8 = tpu.matmul %5, %7, %cst {dimension_numbers = #tpu.dot_dimension_numbers<[1], [0], [0], [1], [0, 0, 1, 1], [], []>} : vector<1x288xbf16>, vector<288x32xbf16>, vector<1x32xf32> -> vector<1x32xf32>
    %9 = arith.addf %3, %8 : vector<1x32xf32>
    %c0_9 = arith.constant 0 : index
    %c0_10 = arith.constant 0 : index
    %10 = vector.load %arg7[%c0_9, %c0_10] : memref<1x32xf32, #tpu.memory_space<vmem>>, vector<1x32xf32>
    tpu.vector_store %arg7[%c0_9, %c0_10], %9 {strides = array<i32>} : memref<1x32xf32, #tpu.memory_space<vmem>>, vector<1x32xf32>,
    %c2_i32 = arith.constant 2 : i32
    %11 = arith.cmpi eq, %arg2, %c2_i32 : i32
    %12 = arith.extui %11 : i1 to i32
    %c0_i32_11 = arith.constant 0 : i32
    %13 = arith.cmpi ne, %12, %c0_i32_11 : i32
    scf.if %13 {
      %c0_12 = arith.constant 0 : index
      %c0_13 = arith.constant 0 : index
      %14 = vector.load %arg7[%c0_12, %c0_13] : memref<1x32xf32, #tpu.memory_space<vmem>>, vector<1x32xf32>
      %c0_14 = arith.constant 0 : index
      %c0_15 = arith.constant 0 : index
      %15 = vector.load %arg5[%c0_14, %c0_15] : memref<1x32xf32, #tpu.memory_space<vmem>>, vector<1x32xf32>
      %16 = arith.addf %14, %15 : vector<1x32xf32>
      %cst_16 = arith.constant 0.000000e+00 : f32
      %17 = vector.broadcast %cst_16 : f32 to vector<1x32xf32>
      %18 = arith.maximumf %16, %17 : vector<1x32xf32>
      %19 = arith.truncf %18 : vector<1x32xf32> to vector<1x32xbf16>
      %c0_17 = arith.constant 0 : index
      %c0_18 = arith.constant 0 : index
      %c0_19 = arith.constant 0 : index
      %c0_20 = arith.constant 0 : index
      %20 = vector.load %arg6[%c0_17, %c0_18, %c0_19, %c0_20] : memref<1x1x1x32xbf16, #tpu.memory_space<vmem>>, vector<1x1x1x32xbf16>
      %21 = vector.shape_cast %20 : vector<1x1x1x32xbf16> to vector<1x32xbf16>
      %22 = vector.shape_cast %19 : vector<1x32xbf16> to vector<1x1x1x32xbf16>
      tpu.vector_store %arg6[%c0_17, %c0_18, %c0_19, %c0_20], %22 {strides = array<i32>} : memref<1x1x1x32xbf16, #tpu.memory_space<vmem>>, vector<1x1x1x32xbf16>,
    } else {
    }
    return
  }
  func.func @transform_0(%arg0: i32, %arg1: i32, %arg2: i32) -> (i32, i32, i32, i32) {
    %c2_i32 = arith.constant 2 : i32
    %0 = arith.muli %arg1, %c2_i32 : i32
    %1 = arith.addi %0, %arg2 : i32
    %c0_i32 = arith.constant 0 : i32
    %c0_i32_0 = arith.constant 0 : i32
    %c0_i32_1 = arith.constant 0 : i32
    return %arg0, %1, %c0_i32, %c0_i32_0 : i32, i32, i32, i32
  }
  func.func @transform_1(%arg0: i32, %arg1: i32, %arg2: i32) -> (i32, i32, i32) {
    %c0_i32 = arith.constant 0 : i32
    %c0_i32_0 = arith.constant 0 : i32
    %c0_i32_1 = arith.constant 0 : i32
    return %arg2, %c0_i32, %c0_i32_0 : i32, i32, i32
  }
  func.func @transform_2(%arg0: i32, %arg1: i32, %arg2: i32) -> (i32, i32) {
    %c0_i32 = arith.constant 0 : i32
    %c0_i32_0 = arith.constant 0 : i32
    %c0_i32_1 = arith.constant 0 : i32
    return %c0_i32, %c0_i32_0 : i32, i32
  }
  func.func @transform_3(%arg0: i32, %arg1: i32, %arg2: i32) -> (i32, i32, i32, i32) {
    %c0_i32 = arith.constant 0 : i32
    %c0_i32_0 = arith.constant 0 : i32
    %c0_i32_1 = arith.constant 0 : i32
    return %arg0, %arg1, %c0_i32, %c0_i32_0 : i32, i32, i32, i32
  }
}

module attributes {stable_mosaic.version = 11 : i64} {
  func.func @_mm_shift_act_kernel(%arg0: i32, %arg1: memref<2x32xbf16, #tpu.memory_space<vmem>>, %arg2: memref<32x128xbf16, #tpu.memory_space<vmem>>, %arg3: memref<1x128xf32, #tpu.memory_space<vmem>>, %arg4: memref<2x128xbf16, #tpu.memory_space<vmem>>, %arg5: memref<2x128xbf16, #tpu.memory_space<vmem>>) attributes {dimension_semantics = [#tpu.dimension_semantics<parallel>], iteration_bounds = array<i64: 1>, scalar_prefetch = 0 : i64, scratch_operands = 0 : i64, tpu.core_type = #tpu.core_type<tc>, window_params = [{transform_indices = @transform_0, window_bounds = array<i64: 2, 32>}, {pipeline_mode = #tpu.pipeline_mode<synchronous>, transform_indices = @transform_1, window_bounds = array<i64: 32, 128>}, {pipeline_mode = #tpu.pipeline_mode<synchronous>, transform_indices = @transform_2, window_bounds = array<i64: 1, 128>}, {transform_indices = @transform_3, window_bounds = array<i64: 2, 128>}, {transform_indices = @transform_4, window_bounds = array<i64: 2, 128>}]} {
    %c0 = arith.constant 0 : index
    %c0_0 = arith.constant 0 : index
    %0 = vector.load %arg1[%c0, %c0_0] : memref<2x32xbf16, #tpu.memory_space<vmem>>, vector<2x32xbf16>
    %c0_1 = arith.constant 0 : index
    %c0_2 = arith.constant 0 : index
    %1 = vector.load %arg2[%c0_1, %c0_2] : memref<32x128xbf16, #tpu.memory_space<vmem>>, vector<32x128xbf16>
    %cst = arith.constant dense<0.000000e+00> : vector<2x128xf32>
    %2 = tpu.matmul %0, %1, %cst {dimension_numbers = #tpu.dot_dimension_numbers<[1], [0], [0], [1], [0, 0, 1, 1], [], []>} : vector<2x32xbf16>, vector<32x128xbf16>, vector<2x128xf32> -> vector<2x128xf32>
    %c0_3 = arith.constant 0 : index
    %c0_4 = arith.constant 0 : index
    %3 = vector.load %arg3[%c0_3, %c0_4] : memref<1x128xf32, #tpu.memory_space<vmem>>, vector<1x128xf32>
    %4 = vector.broadcast %3 : vector<1x128xf32> to vector<2x128xf32>
    %5 = arith.addf %2, %4 : vector<2x128xf32>
    %c0_5 = arith.constant 0 : index
    %c0_6 = arith.constant 0 : index
    %6 = vector.load %arg4[%c0_5, %c0_6] : memref<2x128xbf16, #tpu.memory_space<vmem>>, vector<2x128xbf16>
    %7 = arith.extf %6 : vector<2x128xbf16> to vector<2x128xf32>
    %8 = arith.addf %5, %7 : vector<2x128xf32>
    %cst_7 = arith.constant 0.000000e+00 : f32
    %9 = vector.broadcast %cst_7 : f32 to vector<2x128xf32>
    %10 = arith.maximumf %8, %9 : vector<2x128xf32>
    %11 = arith.truncf %10 : vector<2x128xf32> to vector<2x128xbf16>
    %c0_8 = arith.constant 0 : index
    %c0_9 = arith.constant 0 : index
    %12 = vector.load %arg5[%c0_8, %c0_9] : memref<2x128xbf16, #tpu.memory_space<vmem>>, vector<2x128xbf16>
    tpu.vector_store %arg5[%c0_8, %c0_9], %11 {strides = array<i32>} : memref<2x128xbf16, #tpu.memory_space<vmem>>, vector<2x128xbf16>,
    return
  }
  func.func @transform_0(%arg0: i32) -> (i32, i32) {
    %c0_i32 = arith.constant 0 : i32
    %c0_i32_0 = arith.constant 0 : i32
    return %arg0, %c0_i32 : i32, i32
  }
  func.func @transform_1(%arg0: i32) -> (i32, i32) {
    %c0_i32 = arith.constant 0 : i32
    %c0_i32_0 = arith.constant 0 : i32
    %c0_i32_1 = arith.constant 0 : i32
    return %c0_i32, %c0_i32_0 : i32, i32
  }
  func.func @transform_2(%arg0: i32) -> (i32, i32) {
    %c0_i32 = arith.constant 0 : i32
    %c0_i32_0 = arith.constant 0 : i32
    %c0_i32_1 = arith.constant 0 : i32
    return %c0_i32, %c0_i32_0 : i32, i32
  }
  func.func @transform_3(%arg0: i32) -> (i32, i32) {
    %c0_i32 = arith.constant 0 : i32
    %c0_i32_0 = arith.constant 0 : i32
    return %arg0, %c0_i32 : i32, i32
  }
  func.func @transform_4(%arg0: i32) -> (i32, i32) {
    %c0_i32 = arith.constant 0 : i32
    %c0_i32_0 = arith.constant 0 : i32
    return %arg0, %c0_i32 : i32, i32
  }
}

module attributes {stable_mosaic.version = 11 : i64} {
  func.func @_mm_shift_act_kernel(%arg0: i32, %arg1: memref<2x64xbf16, #tpu.memory_space<vmem>>, %arg2: memref<64x128xbf16, #tpu.memory_space<vmem>>, %arg3: memref<1x128xf32, #tpu.memory_space<vmem>>, %arg4: memref<2x128xbf16, #tpu.memory_space<vmem>>) attributes {dimension_semantics = [#tpu.dimension_semantics<parallel>], iteration_bounds = array<i64: 1>, scalar_prefetch = 0 : i64, scratch_operands = 0 : i64, tpu.core_type = #tpu.core_type<tc>, window_params = [{transform_indices = @transform_0, window_bounds = array<i64: 2, 64>}, {pipeline_mode = #tpu.pipeline_mode<synchronous>, transform_indices = @transform_1, window_bounds = array<i64: 64, 128>}, {pipeline_mode = #tpu.pipeline_mode<synchronous>, transform_indices = @transform_2, window_bounds = array<i64: 1, 128>}, {transform_indices = @transform_3, window_bounds = array<i64: 2, 128>}]} {
    %c0 = arith.constant 0 : index
    %c0_0 = arith.constant 0 : index
    %0 = vector.load %arg1[%c0, %c0_0] : memref<2x64xbf16, #tpu.memory_space<vmem>>, vector<2x64xbf16>
    %c0_1 = arith.constant 0 : index
    %c0_2 = arith.constant 0 : index
    %1 = vector.load %arg2[%c0_1, %c0_2] : memref<64x128xbf16, #tpu.memory_space<vmem>>, vector<64x128xbf16>
    %cst = arith.constant dense<0.000000e+00> : vector<2x128xf32>
    %2 = tpu.matmul %0, %1, %cst {dimension_numbers = #tpu.dot_dimension_numbers<[1], [0], [0], [1], [0, 0, 1, 1], [], []>} : vector<2x64xbf16>, vector<64x128xbf16>, vector<2x128xf32> -> vector<2x128xf32>
    %c0_3 = arith.constant 0 : index
    %c0_4 = arith.constant 0 : index
    %3 = vector.load %arg3[%c0_3, %c0_4] : memref<1x128xf32, #tpu.memory_space<vmem>>, vector<1x128xf32>
    %4 = vector.broadcast %3 : vector<1x128xf32> to vector<2x128xf32>
    %5 = arith.addf %2, %4 : vector<2x128xf32>
    %6 = arith.truncf %5 : vector<2x128xf32> to vector<2x128xbf16>
    %c0_5 = arith.constant 0 : index
    %c0_6 = arith.constant 0 : index
    %7 = vector.load %arg4[%c0_5, %c0_6] : memref<2x128xbf16, #tpu.memory_space<vmem>>, vector<2x128xbf16>
    tpu.vector_store %arg4[%c0_5, %c0_6], %6 {strides = array<i32>} : memref<2x128xbf16, #tpu.memory_space<vmem>>, vector<2x128xbf16>,
    return
  }
  func.func @transform_0(%arg0: i32) -> (i32, i32) {
    %c0_i32 = arith.constant 0 : i32
    %c0_i32_0 = arith.constant 0 : i32
    return %arg0, %c0_i32 : i32, i32
  }
  func.func @transform_1(%arg0: i32) -> (i32, i32) {
    %c0_i32 = arith.constant 0 : i32
    %c0_i32_0 = arith.constant 0 : i32
    %c0_i32_1 = arith.constant 0 : i32
    return %c0_i32, %c0_i32_0 : i32, i32
  }
  func.func @transform_2(%arg0: i32) -> (i32, i32) {
    %c0_i32 = arith.constant 0 : i32
    %c0_i32_0 = arith.constant 0 : i32
    %c0_i32_1 = arith.constant 0 : i32
    return %c0_i32, %c0_i32_0 : i32, i32
  }
  func.func @transform_3(%arg0: i32) -> (i32, i32) {
    %c0_i32 = arith.constant 0 : i32
    %c0_i32_0 = arith.constant 0 : i32
    return %arg0, %c0_i32 : i32, i32
  }
}

module attributes {stable_mosaic.version = 11 : i64} {
  func.func @_mm_shift_act_kernel(%arg0: i32, %arg1: memref<2x128xbf16, #tpu.memory_space<vmem>>, %arg2: memref<128x32xbf16, #tpu.memory_space<vmem>>, %arg3: memref<1x32xf32, #tpu.memory_space<vmem>>, %arg4: memref<2x32xbf16, #tpu.memory_space<vmem>>) attributes {dimension_semantics = [#tpu.dimension_semantics<parallel>], iteration_bounds = array<i64: 1>, scalar_prefetch = 0 : i64, scratch_operands = 0 : i64, tpu.core_type = #tpu.core_type<tc>, window_params = [{transform_indices = @transform_0, window_bounds = array<i64: 2, 128>}, {pipeline_mode = #tpu.pipeline_mode<synchronous>, transform_indices = @transform_1, window_bounds = array<i64: 128, 32>}, {pipeline_mode = #tpu.pipeline_mode<synchronous>, transform_indices = @transform_2, window_bounds = array<i64: 1, 32>}, {transform_indices = @transform_3, window_bounds = array<i64: 2, 32>}]} {
    %c0 = arith.constant 0 : index
    %c0_0 = arith.constant 0 : index
    %0 = vector.load %arg1[%c0, %c0_0] : memref<2x128xbf16, #tpu.memory_space<vmem>>, vector<2x128xbf16>
    %c0_1 = arith.constant 0 : index
    %c0_2 = arith.constant 0 : index
    %1 = vector.load %arg2[%c0_1, %c0_2] : memref<128x32xbf16, #tpu.memory_space<vmem>>, vector<128x32xbf16>
    %cst = arith.constant dense<0.000000e+00> : vector<2x32xf32>
    %2 = tpu.matmul %0, %1, %cst {dimension_numbers = #tpu.dot_dimension_numbers<[1], [0], [0], [1], [0, 0, 1, 1], [], []>} : vector<2x128xbf16>, vector<128x32xbf16>, vector<2x32xf32> -> vector<2x32xf32>
    %c0_3 = arith.constant 0 : index
    %c0_4 = arith.constant 0 : index
    %3 = vector.load %arg3[%c0_3, %c0_4] : memref<1x32xf32, #tpu.memory_space<vmem>>, vector<1x32xf32>
    %4 = vector.broadcast %3 : vector<1x32xf32> to vector<2x32xf32>
    %5 = arith.addf %2, %4 : vector<2x32xf32>
    %cst_5 = arith.constant 0.000000e+00 : f32
    %6 = vector.broadcast %cst_5 : f32 to vector<2x32xf32>
    %7 = arith.maximumf %5, %6 : vector<2x32xf32>
    %8 = arith.truncf %7 : vector<2x32xf32> to vector<2x32xbf16>
    %c0_6 = arith.constant 0 : index
    %c0_7 = arith.constant 0 : index
    %9 = vector.load %arg4[%c0_6, %c0_7] : memref<2x32xbf16, #tpu.memory_space<vmem>>, vector<2x32xbf16>
    tpu.vector_store %arg4[%c0_6, %c0_7], %8 {strides = array<i32>} : memref<2x32xbf16, #tpu.memory_space<vmem>>, vector<2x32xbf16>,
    return
  }
  func.func @transform_0(%arg0: i32) -> (i32, i32) {
    %c0_i32 = arith.constant 0 : i32
    %c0_i32_0 = arith.constant 0 : i32
    return %arg0, %c0_i32 : i32, i32
  }
  func.func @transform_1(%arg0: i32) -> (i32, i32) {
    %c0_i32 = arith.constant 0 : i32
    %c0_i32_0 = arith.constant 0 : i32
    %c0_i32_1 = arith.constant 0 : i32
    return %c0_i32, %c0_i32_0 : i32, i32
  }
  func.func @transform_2(%arg0: i32) -> (i32, i32) {
    %c0_i32 = arith.constant 0 : i32
    %c0_i32_0 = arith.constant 0 : i32
    %c0_i32_1 = arith.constant 0 : i32
    return %c0_i32, %c0_i32_0 : i32, i32
  }
  func.func @transform_3(%arg0: i32) -> (i32, i32) {
    %c0_i32 = arith.constant 0 : i32
    %c0_i32_0 = arith.constant 0 : i32
    return %arg0, %c0_i32 : i32, i32
  }
}

module attributes {stable_mosaic.version = 11 : i64} {
  func.func @_conv_dtap_kernel(%arg0: i32, %arg1: i32, %arg2: i32, %arg3: memref<1x1x1x288xbf16, #tpu.memory_space<vmem>>, %arg4: memref<1x288x32xbf16, #tpu.memory_space<vmem>>, %arg5: memref<1x32xf32, #tpu.memory_space<vmem>>, %arg6: memref<1x1x1x32xbf16, #tpu.memory_space<vmem>>, %arg7: memref<1x32xf32, #tpu.memory_space<vmem>>) attributes {dimension_semantics = [#tpu.dimension_semantics<parallel>, #tpu.dimension_semantics<parallel>, #tpu.dimension_semantics<arbitrary>], iteration_bounds = array<i64: 2, 1, 3>, scalar_prefetch = 0 : i64, scratch_operands = 1 : i64, tpu.core_type = #tpu.core_type<tc>, window_params = [{transform_indices = @transform_0, window_bounds = array<i64: 1, 1, 1, 288>}, {transform_indices = @transform_1, window_bounds = array<i64: 1, 288, 32>}, {pipeline_mode = #tpu.pipeline_mode<synchronous>, transform_indices = @transform_2, window_bounds = array<i64: 1, 32>}, {transform_indices = @transform_3, window_bounds = array<i64: 1, 1, 1, 32>}]} {
    %c0_i32 = arith.constant 0 : i32
    %0 = arith.cmpi eq, %arg2, %c0_i32 : i32
    %1 = arith.extui %0 : i1 to i32
    %c0_i32_0 = arith.constant 0 : i32
    %2 = arith.cmpi ne, %1, %c0_i32_0 : i32
    scf.if %2 {
      %cst_12 = arith.constant 0.000000e+00 : f32
      %14 = vector.broadcast %cst_12 : f32 to vector<1x32xf32>
      %c0_13 = arith.constant 0 : index
      %c0_14 = arith.constant 0 : index
      %15 = vector.load %arg7[%c0_13, %c0_14] : memref<1x32xf32, #tpu.memory_space<vmem>>, vector<1x32xf32>
      tpu.vector_store %arg7[%c0_13, %c0_14], %14 {strides = array<i32>} : memref<1x32xf32, #tpu.memory_space<vmem>>, vector<1x32xf32>,
    } else {
    }
    %c0 = arith.constant 0 : index
    %c0_1 = arith.constant 0 : index
    %3 = vector.load %arg7[%c0, %c0_1] : memref<1x32xf32, #tpu.memory_space<vmem>>, vector<1x32xf32>
    %c0_2 = arith.constant 0 : index
    %c0_3 = arith.constant 0 : index
    %c0_4 = arith.constant 0 : index
    %c0_5 = arith.constant 0 : index
    %4 = vector.load %arg3[%c0_2, %c0_3, %c0_4, %c0_5] : memref<1x1x1x288xbf16, #tpu.memory_space<vmem>>, vector<1x1x1x288xbf16>
    %5 = vector.shape_cast %4 : vector<1x1x1x288xbf16> to vector<1x288xbf16>
    %c0_6 = arith.constant 0 : index
    %c0_7 = arith.constant 0 : index
    %c0_8 = arith.constant 0 : index
    %6 = vector.load %arg4[%c0_6, %c0_7, %c0_8] : memref<1x288x32xbf16, #tpu.memory_space<vmem>>, vector<1x288x32xbf16>
    %7 = vector.shape_cast %6 : vector<1x288x32xbf16> to vector<288x32xbf16>
    %cst = arith.constant dense<0.000000e+00> : vector<1x32xf32>
    %8 = tpu.matmul %5, %7, %cst {dimension_numbers = #tpu.dot_dimension_numbers<[1], [0], [0], [1], [0, 0, 1, 1], [], []>} : vector<1x288xbf16>, vector<288x32xbf16>, vector<1x32xf32> -> vector<1x32xf32>
    %9 = arith.addf %3, %8 : vector<1x32xf32>
    %c0_9 = arith.constant 0 : index
    %c0_10 = arith.constant 0 : index
    %10 = vector.load %arg7[%c0_9, %c0_10] : memref<1x32xf32, #tpu.memory_space<vmem>>, vector<1x32xf32>
    tpu.vector_store %arg7[%c0_9, %c0_10], %9 {strides = array<i32>} : memref<1x32xf32, #tpu.memory_space<vmem>>, vector<1x32xf32>,
    %c2_i32 = arith.constant 2 : i32
    %11 = arith.cmpi eq, %arg2, %c2_i32 : i32
    %12 = arith.extui %11 : i1 to i32
    %c0_i32_11 = arith.constant 0 : i32
    %13 = arith.cmpi ne, %12, %c0_i32_11 : i32
    scf.if %13 {
      %c0_12 = arith.constant 0 : index
      %c0_13 = arith.constant 0 : index
      %14 = vector.load %arg7[%c0_12, %c0_13] : memref<1x32xf32, #tpu.memory_space<vmem>>, vector<1x32xf32>
      %c0_14 = arith.constant 0 : index
      %c0_15 = arith.constant 0 : index
      %15 = vector.load %arg5[%c0_14, %c0_15] : memref<1x32xf32, #tpu.memory_space<vmem>>, vector<1x32xf32>
      %16 = arith.addf %14, %15 : vector<1x32xf32>
      %cst_16 = arith.constant 0.000000e+00 : f32
      %17 = vector.broadcast %cst_16 : f32 to vector<1x32xf32>
      %18 = arith.maximumf %16, %17 : vector<1x32xf32>
      %19 = arith.truncf %18 : vector<1x32xf32> to vector<1x32xbf16>
      %c0_17 = arith.constant 0 : index
      %c0_18 = arith.constant 0 : index
      %c0_19 = arith.constant 0 : index
      %c0_20 = arith.constant 0 : index
      %20 = vector.load %arg6[%c0_17, %c0_18, %c0_19, %c0_20] : memref<1x1x1x32xbf16, #tpu.memory_space<vmem>>, vector<1x1x1x32xbf16>
      %21 = vector.shape_cast %20 : vector<1x1x1x32xbf16> to vector<1x32xbf16>
      %22 = vector.shape_cast %19 : vector<1x32xbf16> to vector<1x1x1x32xbf16>
      tpu.vector_store %arg6[%c0_17, %c0_18, %c0_19, %c0_20], %22 {strides = array<i32>} : memref<1x1x1x32xbf16, #tpu.memory_space<vmem>>, vector<1x1x1x32xbf16>,
    } else {
    }
    return
  }
  func.func @transform_0(%arg0: i32, %arg1: i32, %arg2: i32) -> (i32, i32, i32, i32) {
    %c1_i32 = arith.constant 1 : i32
    %0 = arith.muli %arg1, %c1_i32 : i32
    %1 = arith.addi %0, %arg2 : i32
    %c0_i32 = arith.constant 0 : i32
    %c0_i32_0 = arith.constant 0 : i32
    %c0_i32_1 = arith.constant 0 : i32
    return %arg0, %1, %c0_i32, %c0_i32_0 : i32, i32, i32, i32
  }
  func.func @transform_1(%arg0: i32, %arg1: i32, %arg2: i32) -> (i32, i32, i32) {
    %c0_i32 = arith.constant 0 : i32
    %c0_i32_0 = arith.constant 0 : i32
    %c0_i32_1 = arith.constant 0 : i32
    return %arg2, %c0_i32, %c0_i32_0 : i32, i32, i32
  }
  func.func @transform_2(%arg0: i32, %arg1: i32, %arg2: i32) -> (i32, i32) {
    %c0_i32 = arith.constant 0 : i32
    %c0_i32_0 = arith.constant 0 : i32
    %c0_i32_1 = arith.constant 0 : i32
    return %c0_i32, %c0_i32_0 : i32, i32
  }
  func.func @transform_3(%arg0: i32, %arg1: i32, %arg2: i32) -> (i32, i32, i32, i32) {
    %c0_i32 = arith.constant 0 : i32
    %c0_i32_0 = arith.constant 0 : i32
    %c0_i32_1 = arith.constant 0 : i32
    return %arg0, %arg1, %c0_i32, %c0_i32_0 : i32, i32, i32, i32
  }
}

</mosaic_0001>

<bundles_post_ra>
// kernel: forward.16
= control target key start
LH: loop header
LB: loop body
LE: loop exit
PB: predicated region body
PF: predicated region fallthrough
CT: control target
= control target key end

     0   :  { %s910_s12 = smov 0   ;;  %s912_s13 = smov 0   ;;  %s1049_s0 = inlined_call_operand.vmem [shape: bf16[2,6,64,147], index: 0, kind: input, shape index: {}]   ;;  %s1050_s1 = inlined_call_operand.vmem [shape: bf16[3,147,8], index: 1, kind: input, shape index: {}]   ;;  %s1051_s2 = inlined_call_operand.vmem [shape: f32[1,8], index: 2, kind: input, shape index: {}]   ;;  %s1052_s3 = inlined_call_operand.vmem [shape: bf16[2,4,64,8], index: 3, kind: output, shape index: {}]  }
   0x1   :  { %s914_s14 = smov 0   ;;  %s916_s15 = smov 0  }
   0x2   :  { %s918_s16 = smov 0   ;;  %s920_s17 = smov 0  }
   0x3   :  { %s922_s18 = smov 0  }
   0x4 LB: > { %s25_s19 = sadd.s32 1, %s873_s15  ;;  %s28_s20 = sadd.s32 1, %s877_s16  ;;  %s885_s18 = sphi %s922_s18, %s13_s18   ;;  %s881_s17 = sphi %s920_s17, %s1058_s17   ;;  %s877_s16 = sphi %s918_s16, %s1057_s16   ;;  %s873_s15 = sphi %s916_s15, %s1056_s15   ;;  %s869_s14 = sphi %s914_s14, %s1055_s14   ;;  %s865_s13 = sphi %s912_s13, %s1054_s13   ;;  %s861_s12 = sphi %s910_s12, %s1053_s12  }
   0x5   : > { %p26_p0 = scmp.ge.s32.totalorder %s25_s19, 3  ;;  %p678_p1 = scmp.ge.s32.totalorder %s885_s18, 1 }
   0x6   : > { %p178_p2 = scmp.lt.s32.totalorder %s885_s18, 25  ;;  %s32_s21 = sadd.s32 1, %s881_s17 }
   0x7   : > { %s1060_s19 = smov (%p26_p0, %s25_s19), 0  ;;  %s1062_s20 = smov (!%p26_p0, %s28_s20), %s877_s16 }
   0x8   : > { %p179_p3 = pnand %p678_p1, %p178_p2  ;;  %p30_p4 = scmp.ge.s32.totalorder %s1062_s20, 4 }
   0x9   : > { %s216_s22 = sadd.s32 (!%p179_p3), %s861_s12, %s865_s13  ;;  %p217_p6 = scmp.lt.s32.totalorder (!%p179_p3), %s869_s14, 1 }
   0xa   : > { %s1064_s20 = smov (%p30_p4, %s1062_s20), 0  ;;  %s1066_s21 = smov (!%p30_p4, %s32_s21), %s881_s17 }
   0xb   : > { %p34_p5 = scmp.ge.s32.totalorder %s1066_s21, 2  ;;  %182 = sbr.rel (%p179_p3) target bundleno = 297 (0x129), region = 32 }
   0xc   : > { %p219_p7 = scmp.lt.s32.totalorder (!%p179_p3), %s216_s22, 5  ;;  %p227_p8 = scmp.lt.s32.totalorder (!%p179_p3), %s861_s12, 2 }
   0xd   : > { %s1068_s21 = smov (%p34_p5, %s1066_s21), 0  ;;  %p234_p9 = scmp.lt.s32.totalorder (!%p179_p3), %s865_s13, 3 }
   0xe   : > { %p685_p10 = scmp.ne.s32.totalorder (!%p179_p3), %s861_s12, 0 }
  0x10   : > { %s1070_s14 = smov (!%p217_p6, %s869_s14), 1  ;;  %s1072_s22 = smov (!%p219_p7, %s216_s22), 5 }
  0x11   : > { %s748_s23 = smul.u32 96, %s1070_s14  ;;  %s679_s24 = sshll.u32 %s1072_s22, 4 }
  0x12   : > { %s683_s30 = sshll.u32 %s1070_s14, 5  ;;  %s1074_s13 = smov (!%p234_p9, %s865_s13), 3 }
  0x13   : > { %s223_s25 = sadd.s32 %s748_s23, %s679_s24  ;;  %s682_s6 = sshll.u32 %s1074_s13, 3 }
  0x14   : > { %s680_s26 = sshll.u32 %s223_s25, 2  ;;  %s238_s10 = sadd.s32 %s683_s30, %s682_s6 }
  0x15   : > { %s963_s29 = scalar_lea.vmem %s1049_s0, %s680_s26  ;;  %s684_s11 = sshll.u32 %s238_s10, 2 }
  0x16   : > { %s228_s4 = scalar_select %p227_p8, %s861_s12, 2 }
  0x17   : > { %s975_s24 = scalar_lea.vmem %s1052_s3, %s684_s11  ;;  %245 = sbr.rel (%p685_p10) target bundleno = 33 (0x21), region = 36 }
  0x18   : > { %s749_s5 = smul.u32 76, %s228_s4 }
  0x1a   : > { %s970_s9 = scalar_lea.vmem %s1050_s1, %s749_s5 }
  0x1c   : > { %vm246_vm0 = vcmask 64512   ;;  %v887_v0 = vmov 0.0  }
  0x1d   : > { %247 = vst.msk [vmem:[#allocation2] sm:$0xff] %vm246_vm0, %v887_v0  ;;  %248 = vst.msk [vmem:[#allocation2 + $0x8] sm:$0xff] %vm246_vm0, %v887_v0 }
  0x1e   : > { %249 = vst.msk [vmem:[#allocation2 + $0x10] sm:$0xff] %vm246_vm0, %v887_v0  ;;  %250 = vst.msk [vmem:[#allocation2 + $0x18] sm:$0xff] %vm246_vm0, %v887_v0 }
  0x1f   : > { %251 = vst.msk [vmem:[#allocation2 + $0x20] sm:$0xff] %vm246_vm0, %v887_v0  ;;  %252 = vst.msk [vmem:[#allocation2 + $0x28] sm:$0xff] %vm246_vm0, %v887_v0 }
  0x20   : > { %253 = vst.msk [vmem:[#allocation2 + $0x30] sm:$0xff] %vm246_vm0, %v887_v0  ;;  %254 = vst.msk [vmem:[#allocation2 + $0x38] sm:$0xff] %vm246_vm0, %v887_v0 }
  0x21 PF: > { %v809_v1 = vld [vmem:[%s970_s9 + $0x38] sm:$0xff]   ;;  %v888_v2 = vmov 0   ;;  %v810_v3 = vld [vmem:[%s970_s9 + $0x30] sm:$0xff]   ;;  %v811_v4 = vld [vmem:[%s970_s9 + $0x28] sm:$0xff]   ;;  %vm383_vm1 = vcmask 154624   ;;  %vm396_vm2 = vcmask 1040384  }
  0x22   : > { %403 = vmatprep.subr.bf16.mxu0 %v888_v2  ;;  %728 = vmatprep.subr.bf16.mxu1 %v888_v2  ;;  %v812_v5 = vld [vmem:[%s970_s9 + $0x20] sm:$0xff]   ;;  %v813_v8 = vld [vmem:[%s970_s9 + $0x18] sm:$0xff]   ;;  %v814_v9 = vld [vmem:[%s970_s9 + $0x10] sm:$0xff]   ;;  %vm397_vm3 = vcmask 1041408   ;;  %v889_v11 = vmov 65535   ;;  %vm476_vm4 = vcmask 64512  }
  0x23   : > { %404 = vmatpush1.bf16.msra.mxu0 %v809_v1  ;;  %738 = vmatpush1.bf16.msra.mxu1 %v809_v1  ;;  %v821_v6 = vld [vmem:[%s963_s29 + $0x4] ss:$8 sps:$4 sm:$0xff]   ;;  %v398_v12 = vsel %vm396_vm2, 4294967295, %v889_v11  ;;  %v817_v14 = vld [vmem:[%s970_s9 + $0x48] ss:$0 sps:$4 sm:$0x33]  }
  0x24   : > { %405 = vmatprep.subr.bf16.mxu0 %v888_v2  ;;  %729 = vmatprep.subr.bf16.mxu1 %v888_v2  ;;  %v824_v7 = vld [vmem:[%s963_s29 + $0x24] ss:$8 sps:$4 sm:$0xff]   ;;  %v399_v15 = vsel %vm397_vm3, %v398_v12, 0  ;;  %v819_v18 = vld [vmem:[%s963_s29] ss:$8 sps:$4 sm:$0xff]   ;;  %p708_p11 = scmp.ne.s32.totalorder %s861_s12, 2 }
  0x25   : > { %704 = vmatprep.mubr.msk.bf16.mxu0 %vm383_vm1, %v821_v6  ;;  %706 = vmatprep.mubr.msk.bf16.mxu1 %vm383_vm1, %v824_v7  ;;  %v815_v10 = vld [vmem:[%s970_s9 + $0x8] sm:$0xff]   ;;  %v816_v13 = vld [vmem:[%s970_s9] sm:$0xff]   ;;  %v401_v16 = vand.u32 %v817_v14, %v399_v15  ;;  %v825_v20 = vld [vmem:[%s963_s29 + $0x14] ss:$8 sps:$4 sm:$0xff]  }
  0x26   : > { %v818_v17 = vld [vmem:[%s970_s9 + $0x40] sm:$0xff]   ;;  %v827_v21 = vld [vmem:[%s963_s29 + $0x34] ss:$8 sps:$4 sm:$0xff]   ;;  %v829_v22 = vld [vmem:[%s963_s29 + $0x10] ss:$8 sps:$4 sm:$0xff]  }
  0x27   : > { %406 = vmatpush1.bf16.msra.mxu0 %v810_v3  ;;  %739 = vmatpush1.bf16.msra.mxu1 %v810_v3  ;;  %v822_v19 = vld [vmem:[%s963_s29 + $0x20] ss:$8 sps:$4 sm:$0xff]   ;;  %v830_v23 = vld [vmem:[%s963_s29 + $0x30] ss:$8 sps:$4 sm:$0xff]  }
  0x28   : > { %407 = vmatprep.subr.bf16.mxu0 %v888_v2  ;;  %730 = vmatprep.subr.bf16.mxu1 %v888_v2  ;;  %v255_v24 = vld [vmem:[#allocation2] sm:$0xff]  ;;  %v256_v32 = vld [vmem:[#allocation2 + $0x8] sm:$0xff]  ;;  %v257_v40 = vld [vmem:[#allocation2 + $0x10] sm:$0xff] }
  0x29   : > { %v259_v25 = vld [vmem:[#allocation2 + $0x20] sm:$0xff]  ;;  %v260_v33 = vld [vmem:[#allocation2 + $0x28] sm:$0xff]  ;;  %v261_v41 = vld [vmem:[#allocation2 + $0x30] sm:$0xff] }
  0x2a   : > { %v258_v48 = vld [vmem:[#allocation2 + $0x18] sm:$0xff] }
  0x2b   : > { %408 = vmatpush1.bf16.msra.mxu0 %v811_v4  ;;  %740 = vmatpush1.bf16.msra.mxu1 %v811_v4  ;;  %v262_v49 = vld [vmem:[#allocation2 + $0x38] sm:$0xff] }
  0x2c   : > { %409 = vmatprep.subr.bf16.mxu0 %v888_v2  ;;  %731 = vmatprep.subr.bf16.mxu1 %v888_v2 }
  0x2f   : > { %410 = vmatpush1.bf16.msra.mxu0 %v812_v5  ;;  %741 = vmatpush1.bf16.msra.mxu1 %v812_v5 }
  0x30   : > { %411 = vmatprep.subr.bf16.mxu0 %v888_v2  ;;  %732 = vmatprep.subr.bf16.mxu1 %v888_v2 }
  0x33   : > { %412 = vmatpush1.bf16.msra.mxu0 %v813_v8  ;;  %742 = vmatpush1.bf16.msra.mxu1 %v813_v8 }
  0x34   : > { %413 = vmatprep.subr.bf16.mxu0 %v888_v2  ;;  %733 = vmatprep.subr.bf16.mxu1 %v888_v2 }
  0x37   : > { %414 = vmatpush1.bf16.msra.mxu0 %v814_v9  ;;  %743 = vmatpush1.bf16.msra.mxu1 %v814_v9 }
  0x38   : > { %415 = vmatprep.subr.bf16.mxu0 %v888_v2  ;;  %734 = vmatprep.subr.bf16.mxu1 %v888_v2 }
  0x3b   : > { %416 = vmatpush1.bf16.msra.mxu0 %v815_v10  ;;  %744 = vmatpush1.bf16.msra.mxu1 %v815_v10 }
  0x3c   : > { %417 = vmatprep.subr.bf16.mxu0 %v888_v2  ;;  %735 = vmatprep.subr.bf16.mxu1 %v888_v2 }
  0x3f   : > { %418 = vmatpush1.bf16.msra.mxu0 %v816_v13  ;;  %745 = vmatpush1.bf16.msra.mxu1 %v816_v13 }
  0x40   : > { %431 = vmatprep.subr.bf16.mxu0 %v888_v2  ;;  %736 = vmatprep.subr.bf16.mxu1 %v888_v2 }
  0x43   : > { %432 = vmatpush2.bf16.msra.mxu0 %v401_v16  ;;  %746 = vmatpush2.bf16.msra.mxu1 %v401_v16 }
  0x44   : > { %433 = vmatprep.subr.bf16.mxu0 %v888_v2  ;;  %737 = vmatprep.subr.bf16.mxu1 %v888_v2 }
  0x47   : > { %434 = vmatpush2.bf16.msra.mxu0 %v818_v17  ;;  %747 = vmatpush2.bf16.msra.mxu1 %v818_v17 }
  0x4a   : > { %436 = vmatmul.mubr.bf16.vlgmr.msra.gmra.mxu0 %v819_v18  ;;  %452 = vmatmul.mubr.bf16.vlgmr.msra.gmra.mxu1 %v822_v19 }
  0x4b   : > { %705 = vmatprep.mubr.msk.bf16.mxu0 %vm383_vm1, %v825_v20  ;;  %707 = vmatprep.mubr.msk.bf16.mxu1 %vm383_vm1, %v827_v21 }
  0x52   : > { %444 = vmatmul.mubr.bf16.gmra.mxu0 %v829_v22  ;;  %460 = vmatmul.mubr.bf16.gmra.mxu1 %v830_v23 }
 0x10a   : > { %v437_v26 = vpop.f32.mrf.mxu0  ;;  %v453_v27 = vpop.f32.mrf.mxu1 }
 0x10b   : > { %v468_v28 = vadd.f32 %v437_v26, %v255_v24  ;;  %v472_v29 = vadd.f32 %v453_v27, %v259_v25 }
 0x10c   : > { %v439_v30 = vpop.f32.mrf.mxu0  ;;  %v455_v31 = vpop.f32.mrf.mxu1 }
 0x10d   : > { %477 = vst.msk [vmem:[#allocation2] sm:$0xff] %vm476_vm4, %v468_v28  ;;  %481 = vst.msk [vmem:[#allocation2 + $0x20] sm:$0xff] %vm476_vm4, %v472_v29 }
 0x10e   : > { %v440_v34 = vpop.f32.mrf.mxu0  ;;  %v456_v35 = vpop.f32.mrf.mxu1 }
 0x10f   : > { %v469_v36 = vadd.f32 %v440_v34, %v256_v32  ;;  %v473_v37 = vadd.f32 %v456_v35, %v260_v33 }
 0x110   : > { %v442_v38 = vpop.f32.mrf.mxu0  ;;  %v458_v39 = vpop.f32.mrf.mxu1 }
 0x111   : > { %478 = vst.msk [vmem:[#allocation2 + $0x8] sm:$0xff] %vm476_vm4, %v469_v36  ;;  %482 = vst.msk [vmem:[#allocation2 + $0x28] sm:$0xff] %vm476_vm4, %v473_v37 }
 0x112   : > { %v445_v42 = vpop.f32.mrf.mxu0  ;;  %v461_v43 = vpop.f32.mrf.mxu1 }
 0x113   : > { %v470_v44 = vadd.f32 %v445_v42, %v257_v40  ;;  %v474_v45 = vadd.f32 %v461_v43, %v261_v41 }
 0x114   : > { %v447_v46 = vpop.f32.mrf.mxu0  ;;  %v463_v47 = vpop.f32.mrf.mxu1 }
 0x115   : > { %479 = vst.msk [vmem:[#allocation2 + $0x10] sm:$0xff] %vm476_vm4, %v470_v44  ;;  %483 = vst.msk [vmem:[#allocation2 + $0x30] sm:$0xff] %vm476_vm4, %v474_v45  ;;  %488 = sbr.rel (%p708_p11) target bundleno = 297 (0x129), region = 40 }
 0x116   : > { %v448_v50 = vpop.f32.mrf.mxu0  ;;  %v464_v51 = vpop.f32.mrf.mxu1 }
 0x117   : > { %v471_v52 = vadd.f32 %v448_v50, %v258_v48  ;;  %v475_v53 = vadd.f32 %v464_v51, %v262_v49 }
 0x118   : > { %v450_v54 = vpop.f32.mrf.mxu0  ;;  %v466_v55 = vpop.f32.mrf.mxu1 }
 0x119   : > { %480 = vst.msk [vmem:[#allocation2 + $0x18] sm:$0xff] %vm476_vm4, %v471_v52  ;;  %484 = vst.msk [vmem:[#allocation2 + $0x38] sm:$0xff] %vm476_vm4, %v475_v53 }
 0x11a   : > { %v489_v56 = vld [vmem:[#allocation2] sm:$0xff]  ;;  %v490_v58 = vld [vmem:[#allocation2 + $0x8] sm:$0xff]  ;;  %vm552_vm5 = vcmask 60416  }
 0x11b   : > { %v709_v57 = vld [vmem:[%s1051_s2] ss:$0 sm:$0xff]  ;;  %v494_v3 = vld [vmem:[#allocation2 + $0x28] sm:$0xff] }
 0x11c   : > { %v504_v59 = vadd.f32 %v709_v57, %v489_v56  ;;  %v505_v60 = vadd.f32 %v709_v57, %v490_v58  ;;  %v491_v61 = vld [vmem:[#allocation2 + $0x10] sm:$0xff]  ;;  %v493_v63 = vld [vmem:[#allocation2 + $0x20] sm:$0xff]  ;;  %v509_v8 = vadd.f32 %v709_v57, %v494_v3 }
 0x11d   : > { %v506_v0 = vadd.f32 %v709_v57, %v491_v61  ;;  %v508_v2 = vadd.f32 %v709_v57, %v493_v63  ;;  %v495_v4 = vld [vmem:[#allocation2 + $0x30] sm:$0xff] }
 0x11e   : > { %v512_v6 = vmax.f32 %v504_v59, 0.0  ;;  %v513_v7 = vmax.f32 %v505_v60, 0.0  ;;  %v510_v9 = vadd.f32 %v709_v57, %v495_v4  ;;  %v517_v16 = vmax.f32 %v509_v8, 0.0 }
 0x11f   : > { %v514_v10 = vmax.f32 %v506_v0, 0.0  ;;  %v516_v12 = vmax.f32 %v508_v2, 0.0 }
 0x120   : > { %v492_v62 = vld [vmem:[#allocation2 + $0x18] sm:$0xff]  ;;  %v720_v14 = vpack.c.bf16 %v512_v6, %v512_v6  ;;  %v721_v15 = vpack.c.bf16 %v513_v7, %v513_v7  ;;  %v518_v17 = vmax.f32 %v510_v9, 0.0  ;;  %v725_v22 = vpack.c.bf16 %v517_v16, %v517_v16 }
 0x121   : > { %v507_v1 = vadd.f32 %v709_v57, %v492_v62  ;;  %v496_v5 = vld [vmem:[#allocation2 + $0x38] sm:$0xff]  ;;  %v722_v18 = vpack.c.bf16 %v514_v10, %v514_v10  ;;  %v724_v20 = vpack.c.bf16 %v516_v12, %v516_v12 }
 0x122   : > { %v511_v13 = vadd.f32 %v709_v57, %v496_v5  ;;  %553 = vst.msk [vmem:[%s975_s24] sm:$0xf] %vm552_vm5, %v720_v14  ;;  %554 = vst.msk [vmem:[%s975_s24 + $0x4] sm:$0xf] %vm552_vm5, %v721_v15  ;;  %v726_v23 = vpack.c.bf16 %v518_v17, %v518_v17 }
 0x123   : > { %v515_v11 = vmax.f32 %v507_v1, 0.0  ;;  %555 = vst.msk [vmem:[%s975_s24 + $0x8] sm:$0xf] %vm552_vm5, %v722_v18  ;;  %557 = vst.msk [vmem:[%s975_s24 + $0x10] sm:$0xf] %vm552_vm5, %v724_v20 }
 0x124   : > { %v519_v21 = vmax.f32 %v511_v13, 0.0  ;;  %558 = vst.msk [vmem:[%s975_s24 + $0x14] sm:$0xf] %vm552_vm5, %v725_v22  ;;  %559 = vst.msk [vmem:[%s975_s24 + $0x18] sm:$0xf] %vm552_vm5, %v726_v23 }
 0x125   : > { %v723_v19 = vpack.c.bf16 %v515_v11, %v515_v11 }
 0x126   : > { %v727_v24 = vpack.c.bf16 %v519_v21, %v519_v21 }
 0x127   : > { %556 = vst.msk [vmem:[%s975_s24 + $0xc] sm:$0xf] %vm552_vm5, %v723_v19 }
 0x128   : > { %560 = vst.msk [vmem:[%s975_s24 + $0x1c] sm:$0xf] %vm552_vm5, %v727_v24 }
 0x129 PF: > { %s13_s18 = sadd.s32 1, %s885_s18   ;;  %s1053_s12 = smov %s873_s15 }
 0x12a   : > { %p10_p12 = scmp.ge.s32.totalorder %s13_s18, 26   ;;  %s1054_s13 = smov %s877_s16 }
 0x12b   : > { %s1055_s14 = smov %s881_s17  ;;  %s1056_s15 = smov %s1060_s19 }
 0x12c   : > { %s1057_s16 = smov %s1064_s20  ;;  %s1058_s17 = smov %s1068_s21 }
 0x12d   :  { %12 = sbr.rel (!%p10_p12) target bundleno = 4 (0x4), region = 73 }

// kernel: forward.18
= control target key start
LH: loop header
LB: loop body
LE: loop exit
PB: predicated region body
PF: predicated region fallthrough
CT: control target
= control target key end

     0   :  { %vm64_vm0 = vcmask 1043456   ;;  %vm51_vm1 = vcmask 64512   ;;  %vm173_vm2 = vcmask 60416   ;;  %s304_s1 = inlined_call_operand.vmem [shape: bf16[8,8], index: 1, kind: input, shape index: {}]   ;;  %s305_s0 = inlined_call_operand.vmem [shape: bf16[64,8], index: 0, kind: input, shape index: {}]   ;;  %s306_s2 = inlined_call_operand.vmem [shape: f32[1,8], index: 2, kind: input, shape index: {}]   ;;  %s307_s3 = inlined_call_operand.vmem [shape: bf16[64,8], index: 3, kind: output, shape index: {}]  }
   0x1   :  { %v23_v0 = vld [vmem:[%s304_s1] sm:$0xf]  ;;  %v231_v3 = vld [vmem:[%s305_s0 + $0x10] sm:$0xff]   ;;  %v232_v4 = vld [vmem:[%s305_s0 + $0x8] sm:$0xff]  }
   0x2   :  { %228 = vmatprep.subr.msk.bf16.mxu0 %vm64_vm0, %v23_v0  ;;  %229 = vmatprep.subr.msk.bf16.mxu1 %vm64_vm0, %v23_v0  ;;  %v66_v1 = vsel %vm64_vm0, %v23_v0, 0  ;;  %v230_v2 = vld [vmem:[%s305_s0] sm:$0xff]   ;;  %v233_v5 = vld [vmem:[%s305_s0 + $0x18] sm:$0xff]  }
   0x3   :  { %217 = vmatpush3.bf16.msra.mxu0 %v66_v1  ;;  %227 = vmatpush3.bf16.msra.mxu1 %v66_v1  ;;  %v186_v6 = vld [vmem:[%s306_s2] ss:$0 sm:$0xff] }
   0x4   :  { %218 = vmatprep.mubr.msk.bf16.mxu0 %vm51_vm1, %v230_v2  ;;  %222 = vmatprep.mubr.msk.bf16.mxu1 %vm51_vm1, %v231_v3 }
   0x6   :  { %219 = vmatmul.mubr.msk.bf16.vlgmr.msra.gmra.mxu0 %vm51_vm1, %v232_v4  ;;  %223 = vmatmul.mubr.msk.bf16.vlgmr.msra.gmra.mxu1 %vm51_vm1, %v233_v5 }
  0xc6   :  { %v220_v7 = vpop.f32.mrf.mxu0  ;;  %v224_v9 = vpop.f32.mrf.mxu1 }
  0xc7   :  { %v111_v8 = vadd.f32 %v220_v7, %v186_v6  ;;  %v127_v10 = vadd.f32 %v224_v9, %v186_v6 }
  0xc8   :  { %v102_v11 = vpop.f32.mrf.mxu0  ;;  %v118_v14 = vpop.f32.mrf.mxu1 }
  0xc9   :  { %v135_v12 = vmax.f32 %v111_v8, 0.0  ;;  %v103_v13 = vadd.f32 %v186_v6, %v102_v11  ;;  %v139_v15 = vmax.f32 %v127_v10, 0.0  ;;  %v119_v16 = vadd.f32 %v186_v6, %v118_v14 }
  0xca   :  { %v221_v17 = vpop.f32.mrf.mxu0  ;;  %v225_v21 = vpop.f32.mrf.mxu1 }
  0xcb   :  { %v205_v18 = vpack.c.bf16 %v135_v12, %v135_v12  ;;  %v133_v19 = vmax.f32 %v103_v13, 0.0  ;;  %v114_v20 = vadd.f32 %v221_v17, %v186_v6  ;;  %v209_v22 = vpack.c.bf16 %v139_v15, %v139_v15 }
  0xcc   :  { %v137_v23 = vmax.f32 %v119_v16, 0.0  ;;  %v130_v24 = vadd.f32 %v225_v21, %v186_v6  ;;  %v105_v25 = vpop.f32.mrf.mxu0  ;;  %v121_v29 = vpop.f32.mrf.mxu1 }
  0xcd   :  { %176 = vst.msk [vmem:[%s307_s3 + $0x8] sm:$0xf] %vm173_vm2, %v205_v18  ;;  %v203_v26 = vpack.c.bf16 %v133_v19, %v133_v19  ;;  %v136_v27 = vmax.f32 %v114_v20, 0.0  ;;  %v106_v28 = vadd.f32 %v186_v6, %v105_v25  ;;  %180 = vst.msk [vmem:[%s307_s3 + $0x18] sm:$0xf] %vm173_vm2, %v209_v22  ;;  %v122_v32 = vadd.f32 %v186_v6, %v121_v29 }
  0xce   :  { %v207_v30 = vpack.c.bf16 %v137_v23, %v137_v23  ;;  %v140_v31 = vmax.f32 %v130_v24, 0.0 }
  0xcf   :  { %174 = vst.msk [vmem:[%s307_s3] sm:$0xf] %vm173_vm2, %v203_v26  ;;  %v206_v33 = vpack.c.bf16 %v136_v27, %v136_v27  ;;  %v134_v34 = vmax.f32 %v106_v28, 0.0  ;;  %v138_v36 = vmax.f32 %v122_v32, 0.0 }
  0xd0   :  { %178 = vst.msk [vmem:[%s307_s3 + $0x10] sm:$0xf] %vm173_vm2, %v207_v30  ;;  %v210_v35 = vpack.c.bf16 %v140_v31, %v140_v31 }
  0xd1   :  { %177 = vst.msk [vmem:[%s307_s3 + $0xc] sm:$0xf] %vm173_vm2, %v206_v33  ;;  %v204_v37 = vpack.c.bf16 %v134_v34, %v134_v34  ;;  %v208_v38 = vpack.c.bf16 %v138_v36, %v138_v36 }
  0xd2   :  { %181 = vst.msk [vmem:[%s307_s3 + $0x1c] sm:$0xf] %vm173_vm2, %v210_v35 }
  0xd3   :  { %175 = vst.msk [vmem:[%s307_s3 + $0x4] sm:$0xf] %vm173_vm2, %v204_v37  ;;  %179 = vst.msk [vmem:[%s307_s3 + $0x14] sm:$0xf] %vm173_vm2, %v208_v38 }

// kernel: forward.20
= control target key start
LH: loop header
LB: loop body
LE: loop exit
PB: predicated region body
PF: predicated region fallthrough
CT: control target
= control target key end

     0   :  { %vm67_vm0 = vcmask 1043456   ;;  %vm54_vm1 = vcmask 64512   ;;  %vm200_vm2 = vcmask 257024   ;;  %s367_s1 = inlined_call_operand.vmem [shape: bf16[8,32], index: 1, kind: input, shape index: {}]   ;;  %s368_s0 = inlined_call_operand.vmem [shape: bf16[64,8], index: 0, kind: input, shape index: {}]   ;;  %s369_s3 = inlined_call_operand.vmem [shape: bf16[64,32], index: 3, kind: input, shape index: {}]   ;;  %s370_s2 = inlined_call_operand.vmem [shape: f32[1,32], index: 2, kind: input, shape index: {}]   ;;  %s371_s4 = inlined_call_operand.vmem [shape: bf16[64,32], index: 4, kind: output, shape index: {}]  }
   0x1   :  { %v26_v0 = vld [vmem:[%s367_s1] sm:$0xf]  ;;  %v277_v3 = vld [vmem:[%s368_s0 + $0x10] sm:$0xff]   ;;  %v278_v4 = vld [vmem:[%s368_s0 + $0x8] sm:$0xff]  }
   0x2   :  { %274 = vmatprep.subr.msk.bf16.mxu0 %vm67_vm0, %v26_v0  ;;  %275 = vmatprep.subr.msk.bf16.mxu1 %vm67_vm0, %v26_v0  ;;  %v69_v1 = vsel %vm67_vm0, %v26_v0, 0  ;;  %v276_v2 = vld [vmem:[%s368_s0] sm:$0xff]   ;;  %v279_v5 = vld [vmem:[%s368_s0 + $0x18] sm:$0xff]   ;;  %v254_v6 = vld [vmem:[%s369_s3 + $0x8] sm:$0xff]  }
   0x3   :  { %263 = vmatpush3.bf16.msra.mxu0 %v69_v1  ;;  %273 = vmatpush3.bf16.msra.mxu1 %v69_v1  ;;  %v256_v7 = vld [vmem:[%s369_s3 + $0x18] sm:$0xff]   ;;  %v213_v8 = vld [vmem:[%s370_s2] ss:$0 sm:$0xff]  ;;  %v244_v10 = vunpack.c.l.bf16 %v254_v6  ;;  %v255_v11 = vld [vmem:[%s369_s3 + $0x10] sm:$0xff]   ;;  %v245_v23 = vunpack.c.h.bf16 %v254_v6 }
   0x4   :  { %264 = vmatprep.mubr.msk.bf16.mxu0 %vm54_vm1, %v276_v2  ;;  %268 = vmatprep.mubr.msk.bf16.mxu1 %vm54_vm1, %v277_v3  ;;  %v239_v9 = vld [vmem:[%s369_s3] sm:$0xff]   ;;  %v252_v13 = vunpack.c.l.bf16 %v256_v7  ;;  %v248_v19 = vunpack.c.l.bf16 %v255_v11  ;;  %v253_v27 = vunpack.c.h.bf16 %v256_v7  ;;  %v249_v37 = vunpack.c.h.bf16 %v255_v11 }
   0x5   :  { %v240_v16 = vunpack.c.l.bf16 %v239_v9  ;;  %v241_v32 = vunpack.c.h.bf16 %v239_v9 }
   0x6   :  { %265 = vmatmul.mubr.msk.bf16.vlgmr.msra.gmra.mxu0 %vm54_vm1, %v278_v4  ;;  %269 = vmatmul.mubr.msk.bf16.vlgmr.msra.gmra.mxu1 %vm54_vm1, %v279_v5 }
  0xc6   :  { %v266_v12 = vpop.f32.mrf.mxu0  ;;  %v270_v15 = vpop.f32.mrf.mxu1 }
  0xc7   :  { %v114_v14 = vadd.f32 %v266_v12, %v213_v8  ;;  %v130_v17 = vadd.f32 %v270_v15, %v213_v8 }
  0xc8   :  { %v105_v18 = vpop.f32.mrf.mxu0  ;;  %v121_v22 = vpop.f32.mrf.mxu1 }
  0xc9   :  { %v154_v20 = vadd.f32 %v244_v10, %v114_v14  ;;  %v106_v21 = vadd.f32 %v213_v8, %v105_v18  ;;  %v158_v24 = vadd.f32 %v252_v13, %v130_v17  ;;  %v122_v25 = vadd.f32 %v213_v8, %v121_v22 }
  0xca   :  { %v267_v26 = vpop.f32.mrf.mxu0  ;;  %v271_v31 = vpop.f32.mrf.mxu1 }
  0xcb   :  { %v162_v28 = vmax.f32 %v154_v20, 0.0  ;;  %v152_v29 = vadd.f32 %v240_v16, %v106_v21  ;;  %v117_v30 = vadd.f32 %v267_v26, %v213_v8  ;;  %v166_v33 = vmax.f32 %v158_v24, 0.0 }
  0xcc   :  { %v156_v34 = vadd.f32 %v248_v19, %v122_v25  ;;  %v133_v35 = vadd.f32 %v271_v31, %v213_v8  ;;  %v108_v36 = vpop.f32.mrf.mxu0  ;;  %v124_v42 = vpop.f32.mrf.mxu1 }
  0xcd   :  { %v232_v38 = vpack.c.bf16 %v162_v28, %v162_v28  ;;  %v160_v39 = vmax.f32 %v152_v29, 0.0  ;;  %v155_v40 = vadd.f32 %v245_v23, %v117_v30  ;;  %v109_v41 = vadd.f32 %v213_v8, %v108_v36 }
  0xce   :  { %v236_v43 = vpack.c.bf16 %v166_v33, %v166_v33  ;;  %v164_v44 = vmax.f32 %v156_v34, 0.0  ;;  %v159_v45 = vadd.f32 %v253_v27, %v133_v35  ;;  %v125_v46 = vadd.f32 %v213_v8, %v124_v42 }
  0xcf   :  { %203 = vst.msk [vmem:[%s371_s4 + $0x8] sm:$0xf] %vm200_vm2, %v232_v38  ;;  %v230_v47 = vpack.c.bf16 %v160_v39, %v160_v39  ;;  %v163_v48 = vmax.f32 %v155_v40, 0.0  ;;  %v153_v49 = vadd.f32 %v241_v32, %v109_v41 }
  0xd0   :  { %207 = vst.msk [vmem:[%s371_s4 + $0x18] sm:$0xf] %vm200_vm2, %v236_v43  ;;  %v234_v50 = vpack.c.bf16 %v164_v44, %v164_v44  ;;  %v167_v51 = vmax.f32 %v159_v45, 0.0  ;;  %v157_v52 = vadd.f32 %v249_v37, %v125_v46 }
  0xd1   :  { %201 = vst.msk [vmem:[%s371_s4] sm:$0xf] %vm200_vm2, %v230_v47  ;;  %v233_v53 = vpack.c.bf16 %v163_v48, %v163_v48  ;;  %v161_v54 = vmax.f32 %v153_v49, 0.0 }
  0xd2   :  { %205 = vst.msk [vmem:[%s371_s4 + $0x10] sm:$0xf] %vm200_vm2, %v234_v50  ;;  %v237_v55 = vpack.c.bf16 %v167_v51, %v167_v51  ;;  %v165_v56 = vmax.f32 %v157_v52, 0.0 }
  0xd3   :  { %204 = vst.msk [vmem:[%s371_s4 + $0xc] sm:$0xf] %vm200_vm2, %v233_v53  ;;  %v231_v57 = vpack.c.bf16 %v161_v54, %v161_v54 }
  0xd4   :  { %208 = vst.msk [vmem:[%s371_s4 + $0x1c] sm:$0xf] %vm200_vm2, %v237_v55  ;;  %v235_v58 = vpack.c.bf16 %v165_v56, %v165_v56 }
  0xd5   :  { %202 = vst.msk [vmem:[%s371_s4 + $0x4] sm:$0xf] %vm200_vm2, %v231_v57 }
  0xd6   :  { %206 = vst.msk [vmem:[%s371_s4 + $0x14] sm:$0xf] %vm200_vm2, %v235_v58 }

// kernel: forward.17
= control target key start
LH: loop header
LB: loop body
LE: loop exit
PB: predicated region body
PF: predicated region fallthrough
CT: control target
= control target key end

     0   :  { %vm64_vm0 = vcmask 1043456   ;;  %vm51_vm1 = vcmask 64512   ;;  %vm165_vm2 = vcmask 257024   ;;  %s296_s1 = inlined_call_operand.vmem [shape: bf16[8,32], index: 1, kind: input, shape index: {}]   ;;  %s297_s0 = inlined_call_operand.vmem [shape: bf16[64,8], index: 0, kind: input, shape index: {}]   ;;  %s298_s2 = inlined_call_operand.vmem [shape: f32[1,32], index: 2, kind: input, shape index: {}]   ;;  %s299_s3 = inlined_call_operand.vmem [shape: bf16[64,32], index: 3, kind: output, shape index: {}]  }
   0x1   :  { %v23_v0 = vld [vmem:[%s296_s1] sm:$0xf]  ;;  %v223_v3 = vld [vmem:[%s297_s0 + $0x10] sm:$0xff]   ;;  %v224_v4 = vld [vmem:[%s297_s0 + $0x8] sm:$0xff]  }
   0x2   :  { %220 = vmatprep.subr.msk.bf16.mxu0 %vm64_vm0, %v23_v0  ;;  %221 = vmatprep.subr.msk.bf16.mxu1 %vm64_vm0, %v23_v0  ;;  %v66_v1 = vsel %vm64_vm0, %v23_v0, 0  ;;  %v222_v2 = vld [vmem:[%s297_s0] sm:$0xff]   ;;  %v225_v5 = vld [vmem:[%s297_s0 + $0x18] sm:$0xff]  }
   0x3   :  { %209 = vmatpush3.bf16.msra.mxu0 %v66_v1  ;;  %219 = vmatpush3.bf16.msra.mxu1 %v66_v1  ;;  %v178_v6 = vld [vmem:[%s298_s2] ss:$0 sm:$0xff] }
   0x4   :  { %210 = vmatprep.mubr.msk.bf16.mxu0 %vm51_vm1, %v222_v2  ;;  %214 = vmatprep.mubr.msk.bf16.mxu1 %vm51_vm1, %v223_v3 }
   0x6   :  { %211 = vmatmul.mubr.msk.bf16.vlgmr.msra.gmra.mxu0 %vm51_vm1, %v224_v4  ;;  %215 = vmatmul.mubr.msk.bf16.vlgmr.msra.gmra.mxu1 %vm51_vm1, %v225_v5 }
  0xc6   :  { %v212_v7 = vpop.f32.mrf.mxu0  ;;  %v216_v9 = vpop.f32.mrf.mxu1 }
  0xc7   :  { %v111_v8 = vadd.f32 %v212_v7, %v178_v6  ;;  %v127_v10 = vadd.f32 %v216_v9, %v178_v6 }
  0xc8   :  { %v102_v11 = vpop.f32.mrf.mxu0  ;;  %v118_v14 = vpop.f32.mrf.mxu1 }
  0xc9   :  { %v197_v12 = vpack.c.bf16 %v111_v8, %v111_v8  ;;  %v103_v13 = vadd.f32 %v178_v6, %v102_v11  ;;  %v201_v15 = vpack.c.bf16 %v127_v10, %v127_v10  ;;  %v119_v16 = vadd.f32 %v178_v6, %v118_v14 }
  0xca   :  { %v213_v17 = vpop.f32.mrf.mxu0  ;;  %v217_v20 = vpop.f32.mrf.mxu1 }
  0xcb   :  { %168 = vst.msk [vmem:[%s299_s3 + $0x8] sm:$0xf] %vm165_vm2, %v197_v12  ;;  %v195_v18 = vpack.c.bf16 %v103_v13, %v103_v13  ;;  %v114_v19 = vadd.f32 %v213_v17, %v178_v6  ;;  %172 = vst.msk [vmem:[%s299_s3 + $0x18] sm:$0xf] %vm165_vm2, %v201_v15  ;;  %v199_v21 = vpack.c.bf16 %v119_v16, %v119_v16 }
  0xcc   :  { %v130_v22 = vadd.f32 %v217_v20, %v178_v6  ;;  %v105_v23 = vpop.f32.mrf.mxu0  ;;  %v121_v26 = vpop.f32.mrf.mxu1 }
  0xcd   :  { %166 = vst.msk [vmem:[%s299_s3] sm:$0xf] %vm165_vm2, %v195_v18  ;;  %v198_v24 = vpack.c.bf16 %v114_v19, %v114_v19  ;;  %v106_v25 = vadd.f32 %v178_v6, %v105_v23  ;;  %170 = vst.msk [vmem:[%s299_s3 + $0x10] sm:$0xf] %vm165_vm2, %v199_v21  ;;  %v122_v28 = vadd.f32 %v178_v6, %v121_v26 }
  0xce   :  { %v202_v27 = vpack.c.bf16 %v130_v22, %v130_v22 }
  0xcf   :  { %169 = vst.msk [vmem:[%s299_s3 + $0xc] sm:$0xf] %vm165_vm2, %v198_v24  ;;  %v196_v29 = vpack.c.bf16 %v106_v25, %v106_v25  ;;  %v200_v30 = vpack.c.bf16 %v122_v28, %v122_v28 }
  0xd0   :  { %173 = vst.msk [vmem:[%s299_s3 + $0x1c] sm:$0xf] %vm165_vm2, %v202_v27 }
  0xd1   :  { %167 = vst.msk [vmem:[%s299_s3 + $0x4] sm:$0xf] %vm165_vm2, %v196_v29  ;;  %171 = vst.msk [vmem:[%s299_s3 + $0x14] sm:$0xf] %vm165_vm2, %v200_v30 }

// kernel: forward.19
= control target key start
LH: loop header
LB: loop body
LE: loop exit
PB: predicated region body
PF: predicated region fallthrough
CT: control target
= control target key end

     0   :  { %s682_s12 = smov 0   ;;  %s684_s13 = smov 0   ;;  %s776_s0 = inlined_call_operand.vmem [shape: bf16[2,4,16,72], index: 0, kind: input, shape index: {}]   ;;  %s777_s1 = inlined_call_operand.vmem [shape: bf16[3,72,8], index: 1, kind: input, shape index: {}]   ;;  %s778_s2 = inlined_call_operand.vmem [shape: f32[1,8], index: 2, kind: input, shape index: {}]   ;;  %s779_s3 = inlined_call_operand.vmem [shape: bf16[2,2,16,8], index: 3, kind: output, shape index: {}]  }
   0x1   :  { %s686_s14 = smov 0   ;;  %s688_s15 = smov 0  }
   0x2   :  { %s690_s16 = smov 0   ;;  %s692_s17 = smov 0  }
   0x3   :  { %s694_s18 = smov 0  }
   0x4 LB: > { %s25_s19 = sadd.s32 1, %s645_s15  ;;  %s28_s20 = sadd.s32 1, %s649_s16  ;;  %s657_s18 = sphi %s694_s18, %s13_s18   ;;  %s653_s17 = sphi %s692_s17, %s785_s17   ;;  %s649_s16 = sphi %s690_s16, %s784_s16   ;;  %s645_s15 = sphi %s688_s15, %s783_s15   ;;  %s641_s14 = sphi %s686_s14, %s782_s14   ;;  %s637_s13 = sphi %s684_s13, %s781_s13   ;;  %s633_s12 = sphi %s682_s12, %s780_s12  }
   0x5   : > { %p26_p0 = scmp.ge.s32.totalorder %s25_s19, 3  ;;  %p493_p1 = scmp.ge.s32.totalorder %s657_s18, 1 }
   0x6   : > { %p178_p2 = scmp.lt.s32.totalorder %s657_s18, 13  ;;  %s32_s21 = sadd.s32 1, %s653_s17 }
   0x7   : > { %s787_s19 = smov (%p26_p0, %s25_s19), 0  ;;  %s789_s20 = smov (!%p26_p0, %s28_s20), %s649_s16 }
   0x8   : > { %p179_p3 = pnand %p493_p1, %p178_p2  ;;  %p30_p4 = scmp.ge.s32.totalorder %s789_s20, 2 }
   0x9   : > { %s216_s22 = sadd.s32 (!%p179_p3), %s633_s12, %s637_s13  ;;  %p217_p6 = scmp.lt.s32.totalorder (!%p179_p3), %s641_s14, 1 }
   0xa   : > { %s791_s20 = smov (%p30_p4, %s789_s20), 0  ;;  %s793_s21 = smov (!%p30_p4, %s32_s21), %s653_s17 }
   0xb   : > { %p34_p5 = scmp.ge.s32.totalorder %s793_s21, 2  ;;  %182 = sbr.rel (%p179_p3) target bundleno = 264 (0x108), region = 32 }
   0xc   : > { %p219_p7 = scmp.lt.s32.totalorder (!%p179_p3), %s216_s22, 3  ;;  %p227_p8 = scmp.lt.s32.totalorder (!%p179_p3), %s633_s12, 2 }
   0xd   : > { %s795_s21 = smov (%p34_p5, %s793_s21), 0  ;;  %p234_p9 = scmp.lt.s32.totalorder (!%p179_p3), %s637_s13, 1 }
   0xe   : > { %p501_p10 = scmp.ne.s32.totalorder (!%p179_p3), %s633_s12, 0 }
  0x10   : > { %s797_s14 = smov (!%p217_p6, %s641_s14), 1  ;;  %s799_s22 = smov (!%p219_p7, %s216_s22), 3 }
  0x11   : > { %s495_s23 = sshll.u32 %s797_s14, 3  ;;  %s494_s24 = sshll.u32 %s799_s22, 1 }
  0x12   : > { %s223_s25 = sadd.s32 %s495_s23, %s494_s24  ;;  %s499_s30 = sshll.u32 %s797_s14, 2 }
  0x13   : > { %s496_s26 = sshll.u32 %s223_s25, 2  ;;  %s801_s13 = smov (!%p234_p9, %s637_s13), 1 }
  0x14   : > { %s735_s29 = scalar_lea.vmem %s776_s0, %s496_s26  ;;  %s498_s6 = sshll.u32 %s801_s13, 1 }
  0x15   : > { %s228_s4 = scalar_select %p227_p8, %s633_s12, 2 }
  0x16   : > { %s238_s10 = sadd.s32 %s499_s30, %s498_s6  ;;  %245 = sbr.rel (%p501_p10) target bundleno = 29 (0x1d), region = 36 }
  0x17   : > { %s537_s5 = smul.u32 36, %s228_s4  ;;  %s500_s11 = sshll.u32 %s238_s10, 2 }
  0x18   : > { %s745_s24 = scalar_lea.vmem %s779_s3, %s500_s11 }
  0x19   : > { %s231_s9 = scalar_lea.vmem %s777_s1, %s537_s5 }
  0x1b   : > { %vm246_vm0 = vcmask 64512   ;;  %v659_v0 = vmov 0.0  }
  0x1c   : > { %247 = vst.msk [vmem:[#allocation2] sm:$0xff] %vm246_vm0, %v659_v0  ;;  %248 = vst.msk [vmem:[#allocation2 + $0x8] sm:$0xff] %vm246_vm0, %v659_v0 }
  0x1d PF: > { %v597_v1 = vld [vmem:[%s231_s9 + $0x20] ss:$0 sps:$4 sm:$0xff]   ;;  %vm298_vm1 = vcmask 1043456   ;;  %v660_v2 = vmov 0.0   ;;  %vm661_vm2 = vmmov 0   ;;  %v598_v4 = vld [vmem:[%s231_s9 + $0x18] sm:$0xff]  }
  0x1e   : > { %523 = vmatprep.subr.bf16.mxu0 %v660_v2  ;;  %v300_v3 = vsel %vm298_vm1, %v597_v1, 0  ;;  %533 = vmatprep.mubr.msk.bf16.mxu0 %vm661_vm2, %v660_v2  ;;  %v599_v5 = vld [vmem:[%s231_s9 + $0x10] sm:$0xff]   ;;  %v600_v6 = vld [vmem:[%s231_s9 + $0x8] sm:$0xff]   ;;  %v601_v7 = vld [vmem:[%s231_s9] sm:$0xff]   ;;  %vm294_vm3 = vcmask 588800   ;;  %vm345_vm4 = vcmask 64512  }
  0x1f   : > { %524 = vmatpush3.bf16.msra.mxu0 %v300_v3  ;;  %v602_v8 = vld [vmem:[%s735_s29] sm:$0xff]   ;;  %p509_p11 = scmp.ne.s32.totalorder %s633_s12, 2 }
  0x20   : > { %525 = vmatprep.subr.bf16.mxu0 %v660_v2 }
  0x23   : > { %526 = vmatpush3.bf16.msra.mxu0 %v598_v4  ;;  %v249_v9 = vld [vmem:[#allocation2] sm:$0xff]  ;;  %v250_v13 = vld [vmem:[#allocation2 + $0x8] sm:$0xff] }
  0x24   : > { %527 = vmatprep.subr.bf16.mxu0 %v660_v2 }
  0x27   : > { %528 = vmatpush3.bf16.msra.mxu0 %v599_v5 }
  0x28   : > { %529 = vmatprep.subr.bf16.mxu0 %v660_v2 }
  0x2b   : > { %530 = vmatpush3.bf16.msra.mxu0 %v600_v6 }
  0x2c   : > { %531 = vmatprep.subr.bf16.mxu0 %v660_v2 }
  0x2f   : > { %532 = vmatpush3.bf16.msra.mxu0 %v601_v7 }
  0x32   : > { %534 = vmatmul.mubr.msk.bf16.vlgmr.msra.gmra.mxu0 %vm294_vm3, %v602_v8 }
  0xf2   : > { %v336_v10 = vpop.f32.mrf.mxu0 }
  0xf3   : > { %v343_v11 = vadd.f32 %v336_v10, %v249_v9 }
  0xf4   : > { %v535_v12 = vpop.f32.mrf.mxu0 }
  0xf5   : > { %346 = vst.msk [vmem:[#allocation2] sm:$0xff] %vm345_vm4, %v343_v11  ;;  %351 = sbr.rel (%p509_p11) target bundleno = 264 (0x108), region = 40 }
  0xf6   : > { %v339_v14 = vpop.f32.mrf.mxu0 }
  0xf7   : > { %v344_v15 = vadd.f32 %v339_v14, %v250_v13 }
  0xf8   : > { %v536_v16 = vpop.f32.mrf.mxu0 }
  0xf9   : > { %347 = vst.msk [vmem:[#allocation2 + $0x8] sm:$0xff] %vm345_vm4, %v344_v15 }
  0xfa   : > { %v510_v18 = vld [vmem:[%s778_s2] ss:$0 sm:$0xff]  ;;  %vm373_vm5 = vcmask 60416  }
  0xfc   : > { %v352_v17 = vld [vmem:[#allocation2] sm:$0xff] }
  0xfd   : > { %v361_v20 = vadd.f32 %v510_v18, %v352_v17 }
  0xff   : > { %v363_v22 = vmax.f32 %v361_v20, 0.0 }
 0x100   : > { %v353_v19 = vld [vmem:[#allocation2 + $0x8] sm:$0xff] }
 0x101   : > { %v362_v21 = vadd.f32 %v510_v18, %v353_v19  ;;  %v515_v24 = vpack.c.bf16 %v363_v22, %v363_v22 }
 0x103   : > { %v364_v23 = vmax.f32 %v362_v21, 0.0  ;;  %374 = vst.msk [vmem:[%s745_s24] sm:$0xf] %vm373_vm5, %v515_v24 }
 0x105   : > { %v516_v25 = vpack.c.bf16 %v364_v23, %v364_v23 }
 0x107   : > { %375 = vst.msk [vmem:[%s745_s24 + $0x4] sm:$0xf] %vm373_vm5, %v516_v25 }
 0x108 PF: > { %s13_s18 = sadd.s32 1, %s657_s18   ;;  %s780_s12 = smov %s645_s15 }
 0x109   : > { %p10_p12 = scmp.ge.s32.totalorder %s13_s18, 14   ;;  %s781_s13 = smov %s649_s16 }
 0x10a   : > { %s782_s14 = smov %s653_s17  ;;  %s783_s15 = smov %s787_s19 }
 0x10b   : > { %s784_s16 = smov %s791_s20  ;;  %s785_s17 = smov %s795_s21 }
 0x10c   :  { %12 = sbr.rel (!%p10_p12) target bundleno = 4 (0x4), region = 73 }

// kernel: forward.22
= control target key start
LH: loop header
LB: loop body
LE: loop exit
PB: predicated region body
PF: predicated region fallthrough
CT: control target
= control target key end

     0   :  { %vm66_vm0 = vcmask 261120   ;;  %vm184_vm1 = vcmask 125952   ;;  %s325_s1 = inlined_call_operand.vmem [shape: bf16[32,16], index: 1, kind: input, shape index: {}]   ;;  %s326_s0 = inlined_call_operand.vmem [shape: bf16[64,32], index: 0, kind: input, shape index: {}]   ;;  %s327_s2 = inlined_call_operand.vmem [shape: f32[1,16], index: 2, kind: input, shape index: {}]   ;;  %s328_s3 = inlined_call_operand.vmem [shape: bf16[64,16], index: 3, kind: output, shape index: {}]  }
   0x1   :  { %v246_v0 = vld [vmem:[%s325_s1 + $0x8] sm:$0xff]   ;;  %v247_v1 = vld [vmem:[%s325_s1] sm:$0xff]   ;;  %v249_v3 = vld [vmem:[%s326_s0 + $0x10] sm:$0xff]  }
   0x2   :  { %230 = vmatprep.subr.bf16.mxu0 %v246_v0  ;;  %242 = vmatprep.subr.bf16.mxu1 %v246_v0  ;;  %v248_v2 = vld [vmem:[%s326_s0] sm:$0xff]   ;;  %v250_v4 = vld [vmem:[%s326_s0 + $0x8] sm:$0xff]   ;;  %v251_v5 = vld [vmem:[%s326_s0 + $0x18] sm:$0xff]  }
   0x3   :  { %231 = vmatpush3.bf16.msra.mxu0 %v246_v0  ;;  %244 = vmatpush3.bf16.msra.mxu1 %v246_v0  ;;  %v197_v6 = vld [vmem:[%s327_s2] ss:$0 sm:$0xff] }
   0x4   :  { %232 = vmatprep.subr.bf16.mxu0 %v247_v1  ;;  %243 = vmatprep.subr.bf16.mxu1 %v247_v1 }
   0x5   :  { %234 = vmatprep.mubr.msk.bf16.mxu0 %vm66_vm0, %v248_v2  ;;  %238 = vmatprep.mubr.msk.bf16.mxu1 %vm66_vm0, %v249_v3 }
   0x7   :  { %233 = vmatpush3.bf16.msra.mxu0 %v247_v1  ;;  %245 = vmatpush3.bf16.msra.mxu1 %v247_v1 }
   0xa   :  { %235 = vmatmul.mubr.msk.bf16.vlgmr.msra.gmra.mxu0 %vm66_vm0, %v250_v4  ;;  %239 = vmatmul.mubr.msk.bf16.vlgmr.msra.gmra.mxu1 %vm66_vm0, %v251_v5 }
  0xca   :  { %v236_v7 = vpop.f32.mrf.mxu0  ;;  %v240_v8 = vpop.f32.mrf.mxu1 }
  0xcb   :  { %v122_v9 = vadd.f32 %v236_v7, %v197_v6  ;;  %v138_v10 = vadd.f32 %v240_v8, %v197_v6 }
  0xcc   :  { %v113_v11 = vpop.f32.mrf.mxu0  ;;  %v129_v12 = vpop.f32.mrf.mxu1 }
  0xcd   :  { %v146_v13 = vmax.f32 %v122_v9, 0.0  ;;  %v150_v14 = vmax.f32 %v138_v10, 0.0  ;;  %v114_v15 = vadd.f32 %v197_v6, %v113_v11  ;;  %v130_v16 = vadd.f32 %v197_v6, %v129_v12 }
  0xce   :  { %v237_v17 = vpop.f32.mrf.mxu0  ;;  %v241_v18 = vpop.f32.mrf.mxu1 }
  0xcf   :  { %v218_v19 = vpack.c.bf16 %v146_v13, %v146_v13  ;;  %v222_v20 = vpack.c.bf16 %v150_v14, %v150_v14  ;;  %v144_v21 = vmax.f32 %v114_v15, 0.0  ;;  %v148_v22 = vmax.f32 %v130_v16, 0.0 }
  0xd0   :  { %v125_v23 = vadd.f32 %v237_v17, %v197_v6  ;;  %v141_v24 = vadd.f32 %v241_v18, %v197_v6  ;;  %v116_v25 = vpop.f32.mrf.mxu0  ;;  %v132_v26 = vpop.f32.mrf.mxu1 }
  0xd1   :  { %187 = vst.msk [vmem:[%s328_s3 + $0x8] sm:$0xf] %vm184_vm1, %v218_v19  ;;  %191 = vst.msk [vmem:[%s328_s3 + $0x18] sm:$0xf] %vm184_vm1, %v222_v20  ;;  %v216_v27 = vpack.c.bf16 %v144_v21, %v144_v21  ;;  %v220_v28 = vpack.c.bf16 %v148_v22, %v148_v22  ;;  %v117_v29 = vadd.f32 %v197_v6, %v116_v25 }
  0xd2   :  { %v133_v30 = vadd.f32 %v197_v6, %v132_v26  ;;  %v147_v31 = vmax.f32 %v125_v23, 0.0  ;;  %v151_v32 = vmax.f32 %v141_v24, 0.0 }
  0xd3   :  { %185 = vst.msk [vmem:[%s328_s3] sm:$0xf] %vm184_vm1, %v216_v27  ;;  %189 = vst.msk [vmem:[%s328_s3 + $0x10] sm:$0xf] %vm184_vm1, %v220_v28  ;;  %v145_v33 = vmax.f32 %v117_v29, 0.0 }
  0xd4   :  { %v149_v34 = vmax.f32 %v133_v30, 0.0  ;;  %v219_v35 = vpack.c.bf16 %v147_v31, %v147_v31  ;;  %v223_v36 = vpack.c.bf16 %v151_v32, %v151_v32 }
  0xd5   :  { %v217_v37 = vpack.c.bf16 %v145_v33, %v145_v33 }
  0xd6   :  { %v221_v38 = vpack.c.bf16 %v149_v34, %v149_v34  ;;  %188 = vst.msk [vmem:[%s328_s3 + $0xc] sm:$0xf] %vm184_vm1, %v219_v35  ;;  %192 = vst.msk [vmem:[%s328_s3 + $0x1c] sm:$0xf] %vm184_vm1, %v223_v36 }
  0xd7   :  { %186 = vst.msk [vmem:[%s328_s3 + $0x4] sm:$0xf] %vm184_vm1, %v217_v37 }
  0xd8   :  { %190 = vst.msk [vmem:[%s328_s3 + $0x14] sm:$0xf] %vm184_vm1, %v221_v38 }

// kernel: forward.21
= control target key start
LH: loop header
LB: loop body
LE: loop exit
PB: predicated region body
PF: predicated region fallthrough
CT: control target
= control target key end

     0   :  { %v109_v0 = vmov 0.0   ;;  %vm110_vm0 = vmmov 0   ;;  %vm39_vm1 = vcmask 261120   ;;  %vm84_vm2 = vcmask 519168   ;;  %s146_s1 = inlined_call_operand.vmem [shape: bf16[32,64], index: 1, kind: input, shape index: {}]   ;;  %s147_s0 = inlined_call_operand.vmem [shape: bf16[8,32], index: 0, kind: input, shape index: {}]   ;;  %s148_s2 = inlined_call_operand.vmem [shape: f32[1,64], index: 2, kind: input, shape index: {}]   ;;  %s149_s3 = inlined_call_operand.vmem [shape: bf16[8,64], index: 3, kind: output, shape index: {}]  }
   0x1   :  { %97 = vmatprep.subr.bf16.mxu0 %v109_v0  ;;  %v107_v1 = vld [vmem:[%s146_s1 + $0x8] sm:$0xff]   ;;  %101 = vmatprep.mubr.msk.bf16.mxu0 %vm110_vm0, %v109_v0  ;;  %v108_v2 = vld [vmem:[%s146_s1] sm:$0xff]  }
   0x2   :  { %98 = vmatpush3.bf16.msra.mxu0 %v107_v1  ;;  %v15_v3 = vld [vmem:[%s147_s0] sm:$0xf] }
   0x3   :  { %99 = vmatprep.subr.bf16.mxu0 %v109_v0  ;;  %v90_v4 = vld [vmem:[%s148_s2] ss:$0 sm:$0xff] }
   0x6   :  { %100 = vmatpush3.bf16.msra.mxu0 %v108_v2 }
   0x9   :  { %102 = vmatmul.mubr.msk.bf16.vlgmr.msra.gmra.mxu0 %vm39_vm1, %v15_v3 }
  0xc9   :  { %v77_v5 = vpop.f32.mrf.mxu0 }
  0xca   :  { %v78_v6 = vadd.f32 %v90_v4, %v77_v5 }
  0xcb   :  { %v103_v7 = vpop.f32.mrf.mxu0 }
  0xcc   :  { %v83_v8 = vpack.c.bf16 %v78_v6, %v78_v6 }
  0xcd   :  { %v80_v9 = vpop.f32.mrf.mxu0 }
  0xce   :  { %85 = vst.msk [vmem:[%s149_s3] sm:$0xf] %vm84_vm2, %v83_v8 }
  0xcf   :  { %v104_v10 = vpop.f32.mrf.mxu0 }

// kernel: forward.23
= control target key start
LH: loop header
LB: loop body
LE: loop exit
PB: predicated region body
PF: predicated region fallthrough
CT: control target
= control target key end

     0   :  { %s637_s12 = smov 0   ;;  %s639_s13 = smov 0   ;;  %s716_s0 = inlined_call_operand.vmem [shape: bf16[2,4,4,144], index: 0, kind: input, shape index: {}]   ;;  %s717_s1 = inlined_call_operand.vmem [shape: bf16[3,144,16], index: 1, kind: input, shape index: {}]   ;;  %s718_s2 = inlined_call_operand.vmem [shape: f32[1,16], index: 2, kind: input, shape index: {}]   ;;  %s719_s3 = inlined_call_operand.vmem [shape: bf16[2,1,4,16], index: 3, kind: output, shape index: {}]  }
   0x1   :  { %s641_s14 = smov 0   ;;  %s643_s15 = smov 0  }
   0x2   :  { %s645_s16 = smov 0  }
   0x3 LB: > { %s25_s17 = sadd.s32 1, %s605_s14  ;;  %s32_s18 = sadd.s32 1, %s609_s15  ;;  %s613_s16 = sphi %s645_s16, %s13_s16   ;;  %s609_s15 = sphi %s643_s15, %s723_s15   ;;  %s605_s14 = sphi %s641_s14, %s722_s14   ;;  %s601_s13 = sphi %s639_s13, %s721_s13   ;;  %s597_s12 = sphi %s637_s12, %s720_s12  }
   0x4   : > { %p26_p0 = scmp.ge.s32.totalorder %s25_s17, 3  ;;  %p501_p1 = scmp.ge.s32.totalorder %s613_s16, 1 }
   0x5   : > { %p182_p2 = scmp.lt.s32.totalorder %s613_s16, 7 }
   0x6   : > { %s725_s17 = smov (%p26_p0, %s25_s17), 0  ;;  %s727_s18 = smov (!%p26_p0, %s32_s18), %s609_s15 }
   0x7   : > { %p183_p3 = pnand %p501_p1, %p182_p2  ;;  %p34_p4 = scmp.ge.s32.totalorder %s727_s18, 2 }
   0x8   : > { %p221_p5 = scmp.lt.s32.totalorder (!%p183_p3), %s601_s13, 1  ;;  %p223_p6 = scmp.lt.s32.totalorder (!%p183_p3), %s597_s12, 3 }
   0x9   : > { %s729_s18 = smov (%p34_p4, %s727_s18), 0  ;;  %186 = sbr.rel (%p183_p3) target bundleno = 276 (0x114), region = 32 }
   0xa   : > { %p232_p7 = scmp.lt.s32.totalorder (!%p183_p3), %s597_s12, 2  ;;  %p507_p8 = scmp.ne.s32.totalorder (!%p183_p3), %s597_s12, 0 }
   0xe   : > { %s731_s13 = smov (!%p221_p5, %s601_s13), 1 }
   0xf   : > { %s224_s19 = scalar_select %p223_p6, %s597_s12, 3 }
  0x10   : > { %s503_s20 = sshll.u32 %s731_s13, 3  ;;  %s506_s21 = sshll.u32 %s731_s13, 1 }
  0x11   : > { %s502_s22 = sshll.u32 %s224_s19, 1  ;;  %s675_s25 = scalar_lea.vmem %s719_s3, %s506_s21 }
  0x12   : > { %s227_s26 = sadd.s32 %s503_s20, %s502_s22 }
  0x13   : > { %s504_s27 = sshll.u32 %s227_s26, 1 }
  0x14   : > { %s229_s30 = scalar_lea.vmem %s716_s0, %s504_s27 }
  0x15   : > { %s233_s4 = scalar_select %p232_p7, %s597_s12, 2 }
  0x16   : > { %248 = sbr.rel (%p507_p8) target bundleno = 29 (0x1d), region = 36 }
  0x17   : > { %s523_s5 = smul.u32 72, %s233_s4 }
  0x19   : > { %s684_s8 = scalar_lea.vmem %s717_s1, %s523_s5 }
  0x1b   : > { %vm249_vm0 = vcmask 125952   ;;  %v615_v0 = vmov 0.0  }
  0x1c   : > { %250 = vst.msk [vmem:[#allocation2] sm:$0xf] %vm249_vm0, %v615_v0 }
  0x1d PF: > { %v566_v1 = vld [vmem:[%s684_s8 + $0x38] sm:$0xff]   ;;  %v616_v2 = vmov 0   ;;  %v567_v3 = vld [vmem:[%s684_s8 + $0x30] sm:$0xff]   ;;  %v568_v4 = vld [vmem:[%s684_s8 + $0x28] sm:$0xff]   ;;  %vm335_vm1 = vcmask 130048   ;;  %vm380_vm2 = vcmask 125952  }
  0x1e   : > { %339 = vmatprep.subr.bf16.mxu0 %v616_v2  ;;  %v508_v5 = vld.sshfl [vmem:[%s229_s30] sm:$0x33 pattern:$0x76325410]  ;;  %v570_v8 = vld [vmem:[%s684_s8 + $0x18] sm:$0xff]   ;;  %v571_v9 = vld [vmem:[%s684_s8 + $0x10] sm:$0xff]  }
  0x1f   : > { %340 = vmatpush1.bf16.msra.mxu0 %v566_v1  ;;  %v569_v6 = vld [vmem:[%s684_s8 + $0x20] sm:$0xff]   ;;  %v279_v7 = vcombine.high %v508_v5, %v508_v5  ;;  %v572_v10 = vld [vmem:[%s684_s8 + $0x8] sm:$0xff]   ;;  %p519_p9 = scmp.ne.s32.totalorder %s597_s12, 2 }
  0x20   : > { %341 = vmatprep.subr.bf16.mxu0 %v616_v2  ;;  %v573_v11 = vld [vmem:[%s684_s8] sm:$0xff]  }
  0x21   : > { %518 = vmatprep.mubr.msk.bf16.mxu0 %vm335_vm1, %v279_v7  ;;  %v574_v12 = vld [vmem:[%s684_s8 + $0x40] sm:$0xff]  }
  0x23   : > { %342 = vmatpush1.bf16.msra.mxu0 %v567_v3  ;;  %v251_v13 = vld [vmem:[#allocation2] sm:$0xf] }
  0x24   : > { %343 = vmatprep.subr.bf16.mxu0 %v616_v2 }
  0x27   : > { %344 = vmatpush1.bf16.msra.mxu0 %v568_v4 }
  0x28   : > { %345 = vmatprep.subr.bf16.mxu0 %v616_v2 }
  0x2b   : > { %346 = vmatpush1.bf16.msra.mxu0 %v569_v6 }
  0x2c   : > { %347 = vmatprep.subr.bf16.mxu0 %v616_v2 }
  0x2f   : > { %348 = vmatpush1.bf16.msra.mxu0 %v570_v8 }
  0x30   : > { %349 = vmatprep.subr.bf16.mxu0 %v616_v2 }
  0x33   : > { %350 = vmatpush1.bf16.msra.mxu0 %v571_v9 }
  0x34   : > { %351 = vmatprep.subr.bf16.mxu0 %v616_v2 }
  0x37   : > { %352 = vmatpush1.bf16.msra.mxu0 %v572_v10 }
  0x38   : > { %353 = vmatprep.subr.bf16.mxu0 %v616_v2 }
  0x3b   : > { %354 = vmatpush1.bf16.msra.mxu0 %v573_v11 }
  0x3c   : > { %369 = vmatprep.subr.bf16.mxu0 %v616_v2 }
  0x3f   : > { %370 = vmatpush2.bf16.msra.mxu0 %v574_v12 }
  0x42   : > { %372 = vmatmul.mubr.bf16.vlgmr.msra.gmra.mxu0 %v508_v5 }
 0x102   : > { %v373_v14 = vpop.f32.mrf.mxu0 }
 0x103   : > { %v379_v15 = vadd.f32 %v373_v14, %v251_v13 }
 0x104   : > { %v375_v16 = vpop.f32.mrf.mxu0  ;;  %385 = sbr.rel (%p519_p9) target bundleno = 276 (0x114), region = 40 }
 0x105   : > { %381 = vst.msk [vmem:[#allocation2] sm:$0xf] %vm380_vm2, %v379_v15 }
 0x106   : > { %v376_v17 = vpop.f32.mrf.mxu0 }
 0x108   : > { %v377_v18 = vpop.f32.mrf.mxu0 }
 0x109   : > { %v520_v20 = vld [vmem:[%s718_s2] ss:$0 sm:$0xff]  ;;  %vm397_vm3 = vcmask 123904  }
 0x10c   : > { %v386_v19 = vld [vmem:[#allocation2] sm:$0xf] }
 0x10d   : > { %v394_v21 = vadd.f32 %v520_v20, %v386_v19 }
 0x10f   : > { %v395_v22 = vmax.f32 %v394_v21, 0.0 }
 0x111   : > { %v396_v23 = vpack.c.bf16 %v395_v22, %v395_v22 }
 0x113   : > { %398 = vst.msk [vmem:[%s675_s25] sm:$0x3] %vm397_vm3, %v396_v23 }
 0x114 PF: > { %s13_s16 = sadd.s32 1, %s613_s16   ;;  %s720_s12 = smov %s605_s14 }
 0x115   : > { %p10_p10 = scmp.ge.s32.totalorder %s13_s16, 8   ;;  %s721_s13 = smov %s609_s15 }
 0x116   : > { %s722_s14 = smov %s725_s17  ;;  %s723_s15 = smov %s729_s18 }
 0x117   :  { %12 = sbr.rel (!%p10_p10) target bundleno = 3 (0x3), region = 73 }

// kernel: forward.24
= control target key start
LH: loop header
LB: loop body
LE: loop exit
PB: predicated region body
PF: predicated region fallthrough
CT: control target
= control target key end

     0   :  { %v103_v0 = vmov 0.0   ;;  %vm104_vm0 = vmmov 0   ;;  %vm34_vm1 = vcmask 130048   ;;  %vm83_vm2 = vcmask 519168   ;;  %s145_s1 = inlined_call_operand.vmem [shape: bf16[16,64], index: 1, kind: input, shape index: {}]   ;;  %s146_s0 = inlined_call_operand.vmem [shape: bf16[8,16], index: 0, kind: input, shape index: {}]   ;;  %s147_s3 = inlined_call_operand.vmem [shape: bf16[8,64], index: 3, kind: input, shape index: {}]   ;;  %s148_s2 = inlined_call_operand.vmem [shape: f32[1,64], index: 2, kind: input, shape index: {}]   ;;  %s149_s4 = inlined_call_operand.vmem [shape: bf16[8,64], index: 4, kind: output, shape index: {}]  }
   0x1   :  { %94 = vmatprep.subr.bf16.mxu0 %v103_v0  ;;  %v102_v1 = vld [vmem:[%s145_s1] sm:$0xff]   ;;  %96 = vmatprep.mubr.msk.bf16.mxu0 %vm104_vm0, %v103_v0 }
   0x2   :  { %95 = vmatpush3.bf16.msra.mxu0 %v102_v1  ;;  %v18_v2 = vld [vmem:[%s146_s0] sm:$0xf] }
   0x3   :  { %v78_v3 = vld [vmem:[%s147_s3] sm:$0xf] }
   0x4   :  { %v89_v4 = vld [vmem:[%s148_s2] ss:$0 sm:$0xff]  ;;  %v79_v5 = vunpack.c.l.bf16 %v78_v3 }
   0x5   :  { %97 = vmatmul.mubr.msk.bf16.vlgmr.msra.gmra.mxu0 %vm34_vm1, %v18_v2 }
  0xc5   :  { %v72_v6 = vpop.f32.mrf.mxu0 }
  0xc6   :  { %v73_v7 = vadd.f32 %v89_v4, %v72_v6 }
  0xc7   :  { %v98_v8 = vpop.f32.mrf.mxu0 }
  0xc8   :  { %v80_v9 = vadd.f32 %v79_v5, %v73_v7 }
  0xc9   :  { %v75_v10 = vpop.f32.mrf.mxu0 }
  0xca   :  { %v81_v11 = vmax.f32 %v80_v9, 0.0 }
  0xcb   :  { %v99_v12 = vpop.f32.mrf.mxu0 }
  0xcc   :  { %v82_v13 = vpack.c.bf16 %v81_v11, %v81_v11 }
  0xce   :  { %84 = vst.msk [vmem:[%s149_s4] sm:$0xf] %vm83_vm2, %v82_v13 }

// kernel: forward.26
= control target key start
LH: loop header
LB: loop body
LE: loop exit
PB: predicated region body
PF: predicated region fallthrough
CT: control target
= control target key end

     0   :  { %v136_v0 = vmov 0.0   ;;  %vm137_vm0 = vmmov 0   ;;  %vm55_vm1 = vcmask 523264   ;;  %vm101_vm2 = vcmask 257024   ;;  %s179_s1 = inlined_call_operand.vmem [shape: bf16[64,32], index: 1, kind: input, shape index: {}]   ;;  %s180_s0 = inlined_call_operand.vmem [shape: bf16[8,64], index: 0, kind: input, shape index: {}]   ;;  %s181_s2 = inlined_call_operand.vmem [shape: f32[1,32], index: 2, kind: input, shape index: {}]   ;;  %s182_s3 = inlined_call_operand.vmem [shape: bf16[8,32], index: 3, kind: output, shape index: {}]  }
   0x1   :  { %118 = vmatprep.subr.bf16.mxu0 %v136_v0  ;;  %v132_v1 = vld [vmem:[%s179_s1 + $0x18] sm:$0xff]   ;;  %126 = vmatprep.mubr.msk.bf16.mxu0 %vm137_vm0, %v136_v0  ;;  %v133_v2 = vld [vmem:[%s179_s1 + $0x10] sm:$0xff]   ;;  %v134_v3 = vld [vmem:[%s179_s1 + $0x8] sm:$0xff]  }
   0x2   :  { %119 = vmatpush3.bf16.msra.mxu0 %v132_v1  ;;  %v135_v4 = vld [vmem:[%s179_s1] sm:$0xff]  }
   0x3   :  { %120 = vmatprep.subr.bf16.mxu0 %v136_v0  ;;  %v15_v5 = vld [vmem:[%s180_s0] sm:$0xf] }
   0x4   :  { %v107_v6 = vld [vmem:[%s181_s2] ss:$0 sm:$0xff] }
   0x6   :  { %121 = vmatpush3.bf16.msra.mxu0 %v133_v2 }
   0x7   :  { %122 = vmatprep.subr.bf16.mxu0 %v136_v0 }
   0xa   :  { %123 = vmatpush3.bf16.msra.mxu0 %v134_v3 }
   0xb   :  { %124 = vmatprep.subr.bf16.mxu0 %v136_v0 }
   0xe   :  { %125 = vmatpush3.bf16.msra.mxu0 %v135_v4 }
  0x11   :  { %127 = vmatmul.mubr.msk.bf16.vlgmr.msra.gmra.mxu0 %vm55_vm1, %v15_v5 }
  0xd1   :  { %v93_v7 = vpop.f32.mrf.mxu0 }
  0xd2   :  { %v94_v8 = vadd.f32 %v107_v6, %v93_v7 }
  0xd3   :  { %v128_v9 = vpop.f32.mrf.mxu0 }
  0xd4   :  { %v99_v10 = vmax.f32 %v94_v8, 0.0 }
  0xd5   :  { %v96_v11 = vpop.f32.mrf.mxu0 }
  0xd6   :  { %v100_v12 = vpack.c.bf16 %v99_v10, %v99_v10 }
  0xd7   :  { %v129_v13 = vpop.f32.mrf.mxu0 }
  0xd8   :  { %102 = vst.msk [vmem:[%s182_s3] sm:$0xf] %vm101_vm2, %v100_v12 }

// kernel: forward.28
= control target key start
LH: loop header
LB: loop body
LE: loop exit
PB: predicated region body
PF: predicated region fallthrough
CT: control target
= control target key end

     0   :  { %v115_v0 = vmov 0.0   ;;  %vm116_vm0 = vmmov 0   ;;  %vm42_vm1 = vcmask 261120   ;;  %s160_s1 = inlined_call_operand.vmem [shape: bf16[32,128], index: 1, kind: input, shape index: {}]   ;;  %s161_s0 = inlined_call_operand.vmem [shape: bf16[2,32], index: 0, kind: input, shape index: {}]   ;;  %s162_s3 = inlined_call_operand.vmem [shape: bf16[2,128], index: 3, kind: input, shape index: {}]   ;;  %s163_s2 = inlined_call_operand.vmem [shape: f32[1,128], index: 2, kind: input, shape index: {}]   ;;  %s164_s4 = inlined_call_operand.vmem [shape: bf16[2,128], index: 4, kind: output, shape index: {}]  }
   0x1   :  { %103 = vmatprep.subr.bf16.mxu0 %v115_v0  ;;  %v113_v1 = vld [vmem:[%s160_s1 + $0x8] sm:$0xff]   ;;  %107 = vmatprep.mubr.msk.bf16.mxu0 %vm116_vm0, %v115_v0  ;;  %v114_v2 = vld [vmem:[%s160_s1] sm:$0xff]  }
   0x2   :  { %104 = vmatpush3.bf16.msra.mxu0 %v113_v1  ;;  %v18_v3 = vld [vmem:[%s161_s0] sm:$0x1] }
   0x3   :  { %105 = vmatprep.subr.bf16.mxu0 %v115_v0  ;;  %v86_v4 = vld [vmem:[%s162_s3] sm:$0x1] }
   0x4   :  { %v96_v5 = vld [vmem:[%s163_s2] ss:$0 sm:$0xff]  ;;  %v87_v6 = vunpack.c.l.bf16 %v86_v4 }
   0x6   :  { %106 = vmatpush3.bf16.msra.mxu0 %v114_v2 }
   0x9   :  { %108 = vmatmul.mubr.msk.bf16.vlgmr.msra.gmra.mxu0 %vm42_vm1, %v18_v3 }
  0xc9   :  { %v80_v7 = vpop.f32.mrf.mxu0 }
  0xca   :  { %v81_v8 = vadd.f32 %v96_v5, %v80_v7 }
  0xcb   :  { %v109_v9 = vpop.f32.mrf.mxu0 }
  0xcc   :  { %v88_v10 = vadd.f32 %v87_v6, %v81_v8 }
  0xcd   :  { %v83_v11 = vpop.f32.mrf.mxu0 }
  0xce   :  { %v89_v12 = vmax.f32 %v88_v10, 0.0 }
  0xcf   :  { %v110_v13 = vpop.f32.mrf.mxu0 }
  0xd0   :  { %v90_v14 = vpack.c.bf16 %v89_v12, %v89_v12 }
  0xd2   :  { %91 = vst [vmem:[%s164_s4] sm:$0x1] %v90_v14 }

// kernel: forward.27
= control target key start
LH: loop header
LB: loop body
LE: loop exit
PB: predicated region body
PF: predicated region fallthrough
CT: control target
= control target key end

     0   :  { %s801_s12 = smov 0   ;;  %s803_s13 = smov 0   ;;  %s896_s0 = inlined_call_operand.vmem [shape: bf16[2,3,1,288], index: 0, kind: input, shape index: {}]   ;;  %s897_s1 = inlined_call_operand.vmem [shape: bf16[3,288,32], index: 1, kind: input, shape index: {}]   ;;  %s898_s2 = inlined_call_operand.vmem [shape: f32[1,32], index: 2, kind: input, shape index: {}]   ;;  %s899_s3 = inlined_call_operand.vmem [shape: bf16[2,1,1,32], index: 3, kind: output, shape index: {}]  }
   0x1   :  { %s805_s14 = smov 0   ;;  %s807_s15 = smov 0  }
   0x2   :  { %s809_s16 = smov 0  }
   0x3 LB: > { %s25_s17 = sadd.s32 1, %s767_s14  ;;  %s32_s18 = sadd.s32 1, %s771_s15  ;;  %s775_s16 = sphi %s809_s16, %s13_s16   ;;  %s771_s15 = sphi %s807_s15, %s903_s15   ;;  %s767_s14 = sphi %s805_s14, %s902_s14   ;;  %s763_s13 = sphi %s803_s13, %s901_s13   ;;  %s759_s12 = sphi %s801_s12, %s900_s12  }
   0x4   : > { %p26_p0 = scmp.ge.s32.totalorder %s25_s17, 3  ;;  %p613_p1 = scmp.ge.s32.totalorder %s775_s16, 1 }
   0x5   : > { %p181_p2 = scmp.lt.s32.totalorder %s775_s16, 7 }
   0x6   : > { %s905_s17 = smov (%p26_p0, %s25_s17), 0  ;;  %s907_s18 = smov (!%p26_p0, %s32_s18), %s771_s15 }
   0x7   : > { %p182_p3 = pnand %p613_p1, %p181_p2  ;;  %p34_p4 = scmp.ge.s32.totalorder %s907_s18, 2 }
   0x8   : > { %p218_p5 = scmp.lt.s32.totalorder (!%p182_p3), %s763_s13, 1  ;;  %p220_p6 = scmp.lt.s32.totalorder (!%p182_p3), %s759_s12, 2 }
   0x9   : > { %s909_s18 = smov (%p34_p4, %s907_s18), 0  ;;  %185 = sbr.rel (%p182_p3) target bundleno = 276 (0x114), region = 32 }
   0xa   : > { %p615_p7 = scmp.ne.s32.totalorder (!%p182_p3), %s759_s12, 0 }
   0xe   : > { %s911_s13 = smov (!%p218_p5, %s763_s13), 1 }
   0xf   : > { %s221_s19 = scalar_select %p220_p6, %s759_s12, 2 }
  0x10   : > { %s673_s20 = smul.u32 9, %s911_s13  ;;  %s838_s23 = scalar_lea.vmem %s899_s3, %s911_s13 }
  0x11   : > { %s672_s24 = smul.u32 3, %s221_s19 }
  0x12   : > { %s674_s25 = smul.u32 144, %s221_s19 }
  0x13   : > { %s840_s26 = sadd.s32 %s673_s20, %s672_s24  ;;  %243 = sbr.rel (%p615_p7) target bundleno = 26 (0x1a), region = 36 }
  0x14   : > { %s225_s29 = scalar_lea.vmem %s896_s0, %s840_s26  ;;  %s849_s5 = scalar_lea.vmem %s897_s1, %s674_s25 }
  0x18   : > { %vm244_vm0 = vcmask 253952   ;;  %v777_v0 = vmov 0.0  }
  0x19   : > { %245 = vst.msk [vmem:[#allocation2] sm:$0x1] %vm244_vm0, %v777_v0 }
  0x1a PF: > { %v719_v1 = vld [vmem:[%s849_s5 + $0x78] sm:$0xff]   ;;  %v778_v3 = vmov 0.0   ;;  %v721_v4 = vld [vmem:[%s849_s5 + $0x70] sm:$0xff]   ;;  %vm779_vm1 = vmmov 0   ;;  %v723_v6 = vld [vmem:[%s849_s5 + $0x68] sm:$0xff]   ;;  %v296_v14 = vlaneseq  ;;  %vm418_vm2 = vcmask 261120  }
  0x1b   : > { %v720_v2 = vld [vmem:[%s849_s5 + $0x38] sm:$0xff]   ;;  %664 = vmatprep.subr.bf16.mxu1 %v778_v3  ;;  %639 = vmatprep.subr.bf16.mxu0 %v719_v1  ;;  %v722_v5 = vld [vmem:[%s849_s5 + $0x30] sm:$0xff]   ;;  %v724_v7 = vld [vmem:[%s849_s5 + $0x28] sm:$0xff]   ;;  %v780_v17 = vmov 1966171168   ;;  %vm503_vm3 = vcmask 253952  }
  0x1c   : > { %668 = vmatprep.mubr.msk.bf16.mxu1 %vm779_vm1, %v778_v3  ;;  %640 = vmatpush3.bf16.msra.mxu0 %v720_v2  ;;  %v725_v8 = vld [vmem:[%s849_s5 + $0x60] sm:$0xff]   ;;  %v727_v10 = vld [vmem:[%s849_s5 + $0x58] sm:$0xff]   ;;  %v731_v11 = vld [vmem:[%s849_s5 + $0x88] sm:$0xff]   ;;  %v294_v18 = vunpack.c.l.s4 %v780_v17  ;;  %v297_v19 = vshrl.u32 %v296_v14, 7  ;;  %p636_p8 = scmp.ne.s32.totalorder %s759_s12, 2 }
  0x1d   : > { %641 = vmatprep.subr.bf16.mxu0 %v721_v4  ;;  %v726_v9 = vld [vmem:[%s849_s5 + $0x20] sm:$0xff]   ;;  %v728_v12 = vld [vmem:[%s849_s5 + $0x18] sm:$0xff]   ;;  %665 = vmatpush3.bf16.msra.mxu1 %v731_v11  ;;  %v729_v15 = vld [vmem:[%s849_s5 + $0x50] sm:$0xff]  }
  0x1e   : > { %666 = vmatprep.subr.bf16.mxu1 %v778_v3  ;;  %v734_v13 = vld [vmem:[%s849_s5 + $0x80] sm:$0xff]   ;;  %v730_v16 = vld [vmem:[%s849_s5 + $0x10] sm:$0xff]   ;;  %v732_v20 = vld [vmem:[%s849_s5 + $0x48] sm:$0xff]   ;;  %v295_v22 = vunpack.c.0.s8 %v294_v18 }
  0x1f   : > { %v616_v21 = vld.sshfl [vmem:[%s225_s29] sm:$0x13 pattern:$0x75316420]  ;;  %v733_v24 = vld [vmem:[%s849_s5 + $0x8] sm:$0xff]  }
  0x20   : > { %642 = vmatpush3.bf16.msra.mxu0 %v722_v5  ;;  %v292_v23 = vcombine.high %v616_v21, %v616_v21  ;;  %v298_v25 = vsub.s32 %v295_v22, %v297_v19  ;;  %v735_v26 = vld [vmem:[%s849_s5 + $0x40] sm:$0xff]  }
  0x21   : > { %643 = vmatprep.subr.bf16.mxu0 %v723_v6  ;;  %667 = vmatpush3.bf16.msra.mxu1 %v734_v13  ;;  %v736_v29 = vld [vmem:[%s849_s5] sm:$0xff]  }
  0x22   : > { %v299_v27 = vrot.slane %v616_v21, %v298_v25  ;;  %v306_v28 = vrot.slane %v292_v23, %v298_v25  ;;  %v246_v38 = vld [vmem:[#allocation2] sm:$0x1] }
  0x24   : > { %644 = vmatpush3.bf16.msra.mxu0 %v724_v7  ;;  %v307_v30 = vcombine.high %v299_v27, %v299_v27  ;;  %454 = vmatprep.mubr.bf16.mxu0 %v306_v28 }
  0x25   : > { %645 = vmatprep.subr.bf16.mxu0 %v725_v8 }
  0x26   : > { %669 = vmatmul.mubr.msk.bf16.vlgmr.msra.gmra.mxu1 %vm418_vm2, %v307_v30 }
  0x28   : > { %646 = vmatpush3.bf16.msra.mxu0 %v726_v9 }
  0x29   : > { %647 = vmatprep.subr.bf16.mxu0 %v727_v10 }
  0x2c   : > { %648 = vmatpush3.bf16.msra.mxu0 %v728_v12 }
  0x2d   : > { %649 = vmatprep.subr.bf16.mxu0 %v729_v15 }
  0x30   : > { %650 = vmatpush3.bf16.msra.mxu0 %v730_v16 }
  0x31   : > { %651 = vmatprep.subr.bf16.mxu0 %v732_v20 }
  0x34   : > { %652 = vmatpush3.bf16.msra.mxu0 %v733_v24 }
  0x35   : > { %653 = vmatprep.subr.bf16.mxu0 %v735_v26 }
  0x38   : > { %654 = vmatpush3.bf16.msra.mxu0 %v736_v29 }
  0x3b   : > { %455 = vmatmul.mubr.bf16.vlgmr.msra.gmra.mxu0 %v299_v27 }
  0xe6   : > { %v496_v31 = vpop.f32.mrf.mxu1 }
  0xe8   : > { %v670_v32 = vpop.f32.mrf.mxu1 }
  0xea   : > { %v499_v33 = vpop.f32.mrf.mxu1 }
  0xec   : > { %v671_v35 = vpop.f32.mrf.mxu1 }
  0xfb   : > { %v655_v34 = vpop.f32.mrf.mxu0 }
  0xfd   : > { %v656_v36 = vpop.f32.mrf.mxu0 }
  0xfe   : > { %v657_v37 = vadd.f32 %v656_v36, %v655_v34 }
  0xff   : > { %v658_v39 = vpop.f32.mrf.mxu0 }
 0x100   : > { %v497_v40 = vadd.f32 %v657_v37, %v496_v31  ;;  %508 = sbr.rel (%p636_p8) target bundleno = 276 (0x114), region = 40 }
 0x101   : > { %v659_v41 = vpop.f32.mrf.mxu0 }
 0x102   : > { %v502_v42 = vadd.f32 %v497_v40, %v246_v38 }
 0x104   : > { %504 = vst.msk [vmem:[#allocation2] sm:$0x1] %vm503_vm3, %v502_v42 }
 0x105   : > { %v510_v44 = vld [vmem:[%s898_s2] sm:$0x1]  ;;  %vm515_vm4 = vsmask.f32 256 }
 0x106   : > { %vm516_vm5 = vmand %vm503_vm3, %vm515_vm4  ;;  %v517_v47 = vld [vmem:[%s838_s23] sm:$0x1] }
 0x10b   : > { %v509_v43 = vld [vmem:[#allocation2] sm:$0x1] }
 0x10c   : > { %v511_v45 = vadd.f32 %v510_v44, %v509_v43 }
 0x10e   : > { %v512_v46 = vmax.f32 %v511_v45, 0.0 }
 0x110   : > { %v513_v48 = vpack.c.bf16 %v512_v46, %v512_v46 }
 0x112   : > { %v518_v49 = vsel %vm516_vm5, %v513_v48, %v517_v47 }
 0x113   : > { %519 = vst [vmem:[%s838_s23] sm:$0x1] %v518_v49 }
 0x114 PF: > { %s13_s16 = sadd.s32 1, %s775_s16   ;;  %s900_s12 = smov %s767_s14 }
 0x115   : > { %p10_p9 = scmp.ge.s32.totalorder %s13_s16, 8   ;;  %s901_s13 = smov %s771_s15 }
 0x116   : > { %s902_s14 = smov %s905_s17  ;;  %s903_s15 = smov %s909_s18 }
 0x117   :  { %12 = sbr.rel (!%p10_p9) target bundleno = 3 (0x3), region = 73 }

// kernel: forward.25
= control target key start
LH: loop header
LB: loop body
LE: loop exit
PB: predicated region body
PF: predicated region fallthrough
CT: control target
= control target key end

     0   :  { %v134_v0 = vmov 0.0   ;;  %vm135_vm0 = vmmov 0   ;;  %vm55_vm1 = vcmask 523264   ;;  %s177_s1 = inlined_call_operand.vmem [shape: bf16[64,128], index: 1, kind: input, shape index: {}]   ;;  %s178_s0 = inlined_call_operand.vmem [shape: bf16[2,64], index: 0, kind: input, shape index: {}]   ;;  %s179_s2 = inlined_call_operand.vmem [shape: f32[1,128], index: 2, kind: input, shape index: {}]   ;;  %s180_s3 = inlined_call_operand.vmem [shape: bf16[2,128], index: 3, kind: output, shape index: {}]  }
   0x1   :  { %116 = vmatprep.subr.bf16.mxu0 %v134_v0  ;;  %v130_v1 = vld [vmem:[%s177_s1 + $0x18] sm:$0xff]   ;;  %124 = vmatprep.mubr.msk.bf16.mxu0 %vm135_vm0, %v134_v0  ;;  %v131_v2 = vld [vmem:[%s177_s1 + $0x10] sm:$0xff]   ;;  %v132_v3 = vld [vmem:[%s177_s1 + $0x8] sm:$0xff]  }
   0x2   :  { %117 = vmatpush3.bf16.msra.mxu0 %v130_v1  ;;  %v133_v4 = vld [vmem:[%s177_s1] sm:$0xff]  }
   0x3   :  { %118 = vmatprep.subr.bf16.mxu0 %v134_v0  ;;  %v15_v5 = vld [vmem:[%s178_s0] sm:$0x1] }
   0x4   :  { %v105_v6 = vld [vmem:[%s179_s2] ss:$0 sm:$0xff] }
   0x6   :  { %119 = vmatpush3.bf16.msra.mxu0 %v131_v2 }
   0x7   :  { %120 = vmatprep.subr.bf16.mxu0 %v134_v0 }
   0xa   :  { %121 = vmatpush3.bf16.msra.mxu0 %v132_v3 }
   0xb   :  { %122 = vmatprep.subr.bf16.mxu0 %v134_v0 }
   0xe   :  { %123 = vmatpush3.bf16.msra.mxu0 %v133_v4 }
  0x11   :  { %125 = vmatmul.mubr.msk.bf16.vlgmr.msra.gmra.mxu0 %vm55_vm1, %v15_v5 }
  0xd1   :  { %v93_v7 = vpop.f32.mrf.mxu0 }
  0xd2   :  { %v94_v8 = vadd.f32 %v105_v6, %v93_v7 }
  0xd3   :  { %v126_v9 = vpop.f32.mrf.mxu0 }
  0xd4   :  { %v99_v10 = vpack.c.bf16 %v94_v8, %v94_v8 }
  0xd5   :  { %v96_v11 = vpop.f32.mrf.mxu0 }
  0xd6   :  { %100 = vst [vmem:[%s180_s3] sm:$0x1] %v99_v10 }
  0xd7   :  { %v127_v12 = vpop.f32.mrf.mxu0 }

// kernel: forward.29
= control target key start
LH: loop header
LB: loop body
LE: loop exit
PB: predicated region body
PF: predicated region fallthrough
CT: control target
= control target key end

     0   :  { %v183_v0 = vmov 0.0   ;;  %vm184_vm0 = vmmov 0   ;;  %vm129_vm1 = vcmask 253952   ;;  %s238_s1 = inlined_call_operand.vmem [shape: bf16[128,32], index: 1, kind: input, shape index: {}]   ;;  %s239_s0 = inlined_call_operand.vmem [shape: bf16[2,128], index: 0, kind: input, shape index: {}]   ;;  %s240_s2 = inlined_call_operand.vmem [shape: f32[1,32], index: 2, kind: input, shape index: {}]   ;;  %s241_s3 = inlined_call_operand.vmem [shape: bf16[2,32], index: 3, kind: output, shape index: {}]  }
   0x1   :  { %153 = vmatprep.subr.bf16.mxu0 %v183_v0  ;;  %v175_v1 = vld [vmem:[%s238_s1 + $0x38] sm:$0xff]   ;;  %169 = vmatprep.mubr.msk.bf16.mxu0 %vm184_vm0, %v183_v0  ;;  %v176_v2 = vld [vmem:[%s238_s1 + $0x30] sm:$0xff]   ;;  %v177_v3 = vld [vmem:[%s238_s1 + $0x28] sm:$0xff]  }
   0x2   :  { %154 = vmatpush3.bf16.msra.mxu0 %v175_v1  ;;  %v178_v4 = vld [vmem:[%s238_s1 + $0x20] sm:$0xff]   ;;  %v179_v5 = vld [vmem:[%s238_s1 + $0x18] sm:$0xff]   ;;  %v180_v6 = vld [vmem:[%s238_s1 + $0x10] sm:$0xff]  }
   0x3   :  { %155 = vmatprep.subr.bf16.mxu0 %v183_v0  ;;  %v181_v7 = vld [vmem:[%s238_s1 + $0x8] sm:$0xff]   ;;  %v182_v8 = vld [vmem:[%s238_s1] sm:$0xff]  }
   0x4   :  { %v15_v9 = vld [vmem:[%s239_s0] sm:$0x1] }
   0x5   :  { %v135_v10 = vld [vmem:[%s240_s2] ss:$0 sm:$0xff] }
   0x6   :  { %156 = vmatpush3.bf16.msra.mxu0 %v176_v2 }
   0x7   :  { %157 = vmatprep.subr.bf16.mxu0 %v183_v0 }
   0xa   :  { %158 = vmatpush3.bf16.msra.mxu0 %v177_v3 }
   0xb   :  { %159 = vmatprep.subr.bf16.mxu0 %v183_v0 }
   0xe   :  { %160 = vmatpush3.bf16.msra.mxu0 %v178_v4 }
   0xf   :  { %161 = vmatprep.subr.bf16.mxu0 %v183_v0 }
  0x12   :  { %162 = vmatpush3.bf16.msra.mxu0 %v179_v5 }
  0x13   :  { %163 = vmatprep.subr.bf16.mxu0 %v183_v0 }
  0x16   :  { %164 = vmatpush3.bf16.msra.mxu0 %v180_v6 }
  0x17   :  { %165 = vmatprep.subr.bf16.mxu0 %v183_v0 }
  0x1a   :  { %166 = vmatpush3.bf16.msra.mxu0 %v181_v7 }
  0x1b   :  { %167 = vmatprep.subr.bf16.mxu0 %v183_v0 }
  0x1e   :  { %168 = vmatpush3.bf16.msra.mxu0 %v182_v8 }
  0x21   :  { %170 = vmatmul.mubr.bf16.vlgmr.msra.gmra.mxu0 %v15_v9 }
  0xe1   :  { %v121_v11 = vpop.f32.mrf.mxu0 }
  0xe2   :  { %v122_v12 = vadd.f32 %v135_v10, %v121_v11 }
  0xe3   :  { %v171_v13 = vpop.f32.mrf.mxu0 }
  0xe4   :  { %v127_v14 = vmax.f32 %v122_v12, 0.0 }
  0xe5   :  { %v124_v15 = vpop.f32.mrf.mxu0 }
  0xe6   :  { %v128_v16 = vpack.c.bf16 %v127_v14, %v127_v14 }
  0xe7   :  { %v172_v17 = vpop.f32.mrf.mxu0 }
  0xe8   :  { %130 = vst.msk [vmem:[%s241_s3] sm:$0x1] %vm129_vm1, %v128_v16 }

// kernel: forward.30
= control target key start
LH: loop header
LB: loop body
LE: loop exit
PB: predicated region body
PF: predicated region fallthrough
CT: control target
= control target key end

     0   :  { %s794_s12 = smov 0   ;;  %s796_s13 = smov 0   ;;  %s889_s0 = inlined_call_operand.vmem [shape: bf16[2,3,1,288], index: 0, kind: input, shape index: {}]   ;;  %s890_s1 = inlined_call_operand.vmem [shape: bf16[3,288,32], index: 1, kind: input, shape index: {}]   ;;  %s891_s2 = inlined_call_operand.vmem [shape: f32[1,32], index: 2, kind: input, shape index: {}]   ;;  %s892_s3 = inlined_call_operand.vmem [shape: bf16[2,1,1,32], index: 3, kind: output, shape index: {}]  }
   0x1   :  { %s798_s14 = smov 0   ;;  %s800_s15 = smov 0  }
   0x2   :  { %s802_s16 = smov 0  }
   0x3 LB: > { %s25_s17 = sadd.s32 1, %s760_s14  ;;  %s32_s18 = sadd.s32 1, %s764_s15  ;;  %s768_s16 = sphi %s802_s16, %s13_s16   ;;  %s764_s15 = sphi %s800_s15, %s896_s15   ;;  %s760_s14 = sphi %s798_s14, %s895_s14   ;;  %s756_s13 = sphi %s796_s13, %s894_s13   ;;  %s752_s12 = sphi %s794_s12, %s893_s12  }
   0x4   : > { %p26_p0 = scmp.ge.s32.totalorder %s25_s17, 3  ;;  %p606_p1 = scmp.ge.s32.totalorder %s768_s16, 1 }
   0x5   : > { %p177_p2 = scmp.lt.s32.totalorder %s768_s16, 7 }
   0x6   : > { %s898_s17 = smov (%p26_p0, %s25_s17), 0  ;;  %s900_s18 = smov (!%p26_p0, %s32_s18), %s764_s15 }
   0x7   : > { %p178_p3 = pnand %p606_p1, %p177_p2  ;;  %p34_p4 = scmp.ge.s32.totalorder %s900_s18, 2 }
   0x8   : > { %p212_p5 = scmp.lt.s32.totalorder (!%p178_p3), %s756_s13, 1  ;;  %p214_p6 = scmp.lt.s32.totalorder (!%p178_p3), %s752_s12, 2 }
   0x9   : > { %s902_s18 = smov (%p34_p4, %s900_s18), 0  ;;  %181 = sbr.rel (%p178_p3) target bundleno = 276 (0x114), region = 32 }
   0xa   : > { %p608_p7 = scmp.ne.s32.totalorder (!%p178_p3), %s752_s12, 0 }
   0xe   : > { %s904_s13 = smov (!%p212_p5, %s756_s13), 1 }
   0xf   : > { %s215_s19 = scalar_select %p214_p6, %s752_s12, 2 }
  0x10   : > { %s666_s20 = smul.u32 9, %s904_s13  ;;  %s831_s23 = scalar_lea.vmem %s892_s3, %s904_s13 }
  0x11   : > { %s665_s24 = smul.u32 3, %s215_s19 }
  0x12   : > { %s667_s25 = smul.u32 144, %s215_s19 }
  0x13   : > { %s833_s26 = sadd.s32 %s666_s20, %s665_s24  ;;  %236 = sbr.rel (%p608_p7) target bundleno = 26 (0x1a), region = 36 }
  0x14   : > { %s219_s29 = scalar_lea.vmem %s889_s0, %s833_s26  ;;  %s842_s5 = scalar_lea.vmem %s890_s1, %s667_s25 }
  0x18   : > { %vm237_vm0 = vcmask 253952   ;;  %v770_v0 = vmov 0.0  }
  0x19   : > { %238 = vst.msk [vmem:[#allocation2] sm:$0x1] %vm237_vm0, %v770_v0 }
  0x1a PF: > { %v712_v1 = vld [vmem:[%s842_s5 + $0x78] sm:$0xff]   ;;  %v771_v3 = vmov 0.0   ;;  %v714_v4 = vld [vmem:[%s842_s5 + $0x70] sm:$0xff]   ;;  %vm772_vm1 = vmmov 0   ;;  %v716_v6 = vld [vmem:[%s842_s5 + $0x68] sm:$0xff]   ;;  %v289_v14 = vlaneseq  ;;  %vm411_vm2 = vcmask 261120  }
  0x1b   : > { %v713_v2 = vld [vmem:[%s842_s5 + $0x38] sm:$0xff]   ;;  %657 = vmatprep.subr.bf16.mxu1 %v771_v3  ;;  %632 = vmatprep.subr.bf16.mxu0 %v712_v1  ;;  %v715_v5 = vld [vmem:[%s842_s5 + $0x30] sm:$0xff]   ;;  %v717_v7 = vld [vmem:[%s842_s5 + $0x28] sm:$0xff]   ;;  %v773_v17 = vmov 1966171168   ;;  %vm496_vm3 = vcmask 253952  }
  0x1c   : > { %661 = vmatprep.mubr.msk.bf16.mxu1 %vm772_vm1, %v771_v3  ;;  %633 = vmatpush3.bf16.msra.mxu0 %v713_v2  ;;  %v718_v8 = vld [vmem:[%s842_s5 + $0x60] sm:$0xff]   ;;  %v720_v10 = vld [vmem:[%s842_s5 + $0x58] sm:$0xff]   ;;  %v724_v11 = vld [vmem:[%s842_s5 + $0x88] sm:$0xff]   ;;  %v287_v18 = vunpack.c.l.s4 %v773_v17  ;;  %v290_v19 = vshrl.u32 %v289_v14, 7  ;;  %p629_p8 = scmp.ne.s32.totalorder %s752_s12, 2 }
  0x1d   : > { %634 = vmatprep.subr.bf16.mxu0 %v714_v4  ;;  %v719_v9 = vld [vmem:[%s842_s5 + $0x20] sm:$0xff]   ;;  %v721_v12 = vld [vmem:[%s842_s5 + $0x18] sm:$0xff]   ;;  %658 = vmatpush3.bf16.msra.mxu1 %v724_v11  ;;  %v722_v15 = vld [vmem:[%s842_s5 + $0x50] sm:$0xff]  }
  0x1e   : > { %659 = vmatprep.subr.bf16.mxu1 %v771_v3  ;;  %v727_v13 = vld [vmem:[%s842_s5 + $0x80] sm:$0xff]   ;;  %v723_v16 = vld [vmem:[%s842_s5 + $0x10] sm:$0xff]   ;;  %v725_v20 = vld [vmem:[%s842_s5 + $0x48] sm:$0xff]   ;;  %v288_v22 = vunpack.c.0.s8 %v287_v18 }
  0x1f   : > { %v609_v21 = vld.sshfl [vmem:[%s219_s29] sm:$0x13 pattern:$0x75316420]  ;;  %v726_v24 = vld [vmem:[%s842_s5 + $0x8] sm:$0xff]  }
  0x20   : > { %635 = vmatpush3.bf16.msra.mxu0 %v715_v5  ;;  %v285_v23 = vcombine.high %v609_v21, %v609_v21  ;;  %v291_v25 = vsub.s32 %v288_v22, %v290_v19  ;;  %v728_v26 = vld [vmem:[%s842_s5 + $0x40] sm:$0xff]  }
  0x21   : > { %636 = vmatprep.subr.bf16.mxu0 %v716_v6  ;;  %660 = vmatpush3.bf16.msra.mxu1 %v727_v13  ;;  %v729_v29 = vld [vmem:[%s842_s5] sm:$0xff]  }
  0x22   : > { %v292_v27 = vrot.slane %v609_v21, %v291_v25  ;;  %v299_v28 = vrot.slane %v285_v23, %v291_v25  ;;  %v239_v38 = vld [vmem:[#allocation2] sm:$0x1] }
  0x24   : > { %637 = vmatpush3.bf16.msra.mxu0 %v717_v7  ;;  %v300_v30 = vcombine.high %v292_v27, %v292_v27  ;;  %447 = vmatprep.mubr.bf16.mxu0 %v299_v28 }
  0x25   : > { %638 = vmatprep.subr.bf16.mxu0 %v718_v8 }
  0x26   : > { %662 = vmatmul.mubr.msk.bf16.vlgmr.msra.gmra.mxu1 %vm411_vm2, %v300_v30 }
  0x28   : > { %639 = vmatpush3.bf16.msra.mxu0 %v719_v9 }
  0x29   : > { %640 = vmatprep.subr.bf16.mxu0 %v720_v10 }
  0x2c   : > { %641 = vmatpush3.bf16.msra.mxu0 %v721_v12 }
  0x2d   : > { %642 = vmatprep.subr.bf16.mxu0 %v722_v15 }
  0x30   : > { %643 = vmatpush3.bf16.msra.mxu0 %v723_v16 }
  0x31   : > { %644 = vmatprep.subr.bf16.mxu0 %v725_v20 }
  0x34   : > { %645 = vmatpush3.bf16.msra.mxu0 %v726_v24 }
  0x35   : > { %646 = vmatprep.subr.bf16.mxu0 %v728_v26 }
  0x38   : > { %647 = vmatpush3.bf16.msra.mxu0 %v729_v29 }
  0x3b   : > { %448 = vmatmul.mubr.bf16.vlgmr.msra.gmra.mxu0 %v292_v27 }
  0xe6   : > { %v489_v31 = vpop.f32.mrf.mxu1 }
  0xe8   : > { %v663_v32 = vpop.f32.mrf.mxu1 }
  0xea   : > { %v492_v33 = vpop.f32.mrf.mxu1 }
  0xec   : > { %v664_v35 = vpop.f32.mrf.mxu1 }
  0xfb   : > { %v648_v34 = vpop.f32.mrf.mxu0 }
  0xfd   : > { %v649_v36 = vpop.f32.mrf.mxu0 }
  0xfe   : > { %v650_v37 = vadd.f32 %v649_v36, %v648_v34 }
  0xff   : > { %v651_v39 = vpop.f32.mrf.mxu0 }
 0x100   : > { %v490_v40 = vadd.f32 %v650_v37, %v489_v31  ;;  %501 = sbr.rel (%p629_p8) target bundleno = 276 (0x114), region = 40 }
 0x101   : > { %v652_v41 = vpop.f32.mrf.mxu0 }
 0x102   : > { %v495_v42 = vadd.f32 %v490_v40, %v239_v38 }
 0x104   : > { %497 = vst.msk [vmem:[#allocation2] sm:$0x1] %vm496_vm3, %v495_v42 }
 0x105   : > { %v503_v44 = vld [vmem:[%s891_s2] sm:$0x1]  ;;  %vm508_vm4 = vsmask.f32 256 }
 0x106   : > { %vm509_vm5 = vmand %vm496_vm3, %vm508_vm4  ;;  %v510_v47 = vld [vmem:[%s831_s23] sm:$0x1] }
 0x10b   : > { %v502_v43 = vld [vmem:[#allocation2] sm:$0x1] }
 0x10c   : > { %v504_v45 = vadd.f32 %v503_v44, %v502_v43 }
 0x10e   : > { %v505_v46 = vmax.f32 %v504_v45, 0.0 }
 0x110   : > { %v506_v48 = vpack.c.bf16 %v505_v46, %v505_v46 }
 0x112   : > { %v511_v49 = vsel %vm509_vm5, %v506_v48, %v510_v47 }
 0x113   : > { %512 = vst [vmem:[%s831_s23] sm:$0x1] %v511_v49 }
 0x114 PF: > { %s13_s16 = sadd.s32 1, %s768_s16   ;;  %s893_s12 = smov %s760_s14 }
 0x115   : > { %p10_p9 = scmp.ge.s32.totalorder %s13_s16, 8   ;;  %s894_s13 = smov %s764_s15 }
 0x116   : > { %s895_s14 = smov %s898_s17  ;;  %s896_s15 = smov %s902_s18 }
 0x117   :  { %12 = sbr.rel (!%p10_p9) target bundleno = 3 (0x3), region = 73 }

</bundles_post_ra>
